<compile_context>
chip_gen: v6e
topology: v6e:2x2x1
jax: 0.10.0
libtpu: 0.0.40
codegen_flags: <defaults>
</compile_context>

<pallas_src>
import functools

import jax
import jax.numpy as jnp
from jax.experimental import pallas as pl
from jax.experimental.pallas import tpu as pltpu


# ---------------------------------------------------------------------------
# helpers
# ---------------------------------------------------------------------------
def _pick_tile(m, max_tile=1024):
    """Largest tile from a power-of-two ladder; prefer >=2 blocks (v7x: 2 TCs)."""
    cands = [t for t in (1024, 512, 256, 128, 64, 32, 16, 8) if t <= max_tile]
    for t in cands:
        if m % t == 0 and m // t >= 2:
            return t
    for t in cands:
        if m % t == 0:
            return t
    return m


# ---------------------------------------------------------------------------
# Pallas kernels
# ---------------------------------------------------------------------------
def _linear_kernel(z_ref, w_ref, b_ref, o_ref):
    acc = jnp.dot(z_ref[...], w_ref[...], preferred_element_type=jnp.float32)
    o_ref[...] = acc + b_ref[...]


def pallas_linear(z, w, b):
    """z: (B, K) bf16, w: (K, N) bf16, b: (N,) f32 -> (B, N) f32."""
    M, K = z.shape
    N = w.shape[1]
    return pl.pallas_call(
        _linear_kernel,
        out_shape=jax.ShapeDtypeStruct((M, N), jnp.float32),
        grid=(1,),
        in_specs=[
            pl.BlockSpec((M, K), lambda i: (0, 0)),
            pl.BlockSpec((K, N), lambda i: (0, 0)),
            pl.BlockSpec((1, N), lambda i: (0, 0)),
        ],
        out_specs=pl.BlockSpec((M, N), lambda i: (0, 0)),
    )(z, w, b.reshape(1, N))


def _convT_matmul_kernel(x_ref, w_ref, scale_ref, shift_ref, o_ref, *, apply_bn_relu):
    # Optional fused prologue: previous block's BatchNorm (per-channel affine) + ReLU
    # applied in f32 on the bf16-loaded input, then bf16 feed to the MXU.
    if apply_bn_relu:
        x = x_ref[...].astype(jnp.float32)
        x = jnp.maximum(x * scale_ref[...] + shift_ref[...], 0.0)
        x = x.astype(jnp.bfloat16)
    else:
        x = x_ref[...]
    o_ref[...] = jnp.dot(x, w_ref[...], preferred_element_type=jnp.float32)


def pallas_convT_matmul(x, wm, scale, shift, *, apply_bn_relu):
    """x: (M, Cin) bf16, wm: (Cin, 16*Cout) bf16, scale/shift: (Cin,) f32 -> (M, 16*Cout) f32."""
    M, K = x.shape
    N = wm.shape[1]
    # keep the f32 output tile <= ~4 MiB so double-buffering fits v7x's scoped VMEM
    max_tile = max(8, min(1024, (4 << 20) // max(1, 4 * N)))
    tm = _pick_tile(M, max_tile)
    kernel = functools.partial(_convT_matmul_kernel, apply_bn_relu=apply_bn_relu)
    return pl.pallas_call(
        kernel,
        out_shape=jax.ShapeDtypeStruct((M, N), jnp.float32),
        grid=(M // tm,),
        in_specs=[
            pl.BlockSpec((tm, K), lambda i: (i, 0)),
            pl.BlockSpec((K, N), lambda i: (0, 0)),
            pl.BlockSpec((1, K), lambda i: (0, 0)),
            pl.BlockSpec((1, K), lambda i: (0, 0)),
        ],
        out_specs=pl.BlockSpec((tm, N), lambda i: (i, 0)),
        compiler_params=pltpu.CompilerParams(dimension_semantics=("parallel",)),
    )(x, wm, scale.reshape(1, K), shift.reshape(1, K))


def _channel_stats_kernel(x_ref, sum_ref, sq_ref):
    # Accumulate per-channel sum and sum-of-squares over the M grid axis.
    @pl.when(pl.program_id(0) == 0)
    def _():
        sum_ref[...] = jnp.zeros_like(sum_ref)
        sq_ref[...] = jnp.zeros_like(sq_ref)

    x = x_ref[...].astype(jnp.float32)
    sum_ref[...] += jnp.sum(x, axis=0, keepdims=True)
    sq_ref[...] += jnp.sum(x * x, axis=0, keepdims=True)


def pallas_channel_stats(x):
    """x: (M, C) -> per-channel (sum, sumsq), each (C,) f32."""
    M, C = x.shape
    tm = _pick_tile(M)
    s, sq = pl.pallas_call(
        _channel_stats_kernel,
        out_shape=(jax.ShapeDtypeStruct((1, C), jnp.float32),
                   jax.ShapeDtypeStruct((1, C), jnp.float32)),
        grid=(M // tm,),
        in_specs=[pl.BlockSpec((tm, C), lambda i: (i, 0))],
        out_specs=[pl.BlockSpec((1, C), lambda i: (0, 0)),
                   pl.BlockSpec((1, C), lambda i: (0, 0))],
        compiler_params=pltpu.CompilerParams(dimension_semantics=("arbitrary",)),
    )(x)
    return s[0], sq[0]


def _tanh_kernel(x_ref, o_ref):
    o_ref[...] = jnp.tanh(x_ref[...])


def pallas_tanh(x):
    """Elementwise tanh on a 2-D lane-dense slab (M, N) f32."""
    M, N = x.shape
    tm = _pick_tile(M)
    return pl.pallas_call(
        _tanh_kernel,
        out_shape=jax.ShapeDtypeStruct((M, N), x.dtype),
        grid=(M // tm,),
        in_specs=[pl.BlockSpec((tm, N), lambda i: (i, 0))],
        out_specs=pl.BlockSpec((tm, N), lambda i: (i, 0)),
        compiler_params=pltpu.CompilerParams(dimension_semantics=("parallel",)),
    )(x)


# ---------------------------------------------------------------------------
# XLA glue: overlap-add the 16 taps into the (2H, 2W) output (pure layout).
# ConvTranspose2d(k=4, s=2, p=1):  out[2*ih - 1 + kh, 2*iw - 1 + kw] += tap(kh, kw)
#   even rows 2m : kh=1 @ ih=m   + kh=3 @ ih=m-1
#   odd  rows 2m+1: kh=2 @ ih=m  + kh=0 @ ih=m+1       (out-of-range taps dropped)
# ---------------------------------------------------------------------------
def col2im_subpixel(y, B, H, W, Cout):
    t = y.reshape(B, H, W, 4, 4, Cout)                       # (b, h, w, kh, kw, c)
    # combine along H
    t3 = jnp.pad(t[:, :, :, 3], ((0, 0), (1, 0), (0, 0), (0, 0), (0, 0)))[:, :H]
    t0 = jnp.pad(t[:, :, :, 0], ((0, 0), (0, 1), (0, 0), (0, 0), (0, 0)))[:, 1:]
    even_h = t[:, :, :, 1] + t3                               # (B, H, W, 4, C)
    odd_h = t[:, :, :, 2] + t0
    hh = jnp.stack([even_h, odd_h], axis=2).reshape(B, 2 * H, W, 4, Cout)
    # combine along W
    s3 = jnp.pad(hh[:, :, :, 3], ((0, 0), (0, 0), (1, 0), (0, 0)))[:, :, :W]
    s0 = jnp.pad(hh[:, :, :, 0], ((0, 0), (0, 0), (0, 1), (0, 0)))[:, :, 1:]
    even_w = hh[:, :, :, 1] + s3                              # (B, 2H, W, C)
    odd_w = hh[:, :, :, 2] + s0
    return jnp.stack([even_w, odd_w], axis=3).reshape(B, 2 * H, 2 * W, Cout)


# ---------------------------------------------------------------------------
# One-time parameter preparation (hoisted out of the forward pass)
# ---------------------------------------------------------------------------
def prepare_params(params, *, init_size, init_hidden_dim, latent_dim):
    S, C0 = init_size, init_hidden_dim
    prep = {}
    # Linear: permute output features from (c, h, w) to (h, w, c) ordering so the
    # kernel output reshapes directly to NHWC (no post-hoc transpose).
    wl = params["lin_w"].reshape(C0, S, S, latent_dim).transpose(1, 2, 0, 3)
    prep["lin_w"] = wl.reshape(S * S * C0, latent_dim).T.astype(jnp.bfloat16)
    bl = params["lin_b"].reshape(C0, S, S).transpose(1, 2, 0).reshape(S * S * C0)
    prep["lin_b"] = bl.astype(jnp.float32)
    # ConvTranspose2d weights (Cin, Cout, kH, kW) -> (Cin, 16*Cout), taps (kh, kw, co).
    for i in range(4):
        w = params[f"conv{i}_w"]
        cin, cout = w.shape[0], w.shape[1]
        prep[f"conv{i}_wm"] = jnp.transpose(w, (0, 2, 3, 1)).reshape(
            cin, 16 * cout).astype(jnp.bfloat16)
    for i in range(3):
        prep[f"bn{i}_gamma"] = params[f"bn{i}_gamma"].astype(jnp.float32)
        prep[f"bn{i}_beta"] = params[f"bn{i}_beta"].astype(jnp.float32)
    return prep


# ---------------------------------------------------------------------------
# Full generator forward
# ---------------------------------------------------------------------------
def generator_forward(z, prep, *, init_size, init_hidden_dim):
    B = z.shape[0]
    S, C0 = init_size, init_hidden_dim

    # latent -> img (Linear, bias=True); output already in NHWC column order
    h = pallas_linear(z.astype(jnp.bfloat16), prep["lin_w"], prep["lin_b"])
    x = h.reshape(B, S, S, C0).astype(jnp.bfloat16)           # (B, S, S, C0) NHWC

    # three ConvTranspose -> BN -> ReLU blocks; BN+ReLU fused into the NEXT matmul
    scale = jnp.ones((C0,), jnp.float32)                      # no BN before conv0
    shift = jnp.zeros((C0,), jnp.float32)
    apply_bn = False
    for i in range(3):
        Bq, H, W, Cin = x.shape
        wm = prep[f"conv{i}_wm"]
        Cout = wm.shape[1] // 16
        y = pallas_convT_matmul(x.reshape(Bq * H * W, Cin), wm, scale, shift,
                                apply_bn_relu=apply_bn)       # (M, 16*Cout) f32
        xo = col2im_subpixel(y, Bq, H, W, Cout)               # (B, 2H, 2W, Cout) f32
        x = xo.astype(jnp.bfloat16)
        # training-mode BatchNorm2d: batch stats over (N, H, W), biased variance
        s, sq = pallas_channel_stats(x.reshape(-1, Cout))
        cnt = Bq * (2 * H) * (2 * W)
        mean = s / cnt
        var = jnp.maximum(sq / cnt - mean * mean, 0.0)
        scale = prep[f"bn{i}_gamma"] * jax.lax.rsqrt(var + 1e-5)
        shift = prep[f"bn{i}_beta"] - mean * scale
        apply_bn = True

    # final ConvTranspose (bias=False) -> Tanh
    Bq, H, W, Cin = x.shape
    wm = prep["conv3_wm"]
    Cout = wm.shape[1] // 16
    y = pallas_convT_matmul(x.reshape(Bq * H * W, Cin), wm, scale, shift,
                            apply_bn_relu=True)
    xo = col2im_subpixel(y, Bq, H, W, Cout)                   # (B, 2H, 2W, n_ch) f32
    Bf, Hf, Wf, Cf = xo.shape
    out = pallas_tanh(xo.reshape(Bf * Hf, Wf * Cf)).reshape(Bf, Hf, Wf, Cf)
    return jnp.transpose(out, (0, 3, 1, 2))                   # back to NCHW


# ---------------------------------------------------------------------------
# Deterministic parameter construction (PyTorch layout), then prepared once
# ---------------------------------------------------------------------------
def init_params(key, latent_dim, init_hidden_dim, init_size, n_channels):
    keys = jax.random.split(key, 16)
    c = [init_hidden_dim, init_hidden_dim // 2, init_hidden_dim // 4,
         init_hidden_dim // 8, n_channels]
    params = {
        "lin_w": 0.02 * jax.random.normal(
            keys[0], (init_hidden_dim * init_size ** 2, latent_dim), jnp.float32),
        "lin_b": 0.02 * jax.random.normal(
            keys[1], (init_hidden_dim * init_size ** 2,), jnp.float32),
    }
    for i in range(4):
        params[f"conv{i}_w"] = 0.02 * jax.random.normal(
            keys[2 + i], (c[i], c[i + 1], 4, 4), jnp.float32)   # (Cin, Cout, kH, kW)
    for i in range(3):
        params[f"bn{i}_gamma"] = 1.0 + 0.1 * jax.random.normal(
            keys[8 + i], (c[i + 1],), jnp.float32)
        params[f"bn{i}_beta"] = 0.1 * jax.random.normal(
            keys[12 + i], (c[i + 1],), jnp.float32)
    return params


if __name__ == "__main__":
    # small config consistent with the module
    latent_dim, init_hidden_dim, init_size, n_channels, batch = 32, 32, 4, 3, 2

    key = jax.random.PRNGKey(0)
    pkey, zkey = jax.random.split(key)
    raw_params = init_params(pkey, latent_dim, init_hidden_dim, init_size, n_channels)
    prep = prepare_params(raw_params, init_size=init_size,
                          init_hidden_dim=init_hidden_dim, latent_dim=latent_dim)
    z = jax.random.normal(zkey, (batch, latent_dim), jnp.float32)

    fwd = jax.jit(functools.partial(generator_forward,
                                    init_size=init_size,
                                    init_hidden_dim=init_hidden_dim))
    img = fwd(z, prep)
    jax.block_until_ready(img)

    expected_shape = (batch, n_channels, init_size * 16, init_size * 16)
    assert img.shape == expected_shape, (img.shape, expected_shape)
    assert bool(jnp.all(jnp.isfinite(img)))
    assert bool(jnp.all(jnp.abs(img) <= 1.0))  # tanh range
    print("KERNEL_OK")
</pallas_src>

<mosaic_0001>
module attributes {stable_mosaic.version = 11 : i64} {
  func.func @_linear_kernel(%arg0: i32, %arg1: memref<2x32xbf16, #tpu.memory_space<vmem>>, %arg2: memref<32x512xbf16, #tpu.memory_space<vmem>>, %arg3: memref<1x512xf32, #tpu.memory_space<vmem>>, %arg4: memref<2x512xf32, #tpu.memory_space<vmem>>) attributes {dimension_semantics = [#tpu.dimension_semantics<arbitrary>], iteration_bounds = array<i64: 1>, scalar_prefetch = 0 : i64, scratch_operands = 0 : i64, tpu.core_type = #tpu.core_type<tc>, window_params = [{pipeline_mode = #tpu.pipeline_mode<synchronous>, transform_indices = @transform_0, window_bounds = array<i64: 2, 32>}, {pipeline_mode = #tpu.pipeline_mode<synchronous>, transform_indices = @transform_1, window_bounds = array<i64: 32, 512>}, {pipeline_mode = #tpu.pipeline_mode<synchronous>, transform_indices = @transform_2, window_bounds = array<i64: 1, 512>}, {pipeline_mode = #tpu.pipeline_mode<synchronous>, transform_indices = @transform_3, window_bounds = array<i64: 2, 512>}]} {
    %c0 = arith.constant 0 : index
    %c0_0 = arith.constant 0 : index
    %0 = vector.load %arg1[%c0, %c0_0] : memref<2x32xbf16, #tpu.memory_space<vmem>>, vector<2x32xbf16>
    %c0_1 = arith.constant 0 : index
    %c0_2 = arith.constant 0 : index
    %1 = vector.load %arg2[%c0_1, %c0_2] : memref<32x512xbf16, #tpu.memory_space<vmem>>, vector<32x512xbf16>
    %cst = arith.constant dense<0.000000e+00> : vector<2x512xf32>
    %2 = tpu.matmul %0, %1, %cst {dimension_numbers = #tpu.dot_dimension_numbers<[1], [0], [0], [1], [0, 0, 1, 1], [], []>} : vector<2x32xbf16>, vector<32x512xbf16>, vector<2x512xf32> -> vector<2x512xf32>
    %c0_3 = arith.constant 0 : index
    %c0_4 = arith.constant 0 : index
    %3 = vector.load %arg3[%c0_3, %c0_4] : memref<1x512xf32, #tpu.memory_space<vmem>>, vector<1x512xf32>
    %4 = vector.broadcast %3 : vector<1x512xf32> to vector<2x512xf32>
    %5 = arith.addf %2, %4 : vector<2x512xf32>
    %c0_5 = arith.constant 0 : index
    %c0_6 = arith.constant 0 : index
    %6 = vector.load %arg4[%c0_5, %c0_6] : memref<2x512xf32, #tpu.memory_space<vmem>>, vector<2x512xf32>
    tpu.vector_store %arg4[%c0_5, %c0_6], %5 {strides = array<i32>} : memref<2x512xf32, #tpu.memory_space<vmem>>, vector<2x512xf32>,
    return
  }
  func.func @transform_0(%arg0: i32) -> (i32, i32) {
    %c0_i32 = arith.constant 0 : i32
    %c0_i32_0 = arith.constant 0 : i32
    %c0_i32_1 = arith.constant 0 : i32
    return %c0_i32, %c0_i32_0 : i32, i32
  }
  func.func @transform_1(%arg0: i32) -> (i32, i32) {
    %c0_i32 = arith.constant 0 : i32
    %c0_i32_0 = arith.constant 0 : i32
    %c0_i32_1 = arith.constant 0 : i32
    return %c0_i32, %c0_i32_0 : i32, i32
  }
  func.func @transform_2(%arg0: i32) -> (i32, i32) {
    %c0_i32 = arith.constant 0 : i32
    %c0_i32_0 = arith.constant 0 : i32
    %c0_i32_1 = arith.constant 0 : i32
    return %c0_i32, %c0_i32_0 : i32, i32
  }
  func.func @transform_3(%arg0: i32) -> (i32, i32) {
    %c0_i32 = arith.constant 0 : i32
    %c0_i32_0 = arith.constant 0 : i32
    %c0_i32_1 = arith.constant 0 : i32
    return %c0_i32, %c0_i32_0 : i32, i32
  }
}

module attributes {stable_mosaic.version = 11 : i64} {
  func.func @_convT_matmul_kernel(%arg0: i32, %arg1: memref<16x32xbf16, #tpu.memory_space<vmem>>, %arg2: memref<32x256xbf16, #tpu.memory_space<vmem>>, %arg3: memref<1x32xf32, #tpu.memory_space<vmem>>, %arg4: memref<1x32xf32, #tpu.memory_space<vmem>>, %arg5: memref<16x256xf32, #tpu.memory_space<vmem>>) attributes {dimension_semantics = [#tpu.dimension_semantics<parallel>], iteration_bounds = array<i64: 2>, scalar_prefetch = 0 : i64, scratch_operands = 0 : i64, tpu.core_type = #tpu.core_type<tc>, window_params = [{transform_indices = @transform_0, window_bounds = array<i64: 16, 32>}, {pipeline_mode = #tpu.pipeline_mode<synchronous>, transform_indices = @transform_1, window_bounds = array<i64: 32, 256>}, {pipeline_mode = #tpu.pipeline_mode<synchronous>, transform_indices = @transform_2, window_bounds = array<i64: 1, 32>}, {pipeline_mode = #tpu.pipeline_mode<synchronous>, transform_indices = @transform_3, window_bounds = array<i64: 1, 32>}, {transform_indices = @transform_4, window_bounds = array<i64: 16, 256>}]} {
    %c0 = arith.constant 0 : index
    %c0_0 = arith.constant 0 : index
    %0 = vector.load %arg1[%c0, %c0_0] : memref<16x32xbf16, #tpu.memory_space<vmem>>, vector<16x32xbf16>
    %c0_1 = arith.constant 0 : index
    %c0_2 = arith.constant 0 : index
    %1 = vector.load %arg2[%c0_1, %c0_2] : memref<32x256xbf16, #tpu.memory_space<vmem>>, vector<32x256xbf16>
    %cst = arith.constant dense<0.000000e+00> : vector<16x256xf32>
    %2 = tpu.matmul %0, %1, %cst {dimension_numbers = #tpu.dot_dimension_numbers<[1], [0], [0], [1], [0, 0, 1, 1], [], []>} : vector<16x32xbf16>, vector<32x256xbf16>, vector<16x256xf32> -> vector<16x256xf32>
    %c0_3 = arith.constant 0 : index
    %c0_4 = arith.constant 0 : index
    %3 = vector.load %arg5[%c0_3, %c0_4] : memref<16x256xf32, #tpu.memory_space<vmem>>, vector<16x256xf32>
    tpu.vector_store %arg5[%c0_3, %c0_4], %2 {strides = array<i32>} : memref<16x256xf32, #tpu.memory_space<vmem>>, vector<16x256xf32>,
    return
  }
  func.func @transform_0(%arg0: i32) -> (i32, i32) {
    %c0_i32 = arith.constant 0 : i32
    %c0_i32_0 = arith.constant 0 : i32
    return %arg0, %c0_i32 : i32, i32
  }
  func.func @transform_1(%arg0: i32) -> (i32, i32) {
    %c0_i32 = arith.constant 0 : i32
    %c0_i32_0 = arith.constant 0 : i32
    %c0_i32_1 = arith.constant 0 : i32
    return %c0_i32, %c0_i32_0 : i32, i32
  }
  func.func @transform_2(%arg0: i32) -> (i32, i32) {
    %c0_i32 = arith.constant 0 : i32
    %c0_i32_0 = arith.constant 0 : i32
    %c0_i32_1 = arith.constant 0 : i32
    return %c0_i32, %c0_i32_0 : i32, i32
  }
  func.func @transform_3(%arg0: i32) -> (i32, i32) {
    %c0_i32 = arith.constant 0 : i32
    %c0_i32_0 = arith.constant 0 : i32
    %c0_i32_1 = arith.constant 0 : i32
    return %c0_i32, %c0_i32_0 : i32, i32
  }
  func.func @transform_4(%arg0: i32) -> (i32, i32) {
    %c0_i32 = arith.constant 0 : i32
    %c0_i32_0 = arith.constant 0 : i32
    return %arg0, %c0_i32 : i32, i32
  }
}

module attributes {stable_mosaic.version = 11 : i64} {
  func.func @_channel_stats_kernel(%arg0: i32, %arg1: memref<64x16xbf16, #tpu.memory_space<vmem>>, %arg2: memref<1x16xf32, #tpu.memory_space<vmem>>, %arg3: memref<1x16xf32, #tpu.memory_space<vmem>>) attributes {dimension_semantics = [#tpu.dimension_semantics<arbitrary>], iteration_bounds = array<i64: 2>, scalar_prefetch = 0 : i64, scratch_operands = 0 : i64, tpu.core_type = #tpu.core_type<tc>, window_params = [{transform_indices = @transform_0, window_bounds = array<i64: 64, 16>}, {pipeline_mode = #tpu.pipeline_mode<synchronous>, transform_indices = @transform_1, window_bounds = array<i64: 1, 16>}, {pipeline_mode = #tpu.pipeline_mode<synchronous>, transform_indices = @transform_2, window_bounds = array<i64: 1, 16>}]} {
    %c0_i32 = arith.constant 0 : i32
    %0 = arith.cmpi eq, %arg0, %c0_i32 : i32
    %1 = arith.extui %0 : i1 to i32
    %c0_i32_0 = arith.constant 0 : i32
    %2 = arith.cmpi ne, %1, %c0_i32_0 : i32
    scf.if %2 {
      %cst_11 = arith.constant 0.000000e+00 : f32
      %16 = vector.broadcast %cst_11 : f32 to vector<1x16xf32>
      %c0_12 = arith.constant 0 : index
      %c0_13 = arith.constant 0 : index
      %17 = vector.load %arg2[%c0_12, %c0_13] : memref<1x16xf32, #tpu.memory_space<vmem>>, vector<1x16xf32>
      tpu.vector_store %arg2[%c0_12, %c0_13], %16 {strides = array<i32>} : memref<1x16xf32, #tpu.memory_space<vmem>>, vector<1x16xf32>,
      %cst_14 = arith.constant 0.000000e+00 : f32
      %18 = vector.broadcast %cst_14 : f32 to vector<1x16xf32>
      %c0_15 = arith.constant 0 : index
      %c0_16 = arith.constant 0 : index
      %19 = vector.load %arg3[%c0_15, %c0_16] : memref<1x16xf32, #tpu.memory_space<vmem>>, vector<1x16xf32>
      tpu.vector_store %arg3[%c0_15, %c0_16], %18 {strides = array<i32>} : memref<1x16xf32, #tpu.memory_space<vmem>>, vector<1x16xf32>,
    } else {
    }
    %c0 = arith.constant 0 : index
    %c0_1 = arith.constant 0 : index
    %3 = vector.load %arg1[%c0, %c0_1] : memref<64x16xbf16, #tpu.memory_space<vmem>>, vector<64x16xbf16>
    %4 = arith.extf %3 : vector<64x16xbf16> to vector<64x16xf32>
    %c0_2 = arith.constant 0 : index
    %c0_3 = arith.constant 0 : index
    %5 = vector.load %arg2[%c0_2, %c0_3] : memref<1x16xf32, #tpu.memory_space<vmem>>, vector<1x16xf32>
    %cst = arith.constant dense<0.000000e+00> : vector<16xf32>
    %6 = vector.multi_reduction <add>, %4, %cst [0] : vector<64x16xf32> to vector<16xf32>
    %7 = vector.shape_cast %6 : vector<16xf32> to vector<1x16xf32>
    %8 = arith.addf %5, %7 : vector<1x16xf32>
    %c0_4 = arith.constant 0 : index
    %c0_5 = arith.constant 0 : index
    %9 = vector.load %arg2[%c0_4, %c0_5] : memref<1x16xf32, #tpu.memory_space<vmem>>, vector<1x16xf32>
    tpu.vector_store %arg2[%c0_4, %c0_5], %8 {strides = array<i32>} : memref<1x16xf32, #tpu.memory_space<vmem>>, vector<1x16xf32>,
    %c0_6 = arith.constant 0 : index
    %c0_7 = arith.constant 0 : index
    %10 = vector.load %arg3[%c0_6, %c0_7] : memref<1x16xf32, #tpu.memory_space<vmem>>, vector<1x16xf32>
    %11 = arith.mulf %4, %4 : vector<64x16xf32>
    %cst_8 = arith.constant dense<0.000000e+00> : vector<16xf32>
    %12 = vector.multi_reduction <add>, %11, %cst_8 [0] : vector<64x16xf32> to vector<16xf32>
    %13 = vector.shape_cast %12 : vector<16xf32> to vector<1x16xf32>
    %14 = arith.addf %10, %13 : vector<1x16xf32>
    %c0_9 = arith.constant 0 : index
    %c0_10 = arith.constant 0 : index
    %15 = vector.load %arg3[%c0_9, %c0_10] : memref<1x16xf32, #tpu.memory_space<vmem>>, vector<1x16xf32>
    tpu.vector_store %arg3[%c0_9, %c0_10], %14 {strides = array<i32>} : memref<1x16xf32, #tpu.memory_space<vmem>>, vector<1x16xf32>,
    return
  }
  func.func @transform_0(%arg0: i32) -> (i32, i32) {
    %c0_i32 = arith.constant 0 : i32
    %c0_i32_0 = arith.constant 0 : i32
    return %arg0, %c0_i32 : i32, i32
  }
  func.func @transform_1(%arg0: i32) -> (i32, i32) {
    %c0_i32 = arith.constant 0 : i32
    %c0_i32_0 = arith.constant 0 : i32
    %c0_i32_1 = arith.constant 0 : i32
    return %c0_i32, %c0_i32_0 : i32, i32
  }
  func.func @transform_2(%arg0: i32) -> (i32, i32) {
    %c0_i32 = arith.constant 0 : i32
    %c0_i32_0 = arith.constant 0 : i32
    %c0_i32_1 = arith.constant 0 : i32
    return %c0_i32, %c0_i32_0 : i32, i32
  }
}

module attributes {stable_mosaic.version = 11 : i64} {
  func.func @_convT_matmul_kernel(%arg0: i32, %arg1: memref<64x16xbf16, #tpu.memory_space<vmem>>, %arg2: memref<16x128xbf16, #tpu.memory_space<vmem>>, %arg3: memref<1x16xf32, #tpu.memory_space<vmem>>, %arg4: memref<1x16xf32, #tpu.memory_space<vmem>>, %arg5: memref<64x128xf32, #tpu.memory_space<vmem>>) attributes {dimension_semantics = [#tpu.dimension_semantics<parallel>], iteration_bounds = array<i64: 2>, scalar_prefetch = 0 : i64, scratch_operands = 0 : i64, tpu.core_type = #tpu.core_type<tc>, window_params = [{transform_indices = @transform_0, window_bounds = array<i64: 64, 16>}, {pipeline_mode = #tpu.pipeline_mode<synchronous>, transform_indices = @transform_1, window_bounds = array<i64: 16, 128>}, {pipeline_mode = #tpu.pipeline_mode<synchronous>, transform_indices = @transform_2, window_bounds = array<i64: 1, 16>}, {pipeline_mode = #tpu.pipeline_mode<synchronous>, transform_indices = @transform_3, window_bounds = array<i64: 1, 16>}, {transform_indices = @transform_4, window_bounds = array<i64: 64, 128>}]} {
    %c0 = arith.constant 0 : index
    %c0_0 = arith.constant 0 : index
    %0 = vector.load %arg1[%c0, %c0_0] : memref<64x16xbf16, #tpu.memory_space<vmem>>, vector<64x16xbf16>
    %1 = arith.extf %0 : vector<64x16xbf16> to vector<64x16xf32>
    %c0_1 = arith.constant 0 : index
    %c0_2 = arith.constant 0 : index
    %2 = vector.load %arg3[%c0_1, %c0_2] : memref<1x16xf32, #tpu.memory_space<vmem>>, vector<1x16xf32>
    %3 = vector.broadcast %2 : vector<1x16xf32> to vector<64x16xf32>
    %4 = arith.mulf %1, %3 : vector<64x16xf32>
    %c0_3 = arith.constant 0 : index
    %c0_4 = arith.constant 0 : index
    %5 = vector.load %arg4[%c0_3, %c0_4] : memref<1x16xf32, #tpu.memory_space<vmem>>, vector<1x16xf32>
    %6 = vector.broadcast %5 : vector<1x16xf32> to vector<64x16xf32>
    %7 = arith.addf %4, %6 : vector<64x16xf32>
    %cst = arith.constant 0.000000e+00 : f32
    %8 = vector.broadcast %cst : f32 to vector<64x16xf32>
    %9 = arith.maximumf %7, %8 : vector<64x16xf32>
    %10 = arith.truncf %9 : vector<64x16xf32> to vector<64x16xbf16>
    %c0_5 = arith.constant 0 : index
    %c0_6 = arith.constant 0 : index
    %11 = vector.load %arg2[%c0_5, %c0_6] : memref<16x128xbf16, #tpu.memory_space<vmem>>, vector<16x128xbf16>
    %cst_7 = arith.constant dense<0.000000e+00> : vector<64x128xf32>
    %12 = tpu.matmul %10, %11, %cst_7 {dimension_numbers = #tpu.dot_dimension_numbers<[1], [0], [0], [1], [0, 0, 1, 1], [], []>} : vector<64x16xbf16>, vector<16x128xbf16>, vector<64x128xf32> -> vector<64x128xf32>
    %c0_8 = arith.constant 0 : index
    %c0_9 = arith.constant 0 : index
    %13 = vector.load %arg5[%c0_8, %c0_9] : memref<64x128xf32, #tpu.memory_space<vmem>>, vector<64x128xf32>
    tpu.vector_store %arg5[%c0_8, %c0_9], %12 {strides = array<i32>} : memref<64x128xf32, #tpu.memory_space<vmem>>, vector<64x128xf32>,
    return
  }
  func.func @transform_0(%arg0: i32) -> (i32, i32) {
    %c0_i32 = arith.constant 0 : i32
    %c0_i32_0 = arith.constant 0 : i32
    return %arg0, %c0_i32 : i32, i32
  }
  func.func @transform_1(%arg0: i32) -> (i32, i32) {
    %c0_i32 = arith.constant 0 : i32
    %c0_i32_0 = arith.constant 0 : i32
    %c0_i32_1 = arith.constant 0 : i32
    return %c0_i32, %c0_i32_0 : i32, i32
  }
  func.func @transform_2(%arg0: i32) -> (i32, i32) {
    %c0_i32 = arith.constant 0 : i32
    %c0_i32_0 = arith.constant 0 : i32
    %c0_i32_1 = arith.constant 0 : i32
    return %c0_i32, %c0_i32_0 : i32, i32
  }
  func.func @transform_3(%arg0: i32) -> (i32, i32) {
    %c0_i32 = arith.constant 0 : i32
    %c0_i32_0 = arith.constant 0 : i32
    %c0_i32_1 = arith.constant 0 : i32
    return %c0_i32, %c0_i32_0 : i32, i32
  }
  func.func @transform_4(%arg0: i32) -> (i32, i32) {
    %c0_i32 = arith.constant 0 : i32
    %c0_i32_0 = arith.constant 0 : i32
    return %arg0, %c0_i32 : i32, i32
  }
}

module attributes {stable_mosaic.version = 11 : i64} {
  func.func @_channel_stats_kernel(%arg0: i32, %arg1: memref<256x8xbf16, #tpu.memory_space<vmem>>, %arg2: memref<1x8xf32, #tpu.memory_space<vmem>>, %arg3: memref<1x8xf32, #tpu.memory_space<vmem>>) attributes {dimension_semantics = [#tpu.dimension_semantics<arbitrary>], iteration_bounds = array<i64: 2>, scalar_prefetch = 0 : i64, scratch_operands = 0 : i64, tpu.core_type = #tpu.core_type<tc>, window_params = [{transform_indices = @transform_0, window_bounds = array<i64: 256, 8>}, {pipeline_mode = #tpu.pipeline_mode<synchronous>, transform_indices = @transform_1, window_bounds = array<i64: 1, 8>}, {pipeline_mode = #tpu.pipeline_mode<synchronous>, transform_indices = @transform_2, window_bounds = array<i64: 1, 8>}]} {
    %c0_i32 = arith.constant 0 : i32
    %0 = arith.cmpi eq, %arg0, %c0_i32 : i32
    %1 = arith.extui %0 : i1 to i32
    %c0_i32_0 = arith.constant 0 : i32
    %2 = arith.cmpi ne, %1, %c0_i32_0 : i32
    scf.if %2 {
      %cst_11 = arith.constant 0.000000e+00 : f32
      %16 = vector.broadcast %cst_11 : f32 to vector<1x8xf32>
      %c0_12 = arith.constant 0 : index
      %c0_13 = arith.constant 0 : index
      %17 = vector.load %arg2[%c0_12, %c0_13] : memref<1x8xf32, #tpu.memory_space<vmem>>, vector<1x8xf32>
      tpu.vector_store %arg2[%c0_12, %c0_13], %16 {strides = array<i32>} : memref<1x8xf32, #tpu.memory_space<vmem>>, vector<1x8xf32>,
      %cst_14 = arith.constant 0.000000e+00 : f32
      %18 = vector.broadcast %cst_14 : f32 to vector<1x8xf32>
      %c0_15 = arith.constant 0 : index
      %c0_16 = arith.constant 0 : index
      %19 = vector.load %arg3[%c0_15, %c0_16] : memref<1x8xf32, #tpu.memory_space<vmem>>, vector<1x8xf32>
      tpu.vector_store %arg3[%c0_15, %c0_16], %18 {strides = array<i32>} : memref<1x8xf32, #tpu.memory_space<vmem>>, vector<1x8xf32>,
    } else {
    }
    %c0 = arith.constant 0 : index
    %c0_1 = arith.constant 0 : index
    %3 = vector.load %arg1[%c0, %c0_1] : memref<256x8xbf16, #tpu.memory_space<vmem>>, vector<256x8xbf16>
    %4 = arith.extf %3 : vector<256x8xbf16> to vector<256x8xf32>
    %c0_2 = arith.constant 0 : index
    %c0_3 = arith.constant 0 : index
    %5 = vector.load %arg2[%c0_2, %c0_3] : memref<1x8xf32, #tpu.memory_space<vmem>>, vector<1x8xf32>
    %cst = arith.constant dense<0.000000e+00> : vector<8xf32>
    %6 = vector.multi_reduction <add>, %4, %cst [0] : vector<256x8xf32> to vector<8xf32>
    %7 = vector.shape_cast %6 : vector<8xf32> to vector<1x8xf32>
    %8 = arith.addf %5, %7 : vector<1x8xf32>
    %c0_4 = arith.constant 0 : index
    %c0_5 = arith.constant 0 : index
    %9 = vector.load %arg2[%c0_4, %c0_5] : memref<1x8xf32, #tpu.memory_space<vmem>>, vector<1x8xf32>
    tpu.vector_store %arg2[%c0_4, %c0_5], %8 {strides = array<i32>} : memref<1x8xf32, #tpu.memory_space<vmem>>, vector<1x8xf32>,
    %c0_6 = arith.constant 0 : index
    %c0_7 = arith.constant 0 : index
    %10 = vector.load %arg3[%c0_6, %c0_7] : memref<1x8xf32, #tpu.memory_space<vmem>>, vector<1x8xf32>
    %11 = arith.mulf %4, %4 : vector<256x8xf32>
    %cst_8 = arith.constant dense<0.000000e+00> : vector<8xf32>
    %12 = vector.multi_reduction <add>, %11, %cst_8 [0] : vector<256x8xf32> to vector<8xf32>
    %13 = vector.shape_cast %12 : vector<8xf32> to vector<1x8xf32>
    %14 = arith.addf %10, %13 : vector<1x8xf32>
    %c0_9 = arith.constant 0 : index
    %c0_10 = arith.constant 0 : index
    %15 = vector.load %arg3[%c0_9, %c0_10] : memref<1x8xf32, #tpu.memory_space<vmem>>, vector<1x8xf32>
    tpu.vector_store %arg3[%c0_9, %c0_10], %14 {strides = array<i32>} : memref<1x8xf32, #tpu.memory_space<vmem>>, vector<1x8xf32>,
    return
  }
  func.func @transform_0(%arg0: i32) -> (i32, i32) {
    %c0_i32 = arith.constant 0 : i32
    %c0_i32_0 = arith.constant 0 : i32
    return %arg0, %c0_i32 : i32, i32
  }
  func.func @transform_1(%arg0: i32) -> (i32, i32) {
    %c0_i32 = arith.constant 0 : i32
    %c0_i32_0 = arith.constant 0 : i32
    %c0_i32_1 = arith.constant 0 : i32
    return %c0_i32, %c0_i32_0 : i32, i32
  }
  func.func @transform_2(%arg0: i32) -> (i32, i32) {
    %c0_i32 = arith.constant 0 : i32
    %c0_i32_0 = arith.constant 0 : i32
    %c0_i32_1 = arith.constant 0 : i32
    return %c0_i32, %c0_i32_0 : i32, i32
  }
}

module attributes {stable_mosaic.version = 11 : i64} {
  func.func @_convT_matmul_kernel(%arg0: i32, %arg1: memref<256x8xbf16, #tpu.memory_space<vmem>>, %arg2: memref<8x64xbf16, #tpu.memory_space<vmem>>, %arg3: memref<1x8xf32, #tpu.memory_space<vmem>>, %arg4: memref<1x8xf32, #tpu.memory_space<vmem>>, %arg5: memref<256x64xf32, #tpu.memory_space<vmem>>) attributes {dimension_semantics = [#tpu.dimension_semantics<parallel>], iteration_bounds = array<i64: 2>, scalar_prefetch = 0 : i64, scratch_operands = 0 : i64, tpu.core_type = #tpu.core_type<tc>, window_params = [{transform_indices = @transform_0, window_bounds = array<i64: 256, 8>}, {pipeline_mode = #tpu.pipeline_mode<synchronous>, transform_indices = @transform_1, window_bounds = array<i64: 8, 64>}, {pipeline_mode = #tpu.pipeline_mode<synchronous>, transform_indices = @transform_2, window_bounds = array<i64: 1, 8>}, {pipeline_mode = #tpu.pipeline_mode<synchronous>, transform_indices = @transform_3, window_bounds = array<i64: 1, 8>}, {transform_indices = @transform_4, window_bounds = array<i64: 256, 64>}]} {
    %c0 = arith.constant 0 : index
    %c0_0 = arith.constant 0 : index
    %0 = vector.load %arg1[%c0, %c0_0] : memref<256x8xbf16, #tpu.memory_space<vmem>>, vector<256x8xbf16>
    %1 = arith.extf %0 : vector<256x8xbf16> to vector<256x8xf32>
    %c0_1 = arith.constant 0 : index
    %c0_2 = arith.constant 0 : index
    %2 = vector.load %arg3[%c0_1, %c0_2] : memref<1x8xf32, #tpu.memory_space<vmem>>, vector<1x8xf32>
    %3 = vector.broadcast %2 : vector<1x8xf32> to vector<256x8xf32>
    %4 = arith.mulf %1, %3 : vector<256x8xf32>
    %c0_3 = arith.constant 0 : index
    %c0_4 = arith.constant 0 : index
    %5 = vector.load %arg4[%c0_3, %c0_4] : memref<1x8xf32, #tpu.memory_space<vmem>>, vector<1x8xf32>
    %6 = vector.broadcast %5 : vector<1x8xf32> to vector<256x8xf32>
    %7 = arith.addf %4, %6 : vector<256x8xf32>
    %cst = arith.constant 0.000000e+00 : f32
    %8 = vector.broadcast %cst : f32 to vector<256x8xf32>
    %9 = arith.maximumf %7, %8 : vector<256x8xf32>
    %10 = arith.truncf %9 : vector<256x8xf32> to vector<256x8xbf16>
    %c0_5 = arith.constant 0 : index
    %c0_6 = arith.constant 0 : index
    %11 = vector.load %arg2[%c0_5, %c0_6] : memref<8x64xbf16, #tpu.memory_space<vmem>>, vector<8x64xbf16>
    %cst_7 = arith.constant dense<0.000000e+00> : vector<256x64xf32>
    %12 = tpu.matmul %10, %11, %cst_7 {dimension_numbers = #tpu.dot_dimension_numbers<[1], [0], [0], [1], [0, 0, 1, 1], [], []>} : vector<256x8xbf16>, vector<8x64xbf16>, vector<256x64xf32> -> vector<256x64xf32>
    %c0_8 = arith.constant 0 : index
    %c0_9 = arith.constant 0 : index
    %13 = vector.load %arg5[%c0_8, %c0_9] : memref<256x64xf32, #tpu.memory_space<vmem>>, vector<256x64xf32>
    tpu.vector_store %arg5[%c0_8, %c0_9], %12 {strides = array<i32>} : memref<256x64xf32, #tpu.memory_space<vmem>>, vector<256x64xf32>,
    return
  }
  func.func @transform_0(%arg0: i32) -> (i32, i32) {
    %c0_i32 = arith.constant 0 : i32
    %c0_i32_0 = arith.constant 0 : i32
    return %arg0, %c0_i32 : i32, i32
  }
  func.func @transform_1(%arg0: i32) -> (i32, i32) {
    %c0_i32 = arith.constant 0 : i32
    %c0_i32_0 = arith.constant 0 : i32
    %c0_i32_1 = arith.constant 0 : i32
    return %c0_i32, %c0_i32_0 : i32, i32
  }
  func.func @transform_2(%arg0: i32) -> (i32, i32) {
    %c0_i32 = arith.constant 0 : i32
    %c0_i32_0 = arith.constant 0 : i32
    %c0_i32_1 = arith.constant 0 : i32
    return %c0_i32, %c0_i32_0 : i32, i32
  }
  func.func @transform_3(%arg0: i32) -> (i32, i32) {
    %c0_i32 = arith.constant 0 : i32
    %c0_i32_0 = arith.constant 0 : i32
    %c0_i32_1 = arith.constant 0 : i32
    return %c0_i32, %c0_i32_0 : i32, i32
  }
  func.func @transform_4(%arg0: i32) -> (i32, i32) {
    %c0_i32 = arith.constant 0 : i32
    %c0_i32_0 = arith.constant 0 : i32
    return %arg0, %c0_i32 : i32, i32
  }
}

module attributes {stable_mosaic.version = 11 : i64} {
  func.func @_channel_stats_kernel(%arg0: i32, %arg1: memref<1024x4xbf16, #tpu.memory_space<vmem>>, %arg2: memref<1x4xf32, #tpu.memory_space<vmem>>, %arg3: memref<1x4xf32, #tpu.memory_space<vmem>>) attributes {dimension_semantics = [#tpu.dimension_semantics<arbitrary>], iteration_bounds = array<i64: 2>, scalar_prefetch = 0 : i64, scratch_operands = 0 : i64, tpu.core_type = #tpu.core_type<tc>, window_params = [{transform_indices = @transform_0, window_bounds = array<i64: 1024, 4>}, {pipeline_mode = #tpu.pipeline_mode<synchronous>, transform_indices = @transform_1, window_bounds = array<i64: 1, 4>}, {pipeline_mode = #tpu.pipeline_mode<synchronous>, transform_indices = @transform_2, window_bounds = array<i64: 1, 4>}]} {
    %c0_i32 = arith.constant 0 : i32
    %0 = arith.cmpi eq, %arg0, %c0_i32 : i32
    %1 = arith.extui %0 : i1 to i32
    %c0_i32_0 = arith.constant 0 : i32
    %2 = arith.cmpi ne, %1, %c0_i32_0 : i32
    scf.if %2 {
      %cst_11 = arith.constant 0.000000e+00 : f32
      %16 = vector.broadcast %cst_11 : f32 to vector<1x4xf32>
      %c0_12 = arith.constant 0 : index
      %c0_13 = arith.constant 0 : index
      %17 = vector.load %arg2[%c0_12, %c0_13] : memref<1x4xf32, #tpu.memory_space<vmem>>, vector<1x4xf32>
      tpu.vector_store %arg2[%c0_12, %c0_13], %16 {strides = array<i32>} : memref<1x4xf32, #tpu.memory_space<vmem>>, vector<1x4xf32>,
      %cst_14 = arith.constant 0.000000e+00 : f32
      %18 = vector.broadcast %cst_14 : f32 to vector<1x4xf32>
      %c0_15 = arith.constant 0 : index
      %c0_16 = arith.constant 0 : index
      %19 = vector.load %arg3[%c0_15, %c0_16] : memref<1x4xf32, #tpu.memory_space<vmem>>, vector<1x4xf32>
      tpu.vector_store %arg3[%c0_15, %c0_16], %18 {strides = array<i32>} : memref<1x4xf32, #tpu.memory_space<vmem>>, vector<1x4xf32>,
    } else {
    }
    %c0 = arith.constant 0 : index
    %c0_1 = arith.constant 0 : index
    %3 = vector.load %arg1[%c0, %c0_1] : memref<1024x4xbf16, #tpu.memory_space<vmem>>, vector<1024x4xbf16>
    %4 = arith.extf %3 : vector<1024x4xbf16> to vector<1024x4xf32>
    %c0_2 = arith.constant 0 : index
    %c0_3 = arith.constant 0 : index
    %5 = vector.load %arg2[%c0_2, %c0_3] : memref<1x4xf32, #tpu.memory_space<vmem>>, vector<1x4xf32>
    %cst = arith.constant dense<0.000000e+00> : vector<4xf32>
    %6 = vector.multi_reduction <add>, %4, %cst [0] : vector<1024x4xf32> to vector<4xf32>
    %7 = vector.shape_cast %6 : vector<4xf32> to vector<1x4xf32>
    %8 = arith.addf %5, %7 : vector<1x4xf32>
    %c0_4 = arith.constant 0 : index
    %c0_5 = arith.constant 0 : index
    %9 = vector.load %arg2[%c0_4, %c0_5] : memref<1x4xf32, #tpu.memory_space<vmem>>, vector<1x4xf32>
    tpu.vector_store %arg2[%c0_4, %c0_5], %8 {strides = array<i32>} : memref<1x4xf32, #tpu.memory_space<vmem>>, vector<1x4xf32>,
    %c0_6 = arith.constant 0 : index
    %c0_7 = arith.constant 0 : index
    %10 = vector.load %arg3[%c0_6, %c0_7] : memref<1x4xf32, #tpu.memory_space<vmem>>, vector<1x4xf32>
    %11 = arith.mulf %4, %4 : vector<1024x4xf32>
    %cst_8 = arith.constant dense<0.000000e+00> : vector<4xf32>
    %12 = vector.multi_reduction <add>, %11, %cst_8 [0] : vector<1024x4xf32> to vector<4xf32>
    %13 = vector.shape_cast %12 : vector<4xf32> to vector<1x4xf32>
    %14 = arith.addf %10, %13 : vector<1x4xf32>
    %c0_9 = arith.constant 0 : index
    %c0_10 = arith.constant 0 : index
    %15 = vector.load %arg3[%c0_9, %c0_10] : memref<1x4xf32, #tpu.memory_space<vmem>>, vector<1x4xf32>
    tpu.vector_store %arg3[%c0_9, %c0_10], %14 {strides = array<i32>} : memref<1x4xf32, #tpu.memory_space<vmem>>, vector<1x4xf32>,
    return
  }
  func.func @transform_0(%arg0: i32) -> (i32, i32) {
    %c0_i32 = arith.constant 0 : i32
    %c0_i32_0 = arith.constant 0 : i32
    return %arg0, %c0_i32 : i32, i32
  }
  func.func @transform_1(%arg0: i32) -> (i32, i32) {
    %c0_i32 = arith.constant 0 : i32
    %c0_i32_0 = arith.constant 0 : i32
    %c0_i32_1 = arith.constant 0 : i32
    return %c0_i32, %c0_i32_0 : i32, i32
  }
  func.func @transform_2(%arg0: i32) -> (i32, i32) {
    %c0_i32 = arith.constant 0 : i32
    %c0_i32_0 = arith.constant 0 : i32
    %c0_i32_1 = arith.constant 0 : i32
    return %c0_i32, %c0_i32_0 : i32, i32
  }
}

module attributes {stable_mosaic.version = 11 : i64} {
  func.func @_convT_matmul_kernel(%arg0: i32, %arg1: memref<1024x4xbf16, #tpu.memory_space<vmem>>, %arg2: memref<4x48xbf16, #tpu.memory_space<vmem>>, %arg3: memref<1x4xf32, #tpu.memory_space<vmem>>, %arg4: memref<1x4xf32, #tpu.memory_space<vmem>>, %arg5: memref<1024x48xf32, #tpu.memory_space<vmem>>) attributes {dimension_semantics = [#tpu.dimension_semantics<parallel>], iteration_bounds = array<i64: 2>, scalar_prefetch = 0 : i64, scratch_operands = 0 : i64, tpu.core_type = #tpu.core_type<tc>, window_params = [{transform_indices = @transform_0, window_bounds = array<i64: 1024, 4>}, {pipeline_mode = #tpu.pipeline_mode<synchronous>, transform_indices = @transform_1, window_bounds = array<i64: 4, 48>}, {pipeline_mode = #tpu.pipeline_mode<synchronous>, transform_indices = @transform_2, window_bounds = array<i64: 1, 4>}, {pipeline_mode = #tpu.pipeline_mode<synchronous>, transform_indices = @transform_3, window_bounds = array<i64: 1, 4>}, {transform_indices = @transform_4, window_bounds = array<i64: 1024, 48>}]} {
    %c0 = arith.constant 0 : index
    %c0_0 = arith.constant 0 : index
    %0 = vector.load %arg1[%c0, %c0_0] : memref<1024x4xbf16, #tpu.memory_space<vmem>>, vector<1024x4xbf16>
    %1 = arith.extf %0 : vector<1024x4xbf16> to vector<1024x4xf32>
    %c0_1 = arith.constant 0 : index
    %c0_2 = arith.constant 0 : index
    %2 = vector.load %arg3[%c0_1, %c0_2] : memref<1x4xf32, #tpu.memory_space<vmem>>, vector<1x4xf32>
    %3 = vector.broadcast %2 : vector<1x4xf32> to vector<1024x4xf32>
    %4 = arith.mulf %1, %3 : vector<1024x4xf32>
    %c0_3 = arith.constant 0 : index
    %c0_4 = arith.constant 0 : index
    %5 = vector.load %arg4[%c0_3, %c0_4] : memref<1x4xf32, #tpu.memory_space<vmem>>, vector<1x4xf32>
    %6 = vector.broadcast %5 : vector<1x4xf32> to vector<1024x4xf32>
    %7 = arith.addf %4, %6 : vector<1024x4xf32>
    %cst = arith.constant 0.000000e+00 : f32
    %8 = vector.broadcast %cst : f32 to vector<1024x4xf32>
    %9 = arith.maximumf %7, %8 : vector<1024x4xf32>
    %10 = arith.truncf %9 : vector<1024x4xf32> to vector<1024x4xbf16>
    %c0_5 = arith.constant 0 : index
    %c0_6 = arith.constant 0 : index
    %11 = vector.load %arg2[%c0_5, %c0_6] : memref<4x48xbf16, #tpu.memory_space<vmem>>, vector<4x48xbf16>
    %cst_7 = arith.constant dense<0.000000e+00> : vector<1024x48xf32>
    %12 = tpu.matmul %10, %11, %cst_7 {dimension_numbers = #tpu.dot_dimension_numbers<[1], [0], [0], [1], [0, 0, 1, 1], [], []>} : vector<1024x4xbf16>, vector<4x48xbf16>, vector<1024x48xf32> -> vector<1024x48xf32>
    %c0_8 = arith.constant 0 : index
    %c0_9 = arith.constant 0 : index
    %13 = vector.load %arg5[%c0_8, %c0_9] : memref<1024x48xf32, #tpu.memory_space<vmem>>, vector<1024x48xf32>
    tpu.vector_store %arg5[%c0_8, %c0_9], %12 {strides = array<i32>} : memref<1024x48xf32, #tpu.memory_space<vmem>>, vector<1024x48xf32>,
    return
  }
  func.func @transform_0(%arg0: i32) -> (i32, i32) {
    %c0_i32 = arith.constant 0 : i32
    %c0_i32_0 = arith.constant 0 : i32
    return %arg0, %c0_i32 : i32, i32
  }
  func.func @transform_1(%arg0: i32) -> (i32, i32) {
    %c0_i32 = arith.constant 0 : i32
    %c0_i32_0 = arith.constant 0 : i32
    %c0_i32_1 = arith.constant 0 : i32
    return %c0_i32, %c0_i32_0 : i32, i32
  }
  func.func @transform_2(%arg0: i32) -> (i32, i32) {
    %c0_i32 = arith.constant 0 : i32
    %c0_i32_0 = arith.constant 0 : i32
    %c0_i32_1 = arith.constant 0 : i32
    return %c0_i32, %c0_i32_0 : i32, i32
  }
  func.func @transform_3(%arg0: i32) -> (i32, i32) {
    %c0_i32 = arith.constant 0 : i32
    %c0_i32_0 = arith.constant 0 : i32
    %c0_i32_1 = arith.constant 0 : i32
    return %c0_i32, %c0_i32_0 : i32, i32
  }
  func.func @transform_4(%arg0: i32) -> (i32, i32) {
    %c0_i32 = arith.constant 0 : i32
    %c0_i32_0 = arith.constant 0 : i32
    return %arg0, %c0_i32 : i32, i32
  }
}

module attributes {stable_mosaic.version = 11 : i64} {
  func.func @_tanh_kernel(%arg0: i32, %arg1: memref<64x192xf32, #tpu.memory_space<vmem>>, %arg2: memref<64x192xf32, #tpu.memory_space<vmem>>) attributes {dimension_semantics = [#tpu.dimension_semantics<parallel>], iteration_bounds = array<i64: 2>, scalar_prefetch = 0 : i64, scratch_operands = 0 : i64, tpu.core_type = #tpu.core_type<tc>, window_params = [{transform_indices = @transform_0, window_bounds = array<i64: 64, 192>}, {transform_indices = @transform_1, window_bounds = array<i64: 64, 192>}]} {
    %c0 = arith.constant 0 : index
    %c0_0 = arith.constant 0 : index
    %0 = vector.load %arg1[%c0, %c0_0] : memref<64x192xf32, #tpu.memory_space<vmem>>, vector<64x192xf32>
    %1 = math.tanh %0 : vector<64x192xf32>
    %c0_1 = arith.constant 0 : index
    %c0_2 = arith.constant 0 : index
    %2 = vector.load %arg2[%c0_1, %c0_2] : memref<64x192xf32, #tpu.memory_space<vmem>>, vector<64x192xf32>
    tpu.vector_store %arg2[%c0_1, %c0_2], %1 {strides = array<i32>} : memref<64x192xf32, #tpu.memory_space<vmem>>, vector<64x192xf32>,
    return
  }
  func.func @transform_0(%arg0: i32) -> (i32, i32) {
    %c0_i32 = arith.constant 0 : i32
    %c0_i32_0 = arith.constant 0 : i32
    return %arg0, %c0_i32 : i32, i32
  }
  func.func @transform_1(%arg0: i32) -> (i32, i32) {
    %c0_i32 = arith.constant 0 : i32
    %c0_i32_0 = arith.constant 0 : i32
    return %arg0, %c0_i32 : i32, i32
  }
}

</mosaic_0001>

<bundles_post_ra>
// kernel: generator_forward.9
= control target key start
LH: loop header
LB: loop body
LE: loop exit
PB: predicated region body
PF: predicated region fallthrough
CT: control target
= control target key end

     0   :  { %8 = vsyncpa [#allocation3], 0  ;;  %s337_s0 = inlined_call_operand.vmem [shape: bf16[2,32], index: 0, kind: input, shape index: {}]   ;;  %s338_s1 = inlined_call_operand.hbm [shape: bf16[32,512], index: 1, kind: input, shape index: {}]   ;;  %s339_s2 = inlined_call_operand.hbm [shape: f32[1,512], index: 2, kind: input, shape index: {}]   ;;  %s340_s3 = inlined_call_operand.vmem [shape: f32[2,512], index: 3, kind: output, shape index: {}]  }
   0x1   :  { %9 = vsyncpa [#allocation5], 0  ;;  %s299_s12 = smov [#allocation2]  }
   0x2   :  { %s17_s13 = sshll.u32 %s299_s12, 4  ;;  %s18_s13 = int_to_ptr.vmem [resolvable:$true] %s17_s13 }
   0x3   :  { %s263_s14 = scalar_lea.vmem %s18_s13, 1024  ;;  %p268_p1 = scmp.lt.s32.totalorder %s18_s13, %s18_s13 }
   0x4   :  { %p264_p0 = scmp.ne.s32.totalorder %s18_s13, %s263_s14  ;;  %p269_p2 = scmp.lt.s32.totalorder %s263_s14, %s263_s14 }
   0x6   :  { %p270_p3 = por %p269_p2, %p268_p1 }
   0x8   :  { %p271_p4 = pnand %p270_p3, %p264_p0 }
   0xa   :  { %274 = shalt.err (!%p271_p4)
}
   0xb   :  { %s300_s15 = smov 256   ;;  %s301_s16 = smov 16  }
   0xc   :  { %23 = dma.hbm_to_vmem [thread:$0]  %s338_s1, 1024, %s18_s13, [#allocation3], %s300_s15, %s300_s15, %s301_s16  }
   0xd   :  { %s302_s19 = smov [#allocation4]  }
   0xe   :  { %s30_s20 = sshll.u32 %s302_s19, 4  ;;  %s31_s20 = int_to_ptr.vmem [resolvable:$true] %s30_s20 }
   0xf   :  { %s283_s21 = scalar_lea.vmem %s31_s20, 64  ;;  %p288_p6 = scmp.lt.s32.totalorder %s31_s20, %s31_s20 }
  0x10   :  { %p284_p5 = scmp.ne.s32.totalorder %s31_s20, %s283_s21  ;;  %p289_p7 = scmp.lt.s32.totalorder %s283_s21, %s283_s21 }
  0x12   :  { %p290_p8 = por %p289_p7, %p288_p6 }
  0x14   :  { %p291_p9 = pnand %p290_p8, %p284_p5 }
  0x16   :  { %294 = shalt.err (!%p291_p9)
}
  0x17   :  { %33 = dma.hbm_to_vmem [thread:$0]  %s339_s2, 64, %s31_s20, [#allocation5]  }
  0x18   :  { %295 = dma.done.wait [#allocation3], 1024  }
  0x19   :  { %296 = vsyncadd [#allocation3], 4294966272 }
  0x1a   :  { %297 = dma.done.wait [#allocation5], 64  }
  0x1b   :  { %298 = vsyncadd [#allocation5], 4294967232  ;;  %v303_v0 = vmov 0   ;;  %v243_v1 = vld [vmem:[#allocation2 + $0x24] ss:$16 sps:$4 sm:$0xff]   ;;  %vm112_vm0 = vcmask 261120   ;;  %v52_v10 = vlaneseq }
  0x1c   :  { %148 = vmatprep.mubr.bf16.mxu0 %v303_v0  ;;  %189 = vmatprep.mubr.bf16.mxu1 %v303_v0  ;;  %v245_v2 = vld [vmem:[#allocation2 + $0x2c] ss:$16 sps:$4 sm:$0xff]   ;;  %v247_v3 = vld [vmem:[#allocation2 + $0x20] ss:$16 sps:$4 sm:$0xff]   ;;  %v248_v4 = vld [vmem:[#allocation2 + $0x28] ss:$16 sps:$4 sm:$0xff]  }
  0x1d   :  { %128 = vmatprep.subr.bf16.mxu0 %v243_v1  ;;  %169 = vmatprep.subr.bf16.mxu1 %v245_v2  ;;  %v249_v5 = vld [vmem:[#allocation2 + $0x4] ss:$16 sps:$4 sm:$0xff]   ;;  %v251_v6 = vld [vmem:[#allocation2 + $0xc] ss:$16 sps:$4 sm:$0xff]   ;;  %v253_v7 = vld [vmem:[#allocation2] ss:$16 sps:$4 sm:$0xff]  }
  0x1e   :  { %129 = vmatpush1.bf16.msra.mxu0 %v247_v3  ;;  %170 = vmatpush1.bf16.msra.mxu1 %v248_v4  ;;  %v254_v8 = vld [vmem:[#allocation2 + $0x8] ss:$16 sps:$4 sm:$0xff]   ;;  %v41_v9 = vld [vmem:[%s337_s0] sm:$0x1]  ;;  %v53_v11 = vshrl.u32 %v52_v10, 7 }
  0x1f   :  { %130 = vmatprep.subr.bf16.mxu0 %v249_v5  ;;  %171 = vmatprep.subr.bf16.mxu1 %v251_v6  ;;  %v304_v12 = vmov 1983009808   ;;  %v50_v18 = vld [vmem:[#allocation4] sm:$0xf] }
  0x20   :  { %v205_v13 = vunpack.c.l.s4 %v304_v12  ;;  %v54_v14 = vsub.s32 0, %v53_v11  ;;  %v62_v15 = vsub.s32 2, %v53_v11  ;;  %v58_v16 = vsub.s32 1, %v53_v11 }
  0x21   :  { %v66_v17 = vsub.s32 3, %v53_v11 }
  0x22   :  { %131 = vmatpush1.bf16.msra.mxu0 %v253_v7  ;;  %172 = vmatpush1.bf16.msra.mxu1 %v254_v8  ;;  %v206_v19 = vunpack.c.0.s8 %v205_v13  ;;  %v55_v20 = vrot.slane %v50_v18, %v54_v14  ;;  %v63_v21 = vrot.slane %v50_v18, %v62_v15  ;;  %v59_v22 = vrot.slane %v50_v18, %v58_v16 }
  0x23   :  { %v67_v23 = vrot.slane %v50_v18, %v66_v17 }
  0x24   :  { %v209_v27 = vsub.s32 %v206_v19, %v53_v11 }
  0x25   :  { %235 = vmatmul.mubr.msk.bf16.vlgmr.msra.gmra.mxu0 %vm112_vm0, %v41_v9  ;;  %236 = vmatmul.mubr.msk.bf16.vlgmr.msra.gmra.mxu1 %vm112_vm0, %v41_v9 }
  0xe5   :  { %v150_v24 = vpop.f32.mrf.mxu0  ;;  %v191_v25 = vpop.f32.mrf.mxu1 }
  0xe6   :  { %v151_v29 = vadd.f32 %v150_v24, %v55_v20  ;;  %v192_v30 = vadd.f32 %v191_v25, %v63_v21 }
  0xe7   :  { %v152_v26 = vpop.f32.mrf.mxu0  ;;  %v193_v28 = vpop.f32.mrf.mxu1 }
  0xe8   :  { %v153_v31 = vadd.f32 %v152_v26, %v59_v22  ;;  %v194_v32 = vadd.f32 %v193_v28, %v67_v23 }
  0xe9   :  { %v154_v33 = vpop.f32.mrf.mxu0  ;;  %v195_v34 = vpop.f32.mrf.mxu1 }
  0xea   :  { %v202_v35 = vcombine.low %v151_v29, %v153_v31  ;;  %v203_v36 = vcombine.low %v192_v30, %v194_v32 }
  0xeb   :  { %v155_v37 = vpop.f32.mrf.mxu0  ;;  %v196_v38 = vpop.f32.mrf.mxu1 }
  0xec   :  { %v210_v39 = vrot.slane %v202_v35, %v209_v27  ;;  %v217_v40 = vrot.slane %v203_v36, %v209_v27 }
  0xee   :  { %v218_v41 = vcombine.low %v210_v39, %v217_v40 }
  0xf0   :  { %220 = vst [vmem:[%s340_s3] sm:$0xff] %v218_v41 }
  0xf1   :  { %225 = vsyncpa [#allocation3], 1 }
  0xf2   :  { %226 = vsyncpa [#allocation5], 1 }

// kernel: generator_forward.10
= control target key start
LH: loop header
LB: loop body
LE: loop exit
PB: predicated region body
PF: predicated region fallthrough
CT: control target
= control target key end

     0   :  { %9 = vsyncpa [#allocation3], 0  ;;  %s488_s15 = smov 0   ;;  %s526_s0 = inlined_call_operand.vmem [shape: bf16[32,32], index: 0, kind: input, shape index: {}]   ;;  %s527_s1 = inlined_call_operand.hbm [shape: bf16[32,256], index: 1, kind: input, shape index: {}]   ;;  %s528_s2 = inlined_call_operand.vmem [shape: f32[1,32], index: 2, kind: input, shape index: {}]   ;;  %s529_s3 = inlined_call_operand.vmem [shape: f32[1,32], index: 3, kind: input, shape index: {}]   ;;  %s530_s4 = inlined_call_operand.vmem [shape: f32[32,256], index: 4, kind: output, shape index: {}]  }
   0x1 LB: > { %s371_s16 = sadd.s32 4294967295, %s457_s15   ;;  %p373_p0 = scmp.ge.s32.totalorder %s457_s15, 1  ;;  %s457_s15 = sphi %s488_s15, %s15_s15  }
   0x2   : > { %p135_p1 = scmp.lt.s32.totalorder %s457_s15, 3  ;;  %s459_s2 = smov [#allocation2]  }
   0x3   : > { %s147_s17 = sshll.u32 %s459_s2, 4  ;;  %p500_p3 = scmp.eq.s32.totalorder %s371_s16, 0  ;;  %s148_s17 = int_to_ptr.vmem [resolvable:$true] %s147_s17 }
   0x4   : > { %p496_p2 = pnand %p373_p0, %p135_p1  ;;  %s432_s19 = scalar_lea.vmem %s148_s17, 512 }
   0x5   : > { %p433_p7 = scmp.ne.s32.totalorder %s148_s17, %s432_s19  ;;  %p440_p10 = scmp.lt.s32.totalorder %s148_s17, %s148_s17 }
   0x6   : > { %p396_p4 = pneg %p496_p2  ;;  %p441_p11 = scmp.lt.s32.totalorder %s432_s19, %s432_s19 }
   0x8   : > { %p397_p5 = pnand %p500_p3, %p396_p4  ;;  %p442_p12 = por %p441_p11, %p440_p10 }
   0xa   : > { %p423_p6 = pneg %p397_p5 }
   0xc   : > { %p435_p8 = pnand %p433_p7, %p423_p6 }
   0xe   : > { %p436_p9 = pneg %p435_p8 }
  0x10   : > { %p443_p13 = pnand %p442_p12, %p436_p9 }
  0x12   : > { %446 = shalt.err (!%p443_p13)
}
  0x13   : > { %s460_s20 = smov 128   ;;  %s461_s21 = smov 8  }
  0x14   : > { %399 = dma.hbm_to_vmem [thread:$0]  (!%p397_p5), %s527_s1, 512, %s148_s17, [#allocation3], %s460_s20, %s460_s20, %s461_s21  }
  0x15   : > { %178 = sbr.rel (%p496_p2) target bundleno = 236 (0xec), region = 36 }
  0x1a   : > { %452 = dma.done.wait (%p500_p3), [#allocation3], 512  }
  0x1b   : > { %454 = vsyncadd (%p500_p3), [#allocation3], 4294966784  ;;  %s378_s24 = sshll.u32 %s371_s16, 1  ;;  %v462_v0 = vmov 0   ;;  %v414_v1 = vld [vmem:[#allocation2 + $0x14] ss:$8 sps:$4 sm:$0xff]  }
  0x1c   : > { %286 = vmatprep.mubr.bf16.mxu0 %v462_v0  ;;  %p206_p0 = scmp.lt.s32.totalorder %s378_s24, 3  ;;  %v416_v2 = vld [vmem:[#allocation2 + $0x10] ss:$8 sps:$4 sm:$0xff]   ;;  %266 = vmatprep.subr.bf16.mxu0 %v414_v1  ;;  %v417_v3 = vld [vmem:[#allocation2 + $0x4] ss:$8 sps:$4 sm:$0xff]   ;;  %vm250_vm0 = vcmask 261120  }
  0x1d   : > { %267 = vmatpush1.bf16.msra.mxu0 %v416_v2  ;;  %v419_v4 = vld [vmem:[#allocation2] ss:$8 sps:$4 sm:$0xff]  }
  0x1e   : > { %s534_s24 = smov (!%p206_p0, %s378_s24), 3  ;;  %268 = vmatprep.subr.bf16.mxu0 %v417_v3 }
  0x1f   : > { %s379_s25 = sshll.u32 %s534_s24, 2  ;;  %s391_s29 = sshll.u32 %s534_s24, 4 }
  0x20   : > { %s209_s28 = scalar_lea.vmem %s526_s0, %s379_s25  ;;  %s216_s6 = scalar_lea.vmem %s530_s4, %s391_s29 }
  0x21   : > { %v420_v5 = vld [vmem:[%s209_s28] sm:$0xff]   ;;  %269 = vmatpush1.bf16.msra.mxu0 %v419_v4 }
  0x24   : > { %388 = vmatmul.mubr.msk.bf16.vlgmr.msra.gmra.mxu0 %vm250_vm0, %v420_v5 }
  0xe4   : > { %v288_v6 = vpop.f32.mrf.mxu0 }
  0xe5   : > { %297 = vst [vmem:[%s216_s6] sm:$0xff] %v288_v6 }
  0xe6   : > { %v290_v7 = vpop.f32.mrf.mxu0 }
  0xe7   : > { %298 = vst [vmem:[%s216_s6 + $0x8] sm:$0xff] %v290_v7 }
  0xe8   : > { %v292_v8 = vpop.f32.mrf.mxu0 }
  0xe9   : > { %299 = vst [vmem:[%s216_s6 + $0x10] sm:$0xff] %v292_v8 }
  0xea   : > { %v294_v9 = vpop.f32.mrf.mxu0 }
  0xeb   : > { %300 = vst [vmem:[%s216_s6 + $0x18] sm:$0xff] %v294_v9 }
  0xec PF: > { %s15_s15 = sadd.s32 1, %s457_s15  }
  0xed   : > { %p12_p1 = scmp.ge.s32.totalorder %s15_s15, 4  }
  0xef   :  { %14 = sbr.rel (!%p12_p1) target bundleno = 1 (0x1), region = 71 }
  0xf4   :  { %325 = vsyncpa [#allocation3], 1 }
  0xf5   :  { %327 = vsyncpa [#allocation3 + $0x1], 1 }

// kernel: generator_forward.11
= control target key start
LH: loop header
LB: loop body
LE: loop exit
PB: predicated region body
PF: predicated region fallthrough
CT: control target
= control target key end

     0   :  { %s305_s9 = smov 0   ;;  %s353_s0 = inlined_call_operand.vmem [shape: bf16[128,16], index: 0, kind: input, shape index: {}]   ;;  %s354_s1 = inlined_call_operand.vmem [shape: f32[1,16], index: 1, kind: output, shape index: {0}]   ;;  %s355_s2 = inlined_call_operand.vmem [shape: f32[1,16], index: 2, kind: output, shape index: {1}]  }
   0x1 LB: > { %s244_s10 = sadd.s32 4294967295, %s287_s9   ;;  %p247_p0 = scmp.ge.s32.totalorder %s287_s9, 1  ;;  %s287_s9 = sphi %s305_s9, %s13_s9  }
   0x2   : > { %p106_p1 = scmp.lt.s32.totalorder %s287_s9, 3 }
   0x4   : > { %p107_p2 = pnand %p247_p0, %p106_p1 }
   0x5   : > { %s248_s11 = sshll.u32 (!%p107_p2), %s244_s10, 3  ;;  %p250_p4 = scmp.ne.s32.totalorder (!%p107_p2), %s244_s10, 0 }
   0x6   : > { %110 = sbr.rel (%p107_p2) target bundleno = 54 (0x36), region = 24  ;;  %p124_p3 = scmp.lt.s32.totalorder (!%p107_p2), %s248_s11, 15 }
   0xb   : > { %s357_s11 = smov (!%p124_p3, %s248_s11), 15  ;;  %132 = sbr.rel (%p250_p4) target bundleno = 18 (0x12), region = 28 }
   0xc   : > { %s249_s12 = sshll.u32 %s357_s11, 2 }
   0xd   : > { %s127_s15 = scalar_lea.vmem %s353_s0, %s249_s12 }
  0x10   : > { %vm133_vm0 = vcmask 122880   ;;  %v289_v0 = vmov 0.0  }
  0x11   : > { %134 = vst.msk [vmem:[%s354_s1] sm:$0x1] %vm133_vm0, %v289_v0  ;;  %135 = vst.msk [vmem:[%s355_s2] sm:$0x1] %vm133_vm0, %v289_v0 }
  0x12 PF: > { %v254_v1 = vld [vmem:[%s127_s15] sm:$0xff]   ;;  %v269_v2 = vld [vmem:[%s127_s15 + $0x8] sm:$0xff]   ;;  %v270_v3 = vld [vmem:[%s127_s15 + $0x10] sm:$0xff]   ;;  %vm153_vm1 = vcmask 130048   ;;  %vm176_vm2 = vcmask 122880  }
  0x13   : > { %v255_v4 = vunpack.c.l.bf16 %v254_v1  ;;  %v256_v5 = vunpack.c.h.bf16 %v254_v1  ;;  %v259_v6 = vunpack.c.l.bf16 %v269_v2  ;;  %v260_v7 = vunpack.c.h.bf16 %v269_v2  ;;  %v271_v9 = vld [vmem:[%s127_s15 + $0x18] sm:$0xff]  }
  0x14   : > { %v263_v8 = vunpack.c.l.bf16 %v270_v3  ;;  %v264_v13 = vunpack.c.h.bf16 %v270_v3  ;;  %v267_v19 = vunpack.c.l.bf16 %v271_v9  ;;  %v268_v29 = vunpack.c.h.bf16 %v271_v9 }
  0x15   : > { %v154_v10 = vsel %vm153_vm1, %v255_v4, 0.0  ;;  %v155_v11 = vsel %vm153_vm1, %v256_v5, 0.0  ;;  %v157_v12 = vsel %vm153_vm1, %v259_v6, 0.0  ;;  %v159_v15 = vsel %vm153_vm1, %v260_v7, 0.0 }
  0x16   : > { %v156_v14 = vadd.f32 %v155_v11, %v154_v10  ;;  %v179_v16 = vmul.f32 %v255_v4, %v255_v4  ;;  %v180_v17 = vmul.f32 %v256_v5, %v256_v5  ;;  %v181_v18 = vmul.f32 %v259_v6, %v259_v6 }
  0x17   : > { %v182_v21 = vmul.f32 %v260_v7, %v260_v7  ;;  %v161_v22 = vsel %vm153_vm1, %v263_v8, 0.0  ;;  %v183_v23 = vmul.f32 %v263_v8, %v263_v8  ;;  %v163_v30 = vsel %vm153_vm1, %v264_v13, 0.0 }
  0x18   : > { %v158_v20 = vadd.f32 %v157_v12, %v156_v14  ;;  %v187_v24 = vsel %vm153_vm1, %v179_v16, 0.0  ;;  %v188_v25 = vsel %vm153_vm1, %v180_v17, 0.0  ;;  %v190_v28 = vsel %vm153_vm1, %v181_v18, 0.0  ;;  %v152_v59 = vld [vmem:[%s354_s1] sm:$0x1] }
  0x19   : > { %v189_v27 = vadd.f32 %v188_v25, %v187_v24  ;;  %v184_v31 = vmul.f32 %v264_v13, %v264_v13  ;;  %v192_v32 = vsel %vm153_vm1, %v182_v21, 0.0  ;;  %v165_v35 = vsel %vm153_vm1, %v267_v19, 0.0  ;;  %v178_v0 = vld [vmem:[%s355_s2] sm:$0x1] }
  0x1a   : > { %v160_v26 = vadd.f32 %v159_v15, %v158_v20  ;;  %v185_v36 = vmul.f32 %v267_v19, %v267_v19  ;;  %v194_v37 = vsel %vm153_vm1, %v183_v23, 0.0  ;;  %v167_v40 = vsel %vm153_vm1, %v268_v29, 0.0 }
  0x1b   : > { %v191_v34 = vadd.f32 %v190_v28, %v189_v27  ;;  %v186_v41 = vmul.f32 %v268_v29, %v268_v29  ;;  %v196_v42 = vsel %vm153_vm1, %v184_v31, 0.0 }
  0x1c   : > { %v162_v33 = vadd.f32 %v161_v22, %v160_v26  ;;  %v198_v45 = vsel %vm153_vm1, %v185_v36, 0.0 }
  0x1d   : > { %v193_v39 = vadd.f32 %v192_v32, %v191_v34  ;;  %v200_v48 = vsel %vm153_vm1, %v186_v41, 0.0 }
  0x1e   : > { %v164_v38 = vadd.f32 %v163_v30, %v162_v33 }
  0x1f   : > { %v195_v44 = vadd.f32 %v194_v37, %v193_v39 }
  0x20   : > { %v166_v43 = vadd.f32 %v165_v35, %v164_v38 }
  0x21   : > { %v197_v47 = vadd.f32 %v196_v42, %v195_v44 }
  0x22   : > { %v168_v46 = vadd.f32 %v167_v40, %v166_v43 }
  0x23   : > { %v199_v50 = vadd.f32 %v198_v45, %v197_v47 }
  0x24   : > { %v169_v49 = vrot.slane %v168_v46, 4 }
  0x25   : > { %v201_v52 = vadd.f32 %v200_v48, %v199_v50 }
  0x26   : > { %v170_v51 = vadd.f32 %v169_v49, %v168_v46 }
  0x27   : > { %v202_v54 = vrot.slane %v201_v52, 4 }
  0x28   : > { %v171_v53 = vrot.slane %v170_v51, 2 }
  0x29   : > { %v203_v56 = vadd.f32 %v202_v54, %v201_v52 }
  0x2a   : > { %v172_v55 = vadd.f32 %v171_v53, %v170_v51 }
  0x2b   : > { %v204_v58 = vrot.slane %v203_v56, 2 }
  0x2c   : > { %v173_v57 = vrot.slane %v172_v55, 1 }
  0x2d   : > { %v205_v61 = vadd.f32 %v204_v58, %v203_v56 }
  0x2e   : > { %v174_v60 = vadd.f32 %v173_v57, %v172_v55 }
  0x2f   : > { %v206_v63 = vrot.slane %v205_v61, 1 }
  0x30   : > { %v175_v62 = vadd.f32 %v174_v60, %v152_v59 }
  0x31   : > { %v207_v1 = vadd.f32 %v206_v63, %v205_v61 }
  0x32   : > { %177 = vst.msk [vmem:[%s354_s1] sm:$0x1] %vm176_vm2, %v175_v62 }
  0x33   : > { %v208_v2 = vadd.f32 %v207_v1, %v178_v0 }
  0x35   : > { %209 = vst.msk [vmem:[%s355_s2] sm:$0x1] %vm176_vm2, %v208_v2 }
  0x36 PF: > { %s13_s9 = sadd.s32 1, %s287_s9  }
  0x37   : > { %p10_p5 = scmp.ge.s32.totalorder %s13_s9, 4  }
  0x39   :  { %12 = sbr.rel (!%p10_p5) target bundleno = 1 (0x1), region = 62 }

// kernel: generator_forward.12
= control target key start
LH: loop header
LB: loop body
LE: loop exit
PB: predicated region body
PF: predicated region fallthrough
CT: control target
= control target key end

     0   :  { %s506_s15 = smov 0   ;;  %s540_s0 = inlined_call_operand.vmem [shape: bf16[128,16], index: 0, kind: input, shape index: {}]   ;;  %s541_s1 = inlined_call_operand.vmem [shape: bf16[16,128], index: 1, kind: input, shape index: {}]   ;;  %s542_s2 = inlined_call_operand.vmem [shape: f32[1,16], index: 2, kind: input, shape index: {}]   ;;  %s543_s3 = inlined_call_operand.vmem [shape: f32[1,16], index: 3, kind: input, shape index: {}]   ;;  %s544_s4 = inlined_call_operand.vmem [shape: f32[128,128], index: 4, kind: output, shape index: {}]  }
   0x1 LB: > { %s410_s16 = sadd.s32 4294967295, %s479_s15   ;;  %p414_p0 = scmp.ge.s32.totalorder %s479_s15, 1  ;;  %s479_s15 = sphi %s506_s15, %s14_s15  }
   0x2   : > { %p163_p1 = scmp.lt.s32.totalorder %s479_s15, 3 }
   0x4   : > { %p164_p2 = pnand %p414_p0, %p163_p1 }
   0x5   : > { %s415_s19 = sshll.u32 (!%p164_p2), %s410_s16, 3 }
   0x6   : > { %167 = sbr.rel (%p164_p2) target bundleno = 226 (0xe2), region = 36  ;;  %p190_p3 = scmp.lt.s32.totalorder (!%p164_p2), %s415_s19, 15 }
   0xb   : > { %v472_v0 = vld [vmem:[%s541_s1] sm:$0xff]   ;;  %s546_s19 = smov (!%p190_p3, %s415_s19), 15  ;;  %vm268_vm0 = vcmask 130048  }
   0xc   : > { %452 = vmatprep.subr.bf16.mxu0 %v472_v0  ;;  %462 = vmatprep.subr.bf16.mxu1 %v472_v0  ;;  %s416_s20 = sshll.u32 %s546_s19, 2  ;;  %v419_v1 = vld [vmem:[%s542_s2] ss:$0 sm:$0xff]  ;;  %s418_s28 = sshll.u32 %s546_s19, 3 }
   0xd   : > { %453 = vmatpush3.bf16.msra.mxu0 %v472_v0  ;;  %463 = vmatpush3.bf16.msra.mxu1 %v472_v0  ;;  %s193_s23 = scalar_lea.vmem %s540_s0, %s416_s20  ;;  %v420_v10 = vld [vmem:[%s543_s3] ss:$0 sm:$0xff]  ;;  %s199_s5 = scalar_lea.vmem %s544_s4, %s418_s28 }
   0xe   : > { %v429_v2 = vld [vmem:[%s193_s23] sm:$0xff]   ;;  %v445_v3 = vld [vmem:[%s193_s23 + $0x10] sm:$0xff]   ;;  %v444_v4 = vld [vmem:[%s193_s23 + $0x8] sm:$0xff]  }
   0xf   : > { %v430_v5 = vunpack.c.l.bf16 %v429_v2  ;;  %v431_v6 = vunpack.c.h.bf16 %v429_v2  ;;  %v438_v7 = vunpack.c.l.bf16 %v445_v3  ;;  %v439_v8 = vunpack.c.h.bf16 %v445_v3  ;;  %v446_v9 = vld [vmem:[%s193_s23 + $0x18] sm:$0xff]  }
  0x10   : > { %v434_v11 = vunpack.c.l.bf16 %v444_v4  ;;  %v435_v12 = vunpack.c.h.bf16 %v444_v4  ;;  %v442_v13 = vunpack.c.l.bf16 %v446_v9  ;;  %v443_v14 = vunpack.c.h.bf16 %v446_v9 }
  0x11   : > { %v225_v15 = vmul.f32 %v430_v5, %v419_v1  ;;  %v226_v16 = vmul.f32 %v431_v6, %v419_v1  ;;  %v229_v17 = vmul.f32 %v438_v7, %v419_v1  ;;  %v230_v18 = vmul.f32 %v439_v8, %v419_v1 }
  0x12   : > { %v227_v19 = vmul.f32 %v434_v11, %v419_v1  ;;  %v228_v20 = vmul.f32 %v435_v12, %v419_v1  ;;  %v231_v21 = vmul.f32 %v442_v13, %v419_v1  ;;  %v232_v22 = vmul.f32 %v443_v14, %v419_v1 }
  0x13   : > { %v240_v23 = vadd.f32 %v420_v10, %v225_v15  ;;  %v241_v24 = vadd.f32 %v420_v10, %v226_v16  ;;  %v244_v25 = vadd.f32 %v420_v10, %v229_v17  ;;  %v245_v26 = vadd.f32 %v420_v10, %v230_v18 }
  0x14   : > { %v242_v27 = vadd.f32 %v420_v10, %v227_v19  ;;  %v243_v28 = vadd.f32 %v420_v10, %v228_v20  ;;  %v246_v29 = vadd.f32 %v420_v10, %v231_v21  ;;  %v247_v30 = vadd.f32 %v420_v10, %v232_v22 }
  0x15   : > { %v248_v31 = vmax.f32 %v240_v23, 0.0  ;;  %v249_v32 = vmax.f32 %v241_v24, 0.0  ;;  %v252_v33 = vmax.f32 %v244_v25, 0.0  ;;  %v253_v34 = vmax.f32 %v245_v26, 0.0 }
  0x16   : > { %v250_v35 = vmax.f32 %v242_v27, 0.0  ;;  %v251_v36 = vmax.f32 %v243_v28, 0.0  ;;  %v254_v37 = vmax.f32 %v246_v29, 0.0  ;;  %v255_v38 = vmax.f32 %v247_v30, 0.0 }
  0x17   : > { %v256_v39 = vpack.c.bf16 %v249_v32, %v248_v31  ;;  %v258_v40 = vpack.c.bf16 %v253_v34, %v252_v33 }
  0x18   : > { %v257_v41 = vpack.c.bf16 %v251_v36, %v250_v35  ;;  %v259_v42 = vpack.c.bf16 %v255_v38, %v254_v37 }
  0x19   : > { %454 = vmatprep.mubr.msk.bf16.mxu0 %vm268_vm0, %v256_v39  ;;  %458 = vmatprep.mubr.msk.bf16.mxu1 %vm268_vm0, %v258_v40 }
  0x1a   : > { %455 = vmatmul.mubr.msk.bf16.vlgmr.msra.gmra.mxu0 %vm268_vm0, %v257_v41  ;;  %459 = vmatmul.mubr.msk.bf16.vlgmr.msra.gmra.mxu1 %vm268_vm0, %v259_v42 }
  0xda   : > { %v456_v43 = vpop.f32.mrf.mxu0  ;;  %v460_v44 = vpop.f32.mrf.mxu1 }
  0xdb   : > { %348 = vst [vmem:[%s199_s5 + $0x10] sm:$0xff] %v456_v43  ;;  %352 = vst [vmem:[%s199_s5 + $0x30] sm:$0xff] %v460_v44 }
  0xdc   : > { %v315_v45 = vpop.f32.mrf.mxu0  ;;  %v331_v46 = vpop.f32.mrf.mxu1 }
  0xdd   : > { %346 = vst [vmem:[%s199_s5] sm:$0xff] %v315_v45  ;;  %350 = vst [vmem:[%s199_s5 + $0x20] sm:$0xff] %v331_v46 }
  0xde   : > { %v457_v47 = vpop.f32.mrf.mxu0  ;;  %v461_v48 = vpop.f32.mrf.mxu1 }
  0xdf   : > { %349 = vst [vmem:[%s199_s5 + $0x18] sm:$0xff] %v457_v47  ;;  %353 = vst [vmem:[%s199_s5 + $0x38] sm:$0xff] %v461_v48 }
  0xe0   : > { %v318_v49 = vpop.f32.mrf.mxu0  ;;  %v334_v50 = vpop.f32.mrf.mxu1 }
  0xe1   : > { %347 = vst [vmem:[%s199_s5 + $0x8] sm:$0xff] %v318_v49  ;;  %351 = vst [vmem:[%s199_s5 + $0x28] sm:$0xff] %v334_v50 }
  0xe2 PF: > { %s14_s15 = sadd.s32 1, %s479_s15  }
  0xe3   : > { %p11_p4 = scmp.ge.s32.totalorder %s14_s15, 4  }
  0xe5   :  { %13 = sbr.rel (!%p11_p4) target bundleno = 1 (0x1), region = 66 }

// kernel: generator_forward.13
= control target key start
LH: loop header
LB: loop body
LE: loop exit
PB: predicated region body
PF: predicated region fallthrough
CT: control target
= control target key end

     0   :  { %s533_s9 = smov 0   ;;  %s649_s0 = inlined_call_operand.vmem [shape: bf16[512,8], index: 0, kind: input, shape index: {}]   ;;  %s650_s1 = inlined_call_operand.vmem [shape: f32[1,8], index: 1, kind: output, shape index: {0}]   ;;  %s651_s2 = inlined_call_operand.vmem [shape: f32[1,8], index: 2, kind: output, shape index: {1}]  }
   0x1 LB: > { %s412_s10 = sadd.s32 4294967295, %s515_s9   ;;  %p415_p0 = scmp.ge.s32.totalorder %s515_s9, 1  ;;  %s515_s9 = sphi %s533_s9, %s13_s9  }
   0x2   : > { %p106_p1 = scmp.lt.s32.totalorder %s515_s9, 3 }
   0x4   : > { %p107_p2 = pnand %p415_p0, %p106_p1 }
   0x5   : > { %s416_s11 = sshll.u32 (!%p107_p2), %s412_s10, 5  ;;  %p418_p4 = scmp.ne.s32.totalorder (!%p107_p2), %s412_s10, 0 }
   0x6   : > { %110 = sbr.rel (%p107_p2) target bundleno = 105 (0x69), region = 24  ;;  %p124_p3 = scmp.lt.s32.totalorder (!%p107_p2), %s416_s11, 63 }
   0xb   : > { %s653_s11 = smov (!%p124_p3, %s416_s11), 63  ;;  %132 = sbr.rel (%p418_p4) target bundleno = 18 (0x12), region = 28 }
   0xc   : > { %s417_s12 = sshll.u32 %s653_s11, 2 }
   0xd   : > { %s544_s15 = scalar_lea.vmem %s649_s0, %s417_s12 }
  0x10   : > { %vm133_vm0 = vcmask 57344   ;;  %v517_v0 = vmov 0.0  }
  0x11   : > { %134 = vst.msk [vmem:[%s650_s1] sm:$0x1] %vm133_vm0, %v517_v0  ;;  %135 = vst.msk [vmem:[%s651_s2] sm:$0x1] %vm133_vm0, %v517_v0 }
  0x12 PF: > { %v422_v1 = vld [vmem:[%s544_s15] sm:$0xff]   ;;  %v485_v2 = vld [vmem:[%s544_s15 + $0x8] sm:$0xff]   ;;  %vm201_vm1 = vcmask 64512   ;;  %v486_v6 = vld [vmem:[%s544_s15 + $0x10] sm:$0xff]   ;;  %vm272_vm2 = vcmask 57344  }
  0x13   : > { %v423_v3 = vunpack.c.l.bf16 %v422_v1  ;;  %v424_v4 = vunpack.c.h.bf16 %v422_v1  ;;  %v427_v5 = vunpack.c.l.bf16 %v485_v2  ;;  %v428_v7 = vunpack.c.h.bf16 %v485_v2  ;;  %v487_v14 = vld [vmem:[%s544_s15 + $0x18] sm:$0xff]   ;;  %v488_v21 = vld [vmem:[%s544_s15 + $0x20] sm:$0xff]   ;;  %v489_v27 = vld [vmem:[%s544_s15 + $0x28] sm:$0xff]  }
  0x14   : > { %v431_v12 = vunpack.c.l.bf16 %v486_v6  ;;  %v432_v16 = vunpack.c.h.bf16 %v486_v6  ;;  %v435_v19 = vunpack.c.l.bf16 %v487_v14  ;;  %v436_v23 = vunpack.c.h.bf16 %v487_v14  ;;  %v490_v34 = vld [vmem:[%s544_s15 + $0x30] sm:$0xff]   ;;  %v491_v50 = vld [vmem:[%s544_s15 + $0x38] sm:$0xff]   ;;  %v492_v63 = vld [vmem:[%s544_s15 + $0x40] sm:$0xff]  }
  0x15   : > { %v202_v8 = vsel %vm201_vm1, %v423_v3, 0.0  ;;  %v203_v9 = vsel %vm201_vm1, %v424_v4, 0.0  ;;  %v205_v10 = vsel %vm201_vm1, %v427_v5, 0.0  ;;  %v207_v13 = vsel %vm201_vm1, %v428_v7, 0.0 }
  0x16   : > { %v204_v11 = vadd.f32 %v203_v9, %v202_v8  ;;  %v209_v17 = vsel %vm201_vm1, %v431_v12, 0.0  ;;  %v211_v20 = vsel %vm201_vm1, %v432_v16, 0.0  ;;  %v213_v24 = vsel %vm201_vm1, %v435_v19, 0.0 }
  0x17   : > { %v439_v26 = vunpack.c.l.bf16 %v488_v21  ;;  %v215_v28 = vsel %vm201_vm1, %v436_v23, 0.0  ;;  %v440_v30 = vunpack.c.h.bf16 %v488_v21  ;;  %v443_v32 = vunpack.c.l.bf16 %v489_v27 }
  0x18   : > { %v206_v15 = vadd.f32 %v205_v10, %v204_v11  ;;  %v275_v36 = vmul.f32 %v423_v3, %v423_v3  ;;  %v276_v37 = vmul.f32 %v424_v4, %v424_v4  ;;  %v277_v38 = vmul.f32 %v427_v5, %v427_v5 }
  0x19   : > { %v217_v31 = vsel %vm201_vm1, %v439_v26, 0.0  ;;  %v219_v35 = vsel %vm201_vm1, %v440_v30, 0.0  ;;  %v444_v39 = vunpack.c.h.bf16 %v489_v27  ;;  %v221_v41 = vsel %vm201_vm1, %v443_v32, 0.0 }
  0x1a   : > { %v208_v18 = vadd.f32 %v207_v13, %v206_v15  ;;  %v278_v42 = vmul.f32 %v428_v7, %v428_v7  ;;  %v447_v43 = vunpack.c.l.bf16 %v490_v34  ;;  %v279_v46 = vmul.f32 %v431_v12, %v431_v12  ;;  %v493_v12 = vld [vmem:[%s544_s15 + $0x48] sm:$0xff]  }
  0x1b   : > { %v223_v45 = vsel %vm201_vm1, %v444_v39, 0.0  ;;  %v307_v47 = vsel %vm201_vm1, %v275_v36, 0.0  ;;  %v308_v48 = vsel %vm201_vm1, %v276_v37, 0.0  ;;  %v310_v49 = vsel %vm201_vm1, %v277_v38, 0.0  ;;  %v495_v38 = vld [vmem:[%s544_s15 + $0x58] sm:$0xff]  }
  0x1c   : > { %v210_v22 = vadd.f32 %v209_v17, %v208_v18  ;;  %v309_v52 = vadd.f32 %v308_v48, %v307_v47  ;;  %v448_v53 = vunpack.c.h.bf16 %v490_v34  ;;  %v225_v54 = vsel %vm201_vm1, %v447_v43, 0.0 }
  0x1d   : > { %v280_v55 = vmul.f32 %v432_v16, %v432_v16  ;;  %v312_v56 = vsel %vm201_vm1, %v278_v42, 0.0  ;;  %v451_v59 = vunpack.c.l.bf16 %v491_v50  ;;  %v281_v61 = vmul.f32 %v435_v19, %v435_v19 }
  0x1e   : > { %v212_v25 = vadd.f32 %v211_v20, %v210_v22  ;;  %v311_v58 = vadd.f32 %v310_v49, %v309_v52  ;;  %v227_v60 = vsel %vm201_vm1, %v448_v53, 0.0  ;;  %v314_v62 = vsel %vm201_vm1, %v279_v46, 0.0 }
  0x1f   : > { %v452_v2 = vunpack.c.h.bf16 %v491_v50  ;;  %v229_v3 = vsel %vm201_vm1, %v451_v59, 0.0  ;;  %v282_v4 = vmul.f32 %v436_v23, %v436_v23  ;;  %v316_v5 = vsel %vm201_vm1, %v280_v55, 0.0 }
  0x20   : > { %v214_v29 = vadd.f32 %v213_v24, %v212_v25  ;;  %v313_v1 = vadd.f32 %v312_v56, %v311_v58  ;;  %v455_v8 = vunpack.c.l.bf16 %v492_v63  ;;  %v283_v10 = vmul.f32 %v439_v26, %v439_v26  ;;  %v494_v25 = vld [vmem:[%s544_s15 + $0x50] sm:$0xff]  }
  0x21   : > { %v231_v9 = vsel %vm201_vm1, %v452_v2, 0.0  ;;  %v318_v11 = vsel %vm201_vm1, %v281_v61, 0.0  ;;  %v456_v15 = vunpack.c.h.bf16 %v492_v63  ;;  %v284_v17 = vmul.f32 %v440_v30, %v440_v30 }
  0x22   : > { %v216_v33 = vadd.f32 %v215_v28, %v214_v29  ;;  %v315_v7 = vadd.f32 %v314_v62, %v313_v1  ;;  %v233_v16 = vsel %vm201_vm1, %v455_v8, 0.0  ;;  %v320_v18 = vsel %vm201_vm1, %v282_v4, 0.0 }
  0x23   : > { %v459_v21 = vunpack.c.l.bf16 %v493_v12  ;;  %v235_v22 = vsel %vm201_vm1, %v456_v15, 0.0  ;;  %v285_v23 = vmul.f32 %v443_v32, %v443_v32  ;;  %v322_v24 = vsel %vm201_vm1, %v283_v10, 0.0 }
  0x24   : > { %v218_v40 = vadd.f32 %v217_v31, %v216_v33  ;;  %v317_v14 = vadd.f32 %v316_v5, %v315_v7  ;;  %v460_v28 = vunpack.c.h.bf16 %v493_v12  ;;  %v286_v31 = vmul.f32 %v444_v39, %v444_v39 }
  0x25   : > { %v237_v29 = vsel %vm201_vm1, %v459_v21, 0.0  ;;  %v324_v30 = vsel %vm201_vm1, %v284_v17, 0.0  ;;  %v287_v37 = vmul.f32 %v447_v43, %v447_v43  ;;  %v326_v32 = vsel %vm201_vm1, %v285_v23, 0.0 }
  0x26   : > { %v220_v44 = vadd.f32 %v219_v35, %v218_v40  ;;  %v319_v20 = vadd.f32 %v318_v11, %v317_v14  ;;  %v463_v35 = vunpack.c.l.bf16 %v494_v25  ;;  %v239_v36 = vsel %vm201_vm1, %v460_v28, 0.0 }
  0x27   : > { %v464_v42 = vunpack.c.h.bf16 %v494_v25  ;;  %v328_v39 = vsel %vm201_vm1, %v286_v31, 0.0  ;;  %v467_v48 = vunpack.c.l.bf16 %v495_v38  ;;  %v289_v50 = vmul.f32 %v451_v59, %v451_v59 }
  0x28   : > { %v222_v51 = vadd.f32 %v221_v41, %v220_v44  ;;  %v321_v27 = vadd.f32 %v320_v18, %v319_v20  ;;  %v241_v44 = vsel %vm201_vm1, %v463_v35, 0.0  ;;  %v330_v43 = vsel %vm201_vm1, %v287_v37, 0.0 }
  0x29   : > { %v243_v49 = vsel %vm201_vm1, %v464_v42, 0.0  ;;  %v468_v55 = vunpack.c.h.bf16 %v495_v38  ;;  %v245_v56 = vsel %vm201_vm1, %v467_v48, 0.0  ;;  %v291_v63 = vmul.f32 %v455_v8, %v455_v8 }
  0x2a   : > { %v224_v57 = vadd.f32 %v223_v45, %v222_v51  ;;  %v323_v34 = vadd.f32 %v322_v24, %v321_v27  ;;  %v288_v45 = vmul.f32 %v448_v53, %v448_v53  ;;  %v496_v51 = vld [vmem:[%s544_s15 + $0x60] sm:$0xff]   ;;  %v334_v59 = vsel %vm201_vm1, %v289_v50, 0.0 }
  0x2b   : > { %v471_v61 = vunpack.c.l.bf16 %v496_v51  ;;  %v247_v62 = vsel %vm201_vm1, %v468_v55, 0.0  ;;  %v472_v4 = vunpack.c.h.bf16 %v496_v51  ;;  %v293_v12 = vmul.f32 %v459_v21, %v459_v21  ;;  %v499_v21 = vld [vmem:[%s544_s15 + $0x78] sm:$0xff]  }
  0x2c   : > { %v226_v0 = vadd.f32 %v225_v54, %v224_v57  ;;  %v325_v41 = vadd.f32 %v324_v30, %v323_v34  ;;  %v290_v57 = vmul.f32 %v452_v2, %v452_v2  ;;  %v332_v53 = vsel %vm201_vm1, %v288_v45, 0.0 }
  0x2d   : > { %v249_v5 = vsel %vm201_vm1, %v471_v61, 0.0  ;;  %v251_v11 = vsel %vm201_vm1, %v472_v4, 0.0  ;;  %v338_v8 = vsel %vm201_vm1, %v291_v63, 0.0  ;;  %v295_v25 = vmul.f32 %v463_v35, %v463_v35 }
  0x2e   : > { %v228_v6 = vadd.f32 %v227_v60, %v226_v0  ;;  %v327_v47 = vadd.f32 %v326_v32, %v325_v41  ;;  %v497_v0 = vld [vmem:[%s544_s15 + $0x68] sm:$0xff]   ;;  %v336_v2 = vsel %vm201_vm1, %v290_v57, 0.0  ;;  %v483_v37 = vunpack.c.l.bf16 %v499_v21 }
  0x2f   : > { %v475_v10 = vunpack.c.l.bf16 %v497_v0  ;;  %v476_v17 = vunpack.c.h.bf16 %v497_v0  ;;  %v297_v38 = vmul.f32 %v467_v48, %v467_v48  ;;  %v299_v50 = vmul.f32 %v471_v61, %v471_v61 }
  0x30   : > { %v230_v13 = vadd.f32 %v229_v3, %v228_v6  ;;  %v329_v54 = vadd.f32 %v328_v39, %v327_v47  ;;  %v292_v6 = vmul.f32 %v456_v15, %v456_v15  ;;  %v261_v45 = vsel %vm201_vm1, %v483_v37, 0.0 }
  0x31   : > { %v253_v18 = vsel %vm201_vm1, %v475_v10, 0.0  ;;  %v255_v24 = vsel %vm201_vm1, %v476_v17, 0.0  ;;  %v298_v39 = vmul.f32 %v468_v55, %v468_v55  ;;  %v300_v48 = vmul.f32 %v472_v4, %v472_v4 }
  0x32   : > { %v232_v19 = vadd.f32 %v231_v9, %v230_v13  ;;  %v331_v60 = vadd.f32 %v330_v43, %v329_v54  ;;  %v498_v13 = vld [vmem:[%s544_s15 + $0x70] sm:$0xff]   ;;  %v340_v15 = vsel %vm201_vm1, %v292_v6, 0.0  ;;  %v350_v43 = vsel %vm201_vm1, %v297_v38, 0.0 }
  0x33   : > { %v479_v23 = vunpack.c.l.bf16 %v498_v13  ;;  %v480_v31 = vunpack.c.h.bf16 %v498_v13  ;;  %v352_v54 = vsel %vm201_vm1, %v298_v39, 0.0  ;;  %v356_v63 = vsel %vm201_vm1, %v300_v48, 0.0 }
  0x34   : > { %v234_v26 = vadd.f32 %v233_v16, %v232_v19  ;;  %v333_v3 = vadd.f32 %v332_v53, %v331_v60  ;;  %v294_v19 = vmul.f32 %v460_v28, %v460_v28  ;;  %v301_v53 = vmul.f32 %v475_v10, %v475_v10 }
  0x35   : > { %v257_v30 = vsel %vm201_vm1, %v479_v23, 0.0  ;;  %v259_v32 = vsel %vm201_vm1, %v480_v31, 0.0  ;;  %v303_v61 = vmul.f32 %v479_v23, %v479_v23  ;;  %v304_v4 = vmul.f32 %v480_v31, %v480_v31 }
  0x36   : > { %v236_v33 = vadd.f32 %v235_v22, %v234_v26  ;;  %v335_v9 = vadd.f32 %v334_v59, %v333_v3  ;;  %v342_v26 = vsel %vm201_vm1, %v293_v12, 0.0  ;;  %v344_v34 = vsel %vm201_vm1, %v294_v19, 0.0 }
  0x37   : > { %v362_v10 = vsel %vm201_vm1, %v303_v61, 0.0 }
  0x38   : > { %v238_v40 = vadd.f32 %v237_v29, %v236_v33  ;;  %v337_v16 = vadd.f32 %v336_v2, %v335_v9  ;;  %v296_v33 = vmul.f32 %v464_v42, %v464_v42  ;;  %v305_v9 = vmul.f32 %v483_v37, %v483_v37 }
  0x3a   : > { %v240_v46 = vadd.f32 %v239_v36, %v238_v40  ;;  %v339_v22 = vadd.f32 %v338_v8, %v337_v16  ;;  %v346_v40 = vsel %vm201_vm1, %v295_v25, 0.0  ;;  %v200_v8 = vld [vmem:[%s650_s1] sm:$0x1] }
  0x3c   : > { %v242_v52 = vadd.f32 %v241_v44, %v240_v46  ;;  %v341_v29 = vadd.f32 %v340_v15, %v339_v22  ;;  %v484_v44 = vunpack.c.h.bf16 %v499_v21  ;;  %v348_v46 = vsel %vm201_vm1, %v296_v33, 0.0 }
  0x3e   : > { %v244_v58 = vadd.f32 %v243_v49, %v242_v52  ;;  %v343_v36 = vadd.f32 %v342_v26, %v341_v29  ;;  %v263_v49 = vsel %vm201_vm1, %v484_v44, 0.0  ;;  %v306_v13 = vmul.f32 %v484_v44, %v484_v44  ;;  %v274_v29 = vld [vmem:[%s651_s2] sm:$0x1] }
  0x40   : > { %v246_v1 = vadd.f32 %v245_v56, %v244_v58  ;;  %v345_v41 = vadd.f32 %v344_v34, %v343_v36  ;;  %v354_v58 = vsel %vm201_vm1, %v299_v50, 0.0 }
  0x42   : > { %v248_v7 = vadd.f32 %v247_v62, %v246_v1  ;;  %v347_v42 = vadd.f32 %v346_v40, %v345_v41  ;;  %v302_v62 = vmul.f32 %v476_v17, %v476_v17  ;;  %v358_v1 = vsel %vm201_vm1, %v301_v53, 0.0 }
  0x44   : > { %v250_v14 = vadd.f32 %v249_v5, %v248_v7  ;;  %v349_v52 = vadd.f32 %v348_v46, %v347_v42  ;;  %v360_v6 = vsel %vm201_vm1, %v302_v62, 0.0 }
  0x46   : > { %v252_v20 = vadd.f32 %v251_v11, %v250_v14  ;;  %v351_v57 = vadd.f32 %v350_v43, %v349_v52  ;;  %v364_v14 = vsel %vm201_vm1, %v304_v4, 0.0 }
  0x48   : > { %v254_v27 = vadd.f32 %v253_v18, %v252_v20  ;;  %v353_v60 = vadd.f32 %v352_v54, %v351_v57  ;;  %v366_v18 = vsel %vm201_vm1, %v305_v9, 0.0  ;;  %v368_v20 = vsel %vm201_vm1, %v306_v13, 0.0 }
  0x4a   : > { %v256_v28 = vadd.f32 %v255_v24, %v254_v27  ;;  %v355_v0 = vadd.f32 %v354_v58, %v353_v60 }
  0x4c   : > { %v258_v35 = vadd.f32 %v257_v30, %v256_v28  ;;  %v357_v5 = vadd.f32 %v356_v63, %v355_v0 }
  0x4e   : > { %v260_v47 = vadd.f32 %v259_v32, %v258_v35  ;;  %v359_v7 = vadd.f32 %v358_v1, %v357_v5 }
  0x50   : > { %v262_v51 = vadd.f32 %v261_v45, %v260_v47  ;;  %v361_v12 = vadd.f32 %v360_v6, %v359_v7 }
  0x52   : > { %v264_v56 = vadd.f32 %v263_v49, %v262_v51  ;;  %v363_v17 = vadd.f32 %v362_v10, %v361_v12 }
  0x54   : > { %v265_v55 = vrot.slane %v264_v56, 4  ;;  %v365_v15 = vadd.f32 %v364_v14, %v363_v17 }
  0x56   : > { %v266_v59 = vadd.f32 %v265_v55, %v264_v56  ;;  %v367_v22 = vadd.f32 %v366_v18, %v365_v15 }
  0x58   : > { %v267_v3 = vrot.slane %v266_v59, 2  ;;  %v369_v23 = vadd.f32 %v368_v20, %v367_v22 }
  0x5a   : > { %v268_v2 = vadd.f32 %v267_v3, %v266_v59  ;;  %v370_v24 = vrot.slane %v369_v23, 4 }
  0x5c   : > { %v269_v11 = vrot.slane %v268_v2, 1  ;;  %v371_v25 = vadd.f32 %v370_v24, %v369_v23 }
  0x5e   : > { %v270_v16 = vadd.f32 %v269_v11, %v268_v2  ;;  %v372_v26 = vrot.slane %v371_v25, 2 }
  0x60   : > { %v271_v19 = vadd.f32 %v270_v16, %v200_v8  ;;  %v373_v21 = vadd.f32 %v372_v26, %v371_v25 }
  0x62   : > { %273 = vst.msk [vmem:[%s650_s1] sm:$0x1] %vm272_vm2, %v271_v19  ;;  %v374_v27 = vrot.slane %v373_v21, 1 }
  0x64   : > { %v375_v31 = vadd.f32 %v374_v27, %v373_v21 }
  0x66   : > { %v376_v30 = vadd.f32 %v375_v31, %v274_v29 }
  0x68   : > { %377 = vst.msk [vmem:[%s651_s2] sm:$0x1] %vm272_vm2, %v376_v30 }
  0x69 PF: > { %s13_s9 = sadd.s32 1, %s515_s9  }
  0x6a   : > { %p10_p5 = scmp.ge.s32.totalorder %s13_s9, 4  }
  0x6c   :  { %12 = sbr.rel (!%p10_p5) target bundleno = 1 (0x1), region = 62 }

// kernel: generator_forward.14
= control target key start
LH: loop header
LB: loop body
LE: loop exit
PB: predicated region body
PF: predicated region fallthrough
CT: control target
= control target key end

     0   :  { %s900_s15 = smov 0   ;;  %s1098_s0 = inlined_call_operand.vmem [shape: bf16[512,8], index: 0, kind: input, shape index: {}]   ;;  %s1099_s1 = inlined_call_operand.vmem [shape: bf16[8,64], index: 1, kind: input, shape index: {}]   ;;  %s1100_s2 = inlined_call_operand.vmem [shape: f32[1,8], index: 2, kind: input, shape index: {}]   ;;  %s1101_s3 = inlined_call_operand.vmem [shape: f32[1,8], index: 3, kind: input, shape index: {}]   ;;  %s1102_s4 = inlined_call_operand.vmem [shape: f32[512,64], index: 4, kind: output, shape index: {}]  }
   0x1 LB: > { %s696_s16 = sadd.s32 4294967295, %s873_s15   ;;  %p700_p0 = scmp.ge.s32.totalorder %s873_s15, 1  ;;  %s873_s15 = sphi %s900_s15, %s14_s15  }
   0x2   : > { %p163_p1 = scmp.lt.s32.totalorder %s873_s15, 3 }
   0x4   : > { %p164_p2 = pnand %p700_p0, %p163_p1 }
   0x5   : > { %s701_s19 = sshll.u32 (!%p164_p2), %s696_s16, 5 }
   0x6   : > { %167 = sbr.rel (%p164_p2) target bundleno = 256 (0x100), region = 36  ;;  %p190_p3 = scmp.lt.s32.totalorder (!%p164_p2), %s701_s19, 63 }
   0xb   : > { %v392_v0 = vld [vmem:[%s1099_s1] sm:$0xf]  ;;  %vm442_vm0 = vcmask 1043456   ;;  %s1104_s19 = smov (!%p190_p3, %s701_s19), 63  ;;  %vm393_vm1 = vcmask 64512   ;;  %vm607_vm2 = vcmask 523264  }
   0xc   : > { %857 = vmatprep.subr.msk.bf16.mxu0 %vm442_vm0, %v392_v0  ;;  %858 = vmatprep.subr.msk.bf16.mxu1 %vm442_vm0, %v392_v0  ;;  %v444_v1 = vsel %vm442_vm0, %v392_v0, 0  ;;  %s702_s20 = sshll.u32 %s1104_s19, 2  ;;  %v922_v2 = vld [vmem:[%s1100_s2] ss:$0 sm:$0xff]  ;;  %s704_s28 = sshll.u32 %s1104_s19, 3 }
   0xd   : > { %822 = vmatpush3.bf16.msra.mxu0 %v444_v1  ;;  %856 = vmatpush3.bf16.msra.mxu1 %v444_v1  ;;  %s917_s23 = scalar_lea.vmem %s1098_s0, %s702_s20  ;;  %v931_v11 = vld [vmem:[%s1101_s3] ss:$0 sm:$0xff]  ;;  %s1029_s5 = scalar_lea.vmem %s1102_s4, %s704_s28 }
   0xe   : > { %v726_v3 = vld [vmem:[%s917_s23] sm:$0xff]   ;;  %v789_v5 = vld [vmem:[%s917_s23 + $0x8] sm:$0xff]   ;;  %v790_v32 = vld [vmem:[%s917_s23 + $0x10] sm:$0xff]  }
   0xf   : > { %v796_v4 = vld [vmem:[%s917_s23 + $0x40] sm:$0xff]   ;;  %v727_v6 = vunpack.c.l.bf16 %v726_v3  ;;  %v728_v7 = vunpack.c.h.bf16 %v726_v3  ;;  %v797_v10 = vld [vmem:[%s917_s23 + $0x48] sm:$0xff]   ;;  %v731_v12 = vunpack.c.l.bf16 %v789_v5  ;;  %v732_v13 = vunpack.c.h.bf16 %v789_v5  ;;  %v798_v37 = vld [vmem:[%s917_s23 + $0x50] sm:$0xff]  }
  0x10   : > { %v759_v8 = vunpack.c.l.bf16 %v796_v4  ;;  %v760_v9 = vunpack.c.h.bf16 %v796_v4  ;;  %v763_v14 = vunpack.c.l.bf16 %v797_v10  ;;  %v764_v15 = vunpack.c.h.bf16 %v797_v10  ;;  %v791_v42 = vld [vmem:[%s917_s23 + $0x18] sm:$0xff]   ;;  %v792_v5 = vld [vmem:[%s917_s23 + $0x20] sm:$0xff]  }
  0x11   : > { %v273_v16 = vmul.f32 %v727_v6, %v922_v2  ;;  %v274_v17 = vmul.f32 %v728_v7, %v922_v2  ;;  %v275_v20 = vmul.f32 %v731_v12, %v922_v2  ;;  %v276_v21 = vmul.f32 %v732_v13, %v922_v2  ;;  %v799_v47 = vld [vmem:[%s917_s23 + $0x58] sm:$0xff]  }
  0x12   : > { %v289_v18 = vmul.f32 %v759_v8, %v922_v2  ;;  %v290_v19 = vmul.f32 %v760_v9, %v922_v2  ;;  %v291_v22 = vmul.f32 %v763_v14, %v922_v2  ;;  %v292_v23 = vmul.f32 %v764_v15, %v922_v2  ;;  %v800_v15 = vld [vmem:[%s917_s23 + $0x60] sm:$0xff]  }
  0x13   : > { %v312_v24 = vadd.f32 %v931_v11, %v273_v16  ;;  %v313_v25 = vadd.f32 %v931_v11, %v274_v17  ;;  %v314_v28 = vadd.f32 %v931_v11, %v275_v20  ;;  %v315_v29 = vadd.f32 %v931_v11, %v276_v21  ;;  %v793_v20 = vld [vmem:[%s917_s23 + $0x28] sm:$0xff]  }
  0x14   : > { %v328_v26 = vadd.f32 %v931_v11, %v289_v18  ;;  %v329_v27 = vadd.f32 %v931_v11, %v290_v19  ;;  %v330_v30 = vadd.f32 %v931_v11, %v291_v22  ;;  %v331_v31 = vadd.f32 %v931_v11, %v292_v23 }
  0x15   : > { %v344_v33 = vmax.f32 %v312_v24, 0.0  ;;  %v345_v34 = vmax.f32 %v313_v25, 0.0  ;;  %v346_v38 = vmax.f32 %v314_v28, 0.0  ;;  %v347_v39 = vmax.f32 %v315_v29, 0.0  ;;  %v801_v25 = vld [vmem:[%s917_s23 + $0x68] sm:$0xff]  }
  0x16   : > { %v360_v35 = vmax.f32 %v328_v26, 0.0  ;;  %v361_v36 = vmax.f32 %v329_v27, 0.0  ;;  %v362_v40 = vmax.f32 %v330_v30, 0.0  ;;  %v363_v41 = vmax.f32 %v331_v31, 0.0 }
  0x17   : > { %v376_v43 = vpack.c.bf16 %v345_v34, %v344_v33  ;;  %v735_v45 = vunpack.c.l.bf16 %v790_v32  ;;  %v736_v46 = vunpack.c.h.bf16 %v790_v32  ;;  %v377_v48 = vpack.c.bf16 %v347_v39, %v346_v38 }
  0x18   : > { %v384_v44 = vpack.c.bf16 %v361_v36, %v360_v35  ;;  %v385_v49 = vpack.c.bf16 %v363_v41, %v362_v40  ;;  %v767_v50 = vunpack.c.l.bf16 %v798_v37  ;;  %v768_v51 = vunpack.c.h.bf16 %v798_v37 }
  0x19   : > { %823 = vmatprep.mubr.msk.bf16.mxu0 %vm393_vm1, %v376_v43  ;;  %v277_v52 = vmul.f32 %v735_v45, %v922_v2  ;;  %v278_v53 = vmul.f32 %v736_v46, %v922_v2  ;;  %v739_v54 = vunpack.c.l.bf16 %v791_v42  ;;  %v740_v55 = vunpack.c.h.bf16 %v791_v42  ;;  %v794_v42 = vld [vmem:[%s917_s23 + $0x30] sm:$0xff]  }
  0x1a   : > { %839 = vmatprep.mubr.msk.bf16.mxu1 %vm393_vm1, %v384_v44  ;;  %824 = vmatmul.mubr.msk.bf16.vlgmr.msra.gmra.mxu0 %vm393_vm1, %v377_v48  ;;  %v293_v56 = vmul.f32 %v767_v50, %v922_v2  ;;  %v294_v57 = vmul.f32 %v768_v51, %v922_v2  ;;  %v771_v58 = vunpack.c.l.bf16 %v799_v47  ;;  %v772_v59 = vunpack.c.h.bf16 %v799_v47 }
  0x1b   : > { %840 = vmatmul.mubr.msk.bf16.vlgmr.msra.gmra.mxu1 %vm393_vm1, %v385_v49  ;;  %v316_v60 = vadd.f32 %v931_v11, %v277_v52  ;;  %v317_v61 = vadd.f32 %v931_v11, %v278_v53  ;;  %v279_v62 = vmul.f32 %v739_v54, %v922_v2  ;;  %v280_v63 = vmul.f32 %v740_v55, %v922_v2  ;;  %v802_v55 = vld [vmem:[%s917_s23 + $0x70] sm:$0xff]  }
  0x1c   : > { %v332_v0 = vadd.f32 %v931_v11, %v293_v56  ;;  %v333_v1 = vadd.f32 %v931_v11, %v294_v57  ;;  %v295_v3 = vmul.f32 %v771_v58, %v922_v2  ;;  %v296_v4 = vmul.f32 %v772_v59, %v922_v2 }
  0x1d   : > { %v348_v6 = vmax.f32 %v316_v60, 0.0  ;;  %v349_v7 = vmax.f32 %v317_v61, 0.0  ;;  %v318_v8 = vadd.f32 %v931_v11, %v279_v62  ;;  %v319_v9 = vadd.f32 %v931_v11, %v280_v63  ;;  %v795_v60 = vld [vmem:[%s917_s23 + $0x38] sm:$0xff]  }
  0x1e   : > { %v364_v10 = vmax.f32 %v332_v0, 0.0  ;;  %v365_v12 = vmax.f32 %v333_v1, 0.0  ;;  %v334_v13 = vadd.f32 %v931_v11, %v295_v3  ;;  %v335_v14 = vadd.f32 %v931_v11, %v296_v4  ;;  %v803_v1 = vld [vmem:[%s917_s23 + $0x78] sm:$0xff]  }
  0x1f   : > { %v378_v16 = vpack.c.bf16 %v349_v7, %v348_v6  ;;  %v350_v17 = vmax.f32 %v318_v8, 0.0  ;;  %v351_v18 = vmax.f32 %v319_v9, 0.0  ;;  %v743_v19 = vunpack.c.l.bf16 %v792_v5 }
  0x20   : > { %v386_v21 = vpack.c.bf16 %v365_v12, %v364_v10  ;;  %v366_v22 = vmax.f32 %v334_v13, 0.0  ;;  %v367_v23 = vmax.f32 %v335_v14, 0.0  ;;  %v744_v24 = vunpack.c.h.bf16 %v792_v5 }
  0x21   : > { %827 = vmatprep.mubr.msk.bf16.mxu0 %vm393_vm1, %v378_v16  ;;  %v379_v26 = vpack.c.bf16 %v351_v18, %v350_v17  ;;  %v281_v27 = vmul.f32 %v743_v19, %v922_v2  ;;  %v775_v28 = vunpack.c.l.bf16 %v800_v15  ;;  %v776_v29 = vunpack.c.h.bf16 %v800_v15 }
  0x22   : > { %843 = vmatprep.mubr.msk.bf16.mxu1 %vm393_vm1, %v386_v21  ;;  %v387_v30 = vpack.c.bf16 %v367_v23, %v366_v22  ;;  %v282_v31 = vmul.f32 %v744_v24, %v922_v2  ;;  %v747_v32 = vunpack.c.l.bf16 %v793_v20  ;;  %v748_v33 = vunpack.c.h.bf16 %v793_v20 }
  0x23   : > { %828 = vmatmul.mubr.msk.bf16.gmra.mxu0 %vm393_vm1, %v379_v26  ;;  %v320_v34 = vadd.f32 %v931_v11, %v281_v27  ;;  %v297_v35 = vmul.f32 %v775_v28, %v922_v2  ;;  %v298_v36 = vmul.f32 %v776_v29, %v922_v2  ;;  %v779_v37 = vunpack.c.l.bf16 %v801_v25 }
  0x24   : > { %844 = vmatmul.mubr.msk.bf16.gmra.mxu1 %vm393_vm1, %v387_v30  ;;  %v321_v38 = vadd.f32 %v931_v11, %v282_v31  ;;  %v283_v39 = vmul.f32 %v747_v32, %v922_v2  ;;  %v284_v40 = vmul.f32 %v748_v33, %v922_v2  ;;  %v780_v41 = vunpack.c.h.bf16 %v801_v25 }
  0x25   : > { %v352_v43 = vmax.f32 %v320_v34, 0.0  ;;  %v336_v44 = vadd.f32 %v931_v11, %v297_v35  ;;  %v337_v45 = vadd.f32 %v931_v11, %v298_v36  ;;  %v299_v46 = vmul.f32 %v779_v37, %v922_v2 }
  0x26   : > { %v353_v47 = vmax.f32 %v321_v38, 0.0  ;;  %v322_v48 = vadd.f32 %v931_v11, %v283_v39  ;;  %v323_v49 = vadd.f32 %v931_v11, %v284_v40  ;;  %v300_v50 = vmul.f32 %v780_v41, %v922_v2 }
  0x27   : > { %v368_v51 = vmax.f32 %v336_v44, 0.0  ;;  %v369_v52 = vmax.f32 %v337_v45, 0.0  ;;  %v338_v53 = vadd.f32 %v931_v11, %v299_v46  ;;  %v751_v54 = vunpack.c.l.bf16 %v794_v42 }
  0x28   : > { %v380_v56 = vpack.c.bf16 %v353_v47, %v352_v43  ;;  %v354_v57 = vmax.f32 %v322_v48, 0.0  ;;  %v355_v58 = vmax.f32 %v323_v49, 0.0  ;;  %v339_v59 = vadd.f32 %v931_v11, %v300_v50 }
  0x29   : > { %v388_v61 = vpack.c.bf16 %v369_v52, %v368_v51  ;;  %v370_v62 = vmax.f32 %v338_v53, 0.0  ;;  %v752_v63 = vunpack.c.h.bf16 %v794_v42  ;;  %v285_v0 = vmul.f32 %v751_v54, %v922_v2 }
  0x2a   : > { %831 = vmatprep.mubr.msk.bf16.mxu0 %vm393_vm1, %v380_v56  ;;  %v381_v3 = vpack.c.bf16 %v355_v58, %v354_v57  ;;  %v371_v4 = vmax.f32 %v339_v59, 0.0  ;;  %v783_v5 = vunpack.c.l.bf16 %v802_v55  ;;  %v784_v6 = vunpack.c.h.bf16 %v802_v55 }
  0x2b   : > { %847 = vmatprep.mubr.msk.bf16.mxu1 %vm393_vm1, %v388_v61  ;;  %v286_v7 = vmul.f32 %v752_v63, %v922_v2  ;;  %v324_v8 = vadd.f32 %v931_v11, %v285_v0  ;;  %v755_v9 = vunpack.c.l.bf16 %v795_v60  ;;  %v756_v10 = vunpack.c.h.bf16 %v795_v60 }
  0x2c   : > { %832 = vmatmul.mubr.msk.bf16.gmra.mxu0 %vm393_vm1, %v381_v3  ;;  %v389_v12 = vpack.c.bf16 %v371_v4, %v370_v62  ;;  %v301_v13 = vmul.f32 %v783_v5, %v922_v2  ;;  %v302_v14 = vmul.f32 %v784_v6, %v922_v2  ;;  %v787_v15 = vunpack.c.l.bf16 %v803_v1 }
  0x2d   : > { %v325_v16 = vadd.f32 %v931_v11, %v286_v7  ;;  %v356_v17 = vmax.f32 %v324_v8, 0.0  ;;  %v287_v18 = vmul.f32 %v755_v9, %v922_v2  ;;  %v288_v19 = vmul.f32 %v756_v10, %v922_v2 }
  0x2e   : > { %848 = vmatmul.mubr.msk.bf16.gmra.mxu1 %vm393_vm1, %v389_v12  ;;  %v340_v20 = vadd.f32 %v931_v11, %v301_v13  ;;  %v341_v21 = vadd.f32 %v931_v11, %v302_v14  ;;  %v788_v22 = vunpack.c.h.bf16 %v803_v1  ;;  %v303_v23 = vmul.f32 %v787_v15, %v922_v2 }
  0x2f   : > { %v357_v24 = vmax.f32 %v325_v16, 0.0  ;;  %v326_v25 = vadd.f32 %v931_v11, %v287_v18  ;;  %v327_v26 = vadd.f32 %v931_v11, %v288_v19 }
  0x30   : > { %v372_v27 = vmax.f32 %v340_v20, 0.0  ;;  %v373_v28 = vmax.f32 %v341_v21, 0.0  ;;  %v304_v29 = vmul.f32 %v788_v22, %v922_v2  ;;  %v342_v30 = vadd.f32 %v931_v11, %v303_v23 }
  0x31   : > { %v382_v31 = vpack.c.bf16 %v357_v24, %v356_v17  ;;  %v358_v32 = vmax.f32 %v326_v25, 0.0  ;;  %v359_v33 = vmax.f32 %v327_v26, 0.0 }
  0x32   : > { %v390_v34 = vpack.c.bf16 %v373_v28, %v372_v27  ;;  %v343_v35 = vadd.f32 %v931_v11, %v304_v29  ;;  %v374_v36 = vmax.f32 %v342_v30, 0.0 }
  0x33   : > { %835 = vmatprep.mubr.msk.bf16.mxu0 %vm393_vm1, %v382_v31  ;;  %v383_v37 = vpack.c.bf16 %v359_v33, %v358_v32 }
  0x34   : > { %851 = vmatprep.mubr.msk.bf16.mxu1 %vm393_vm1, %v390_v34  ;;  %v375_v38 = vmax.f32 %v343_v35, 0.0 }
  0x35   : > { %836 = vmatmul.mubr.msk.bf16.gmra.mxu0 %vm393_vm1, %v383_v37 }
  0x36   : > { %v391_v39 = vpack.c.bf16 %v375_v38, %v374_v36 }
  0x38   : > { %852 = vmatmul.mubr.msk.bf16.gmra.mxu1 %vm393_vm1, %v391_v39 }
  0xda   : > { %v825_v2 = vpop.f32.mrf.mxu0 }
  0xdb   : > { %v841_v11 = vpop.f32.mrf.mxu1  ;;  %610 = vst.msk [vmem:[%s1029_s5 + $0x10] sm:$0xff] %vm607_vm2, %v825_v2 }
  0xdc   : > { %626 = vst.msk [vmem:[%s1029_s5 + $0x90] sm:$0xff] %vm607_vm2, %v841_v11  ;;  %v480_v40 = vpop.f32.mrf.mxu0 }
  0xdd   : > { %v544_v41 = vpop.f32.mrf.mxu1  ;;  %608 = vst.msk [vmem:[%s1029_s5] sm:$0xff] %vm607_vm2, %v480_v40 }
  0xde   : > { %624 = vst.msk [vmem:[%s1029_s5 + $0x80] sm:$0xff] %vm607_vm2, %v544_v41  ;;  %v826_v42 = vpop.f32.mrf.mxu0 }
  0xdf   : > { %v842_v43 = vpop.f32.mrf.mxu1  ;;  %611 = vst.msk [vmem:[%s1029_s5 + $0x18] sm:$0xff] %vm607_vm2, %v826_v42 }
  0xe0   : > { %627 = vst.msk [vmem:[%s1029_s5 + $0x98] sm:$0xff] %vm607_vm2, %v842_v43  ;;  %v483_v44 = vpop.f32.mrf.mxu0 }
  0xe1   : > { %v547_v45 = vpop.f32.mrf.mxu1  ;;  %609 = vst.msk [vmem:[%s1029_s5 + $0x8] sm:$0xff] %vm607_vm2, %v483_v44 }
  0xe2   : > { %625 = vst.msk [vmem:[%s1029_s5 + $0x88] sm:$0xff] %vm607_vm2, %v547_v45 }
  0xe3   : > { %v829_v46 = vpop.f32.mrf.mxu0 }
  0xe4   : > { %614 = vst.msk [vmem:[%s1029_s5 + $0x30] sm:$0xff] %vm607_vm2, %v829_v46  ;;  %v845_v47 = vpop.f32.mrf.mxu1 }
  0xe5   : > { %630 = vst.msk [vmem:[%s1029_s5 + $0xb0] sm:$0xff] %vm607_vm2, %v845_v47  ;;  %v496_v48 = vpop.f32.mrf.mxu0 }
  0xe6   : > { %612 = vst.msk [vmem:[%s1029_s5 + $0x20] sm:$0xff] %vm607_vm2, %v496_v48  ;;  %v560_v49 = vpop.f32.mrf.mxu1 }
  0xe7   : > { %628 = vst.msk [vmem:[%s1029_s5 + $0xa0] sm:$0xff] %vm607_vm2, %v560_v49  ;;  %v830_v50 = vpop.f32.mrf.mxu0 }
  0xe8   : > { %615 = vst.msk [vmem:[%s1029_s5 + $0x38] sm:$0xff] %vm607_vm2, %v830_v50  ;;  %v846_v51 = vpop.f32.mrf.mxu1 }
  0xe9   : > { %631 = vst.msk [vmem:[%s1029_s5 + $0xb8] sm:$0xff] %vm607_vm2, %v846_v51  ;;  %v499_v52 = vpop.f32.mrf.mxu0 }
  0xea   : > { %613 = vst.msk [vmem:[%s1029_s5 + $0x28] sm:$0xff] %vm607_vm2, %v499_v52  ;;  %v563_v53 = vpop.f32.mrf.mxu1 }
  0xeb   : > { %629 = vst.msk [vmem:[%s1029_s5 + $0xa8] sm:$0xff] %vm607_vm2, %v563_v53 }
  0xec   : > { %v833_v54 = vpop.f32.mrf.mxu0 }
  0xed   : > { %618 = vst.msk [vmem:[%s1029_s5 + $0x50] sm:$0xff] %vm607_vm2, %v833_v54 }
  0xee   : > { %v849_v55 = vpop.f32.mrf.mxu1  ;;  %v512_v56 = vpop.f32.mrf.mxu0 }
  0xef   : > { %634 = vst.msk [vmem:[%s1029_s5 + $0xd0] sm:$0xff] %vm607_vm2, %v849_v55  ;;  %616 = vst.msk [vmem:[%s1029_s5 + $0x40] sm:$0xff] %vm607_vm2, %v512_v56 }
  0xf0   : > { %v576_v57 = vpop.f32.mrf.mxu1  ;;  %v834_v58 = vpop.f32.mrf.mxu0 }
  0xf1   : > { %632 = vst.msk [vmem:[%s1029_s5 + $0xc0] sm:$0xff] %vm607_vm2, %v576_v57  ;;  %619 = vst.msk [vmem:[%s1029_s5 + $0x58] sm:$0xff] %vm607_vm2, %v834_v58 }
  0xf2   : > { %v850_v59 = vpop.f32.mrf.mxu1  ;;  %v515_v60 = vpop.f32.mrf.mxu0 }
  0xf3   : > { %635 = vst.msk [vmem:[%s1029_s5 + $0xd8] sm:$0xff] %vm607_vm2, %v850_v59  ;;  %617 = vst.msk [vmem:[%s1029_s5 + $0x48] sm:$0xff] %vm607_vm2, %v515_v60 }
  0xf4   : > { %v579_v61 = vpop.f32.mrf.mxu1 }
  0xf5   : > { %633 = vst.msk [vmem:[%s1029_s5 + $0xc8] sm:$0xff] %vm607_vm2, %v579_v61  ;;  %v837_v62 = vpop.f32.mrf.mxu0 }
  0xf6   : > { %622 = vst.msk [vmem:[%s1029_s5 + $0x70] sm:$0xff] %vm607_vm2, %v837_v62 }
  0xf7   : > { %v528_v63 = vpop.f32.mrf.mxu0 }
  0xf8   : > { %v853_v0 = vpop.f32.mrf.mxu1  ;;  %620 = vst.msk [vmem:[%s1029_s5 + $0x60] sm:$0xff] %vm607_vm2, %v528_v63 }
  0xf9   : > { %638 = vst.msk [vmem:[%s1029_s5 + $0xf0] sm:$0xff] %vm607_vm2, %v853_v0  ;;  %v838_v1 = vpop.f32.mrf.mxu0 }
  0xfa   : > { %v592_v3 = vpop.f32.mrf.mxu1  ;;  %623 = vst.msk [vmem:[%s1029_s5 + $0x78] sm:$0xff] %vm607_vm2, %v838_v1 }
  0xfb   : > { %636 = vst.msk [vmem:[%s1029_s5 + $0xe0] sm:$0xff] %vm607_vm2, %v592_v3  ;;  %v531_v4 = vpop.f32.mrf.mxu0 }
  0xfc   : > { %v854_v5 = vpop.f32.mrf.mxu1  ;;  %621 = vst.msk [vmem:[%s1029_s5 + $0x68] sm:$0xff] %vm607_vm2, %v531_v4 }
  0xfd   : > { %639 = vst.msk [vmem:[%s1029_s5 + $0xf8] sm:$0xff] %vm607_vm2, %v854_v5 }
  0xfe   : > { %v595_v6 = vpop.f32.mrf.mxu1 }
  0xff   : > { %637 = vst.msk [vmem:[%s1029_s5 + $0xe8] sm:$0xff] %vm607_vm2, %v595_v6 }
 0x100 PF: > { %s14_s15 = sadd.s32 1, %s873_s15  }
 0x101   : > { %p11_p4 = scmp.ge.s32.totalorder %s14_s15, 4  }
 0x103   :  { %13 = sbr.rel (!%p11_p4) target bundleno = 1 (0x1), region = 66 }

// kernel: generator_forward.15
= control target key start
LH: loop header
LB: loop body
LE: loop exit
PB: predicated region body
PF: predicated region fallthrough
CT: control target
= control target key end

     0   :  { %s1445_s9 = smov 0   ;;  %s2441_s0 = inlined_call_operand.vmem [shape: bf16[2048,4], index: 0, kind: input, shape index: {}]   ;;  %s2442_s1 = inlined_call_operand.vmem [shape: f32[1,4], index: 1, kind: output, shape index: {0}]   ;;  %s2443_s2 = inlined_call_operand.vmem [shape: f32[1,4], index: 2, kind: output, shape index: {1}]  }
   0x1 LB: > { %s1084_s10 = sadd.s32 4294967295, %s1427_s9   ;;  %p1087_p0 = scmp.ge.s32.totalorder %s1427_s9, 1  ;;  %s1427_s9 = sphi %s1445_s9, %s13_s9  }
   0x2   : > { %p106_p1 = scmp.lt.s32.totalorder %s1427_s9, 3 }
   0x4   : > { %p107_p2 = pnand %p1087_p0, %p106_p1 }
   0x5   : > { %s1088_s11 = sshll.u32 (!%p107_p2), %s1084_s10, 7  ;;  %p1090_p4 = scmp.ne.s32.totalorder (!%p107_p2), %s1084_s10, 0 }
   0x6   : > { %110 = sbr.rel (%p107_p2) target bundleno = 329 (0x149), region = 24  ;;  %p124_p3 = scmp.lt.s32.totalorder (!%p107_p2), %s1088_s11, 255 }
   0xb   : > { %s2445_s11 = smov (!%p124_p3, %s1088_s11), 255  ;;  %132 = sbr.rel (%p1090_p4) target bundleno = 18 (0x12), region = 28 }
   0xc   : > { %s1089_s12 = sshll.u32 %s2445_s11, 2 }
   0xd   : > { %s1456_s15 = scalar_lea.vmem %s2441_s0, %s1089_s12 }
  0x10   : > { %vm133_vm0 = vcmask 24576   ;;  %v1429_v0 = vmov 0.0  }
  0x11   : > { %134 = vst.msk [vmem:[%s2442_s1] sm:$0x1] %vm133_vm0, %v1429_v0  ;;  %135 = vst.msk [vmem:[%s2443_s2] sm:$0x1] %vm133_vm0, %v1429_v0 }
  0x12 PF: > { %v1094_v1 = vld [vmem:[%s1456_s15] sm:$0xff]   ;;  %v1349_v2 = vld [vmem:[%s1456_s15 + $0x8] sm:$0xff]   ;;  %vm393_vm1 = vcmask 31744   ;;  %v1350_v6 = vld [vmem:[%s1456_s15 + $0x10] sm:$0xff]   ;;  %vm656_vm2 = vcmask 24576  }
  0x13   : > { %v1466_v3 = vunpack.c.l.bf16 %v1094_v1  ;;  %v1468_v4 = vunpack.c.h.bf16 %v1094_v1  ;;  %v1470_v5 = vunpack.c.l.bf16 %v1349_v2  ;;  %v1473_v7 = vunpack.c.h.bf16 %v1349_v2  ;;  %v1351_v14 = vld [vmem:[%s1456_s15 + $0x18] sm:$0xff]   ;;  %v1352_v21 = vld [vmem:[%s1456_s15 + $0x20] sm:$0xff]   ;;  %v1353_v28 = vld [vmem:[%s1456_s15 + $0x28] sm:$0xff]  }
  0x14   : > { %v1481_v12 = vunpack.c.l.bf16 %v1350_v6  ;;  %v1486_v16 = vunpack.c.h.bf16 %v1350_v6  ;;  %v1490_v19 = vunpack.c.l.bf16 %v1351_v14  ;;  %v1495_v23 = vunpack.c.h.bf16 %v1351_v14  ;;  %v1354_v35 = vld [vmem:[%s1456_s15 + $0x30] sm:$0xff]   ;;  %v1355_v42 = vld [vmem:[%s1456_s15 + $0x38] sm:$0xff]   ;;  %v1356_v49 = vld [vmem:[%s1456_s15 + $0x40] sm:$0xff]  }
  0x15   : > { %v394_v8 = vsel %vm393_vm1, %v1466_v3, 0.0  ;;  %v395_v9 = vsel %vm393_vm1, %v1468_v4, 0.0  ;;  %v397_v10 = vsel %vm393_vm1, %v1470_v5, 0.0  ;;  %v399_v13 = vsel %vm393_vm1, %v1473_v7, 0.0  ;;  %v1357_v56 = vld [vmem:[%s1456_s15 + $0x48] sm:$0xff]   ;;  %v1358_v63 = vld [vmem:[%s1456_s15 + $0x50] sm:$0xff]  }
  0x16   : > { %v396_v11 = vadd.f32 %v395_v9, %v394_v8  ;;  %v401_v17 = vsel %vm393_vm1, %v1481_v12, 0.0  ;;  %v403_v20 = vsel %vm393_vm1, %v1486_v16, 0.0  ;;  %v405_v24 = vsel %vm393_vm1, %v1490_v19, 0.0 }
  0x17   : > { %v1499_v26 = vunpack.c.l.bf16 %v1352_v21  ;;  %v407_v27 = vsel %vm393_vm1, %v1495_v23, 0.0  ;;  %v1504_v30 = vunpack.c.h.bf16 %v1352_v21  ;;  %v1508_v33 = vunpack.c.l.bf16 %v1353_v28 }
  0x18   : > { %v398_v15 = vadd.f32 %v397_v10, %v396_v11  ;;  %v1513_v37 = vunpack.c.h.bf16 %v1353_v28  ;;  %v1517_v40 = vunpack.c.l.bf16 %v1354_v35  ;;  %v1522_v44 = vunpack.c.h.bf16 %v1354_v35  ;;  %v1359_v10 = vld [vmem:[%s1456_s15 + $0x58] sm:$0xff]   ;;  %v1361_v28 = vld [vmem:[%s1456_s15 + $0x68] sm:$0xff]  }
  0x19   : > { %v409_v31 = vsel %vm393_vm1, %v1499_v26, 0.0  ;;  %v411_v34 = vsel %vm393_vm1, %v1504_v30, 0.0  ;;  %v413_v38 = vsel %vm393_vm1, %v1508_v33, 0.0  ;;  %v1526_v47 = vunpack.c.l.bf16 %v1355_v42 }
  0x1a   : > { %v400_v18 = vadd.f32 %v399_v13, %v398_v15  ;;  %v415_v41 = vsel %vm393_vm1, %v1513_v37, 0.0  ;;  %v417_v45 = vsel %vm393_vm1, %v1517_v40, 0.0  ;;  %v419_v48 = vsel %vm393_vm1, %v1522_v44, 0.0 }
  0x1b   : > { %v1531_v51 = vunpack.c.h.bf16 %v1355_v42  ;;  %v421_v52 = vsel %vm393_vm1, %v1526_v47, 0.0  ;;  %v1535_v54 = vunpack.c.l.bf16 %v1356_v49  ;;  %v1540_v58 = vunpack.c.h.bf16 %v1356_v49 }
  0x1c   : > { %v402_v22 = vadd.f32 %v401_v17, %v400_v18  ;;  %v1544_v61 = vunpack.c.l.bf16 %v1357_v56  ;;  %v1549_v1 = vunpack.c.h.bf16 %v1357_v56  ;;  %v1553_v8 = vunpack.c.l.bf16 %v1358_v63 }
  0x1d   : > { %v423_v55 = vsel %vm393_vm1, %v1531_v51, 0.0  ;;  %v425_v59 = vsel %vm393_vm1, %v1535_v54, 0.0  ;;  %v427_v62 = vsel %vm393_vm1, %v1540_v58, 0.0  ;;  %v1558_v13 = vunpack.c.h.bf16 %v1358_v63 }
  0x1e   : > { %v404_v25 = vadd.f32 %v403_v20, %v402_v22  ;;  %v429_v2 = vsel %vm393_vm1, %v1544_v61, 0.0  ;;  %v431_v9 = vsel %vm393_vm1, %v1549_v1, 0.0  ;;  %v433_v14 = vsel %vm393_vm1, %v1553_v8, 0.0  ;;  %v1360_v20 = vld [vmem:[%s1456_s15 + $0x60] sm:$0xff]  }
  0x1f   : > { %v1562_v17 = vunpack.c.l.bf16 %v1359_v10  ;;  %v435_v18 = vsel %vm393_vm1, %v1558_v13, 0.0  ;;  %v1567_v22 = vunpack.c.h.bf16 %v1359_v10  ;;  %v659_v35 = vmul.f32 %v1466_v3, %v1466_v3 }
  0x20   : > { %v406_v29 = vadd.f32 %v405_v24, %v404_v25  ;;  %v664_v56 = vmul.f32 %v1486_v16, %v1486_v16 }
  0x21   : > { %v437_v24 = vsel %vm393_vm1, %v1562_v17, 0.0 }
  0x22   : > { %v408_v32 = vadd.f32 %v407_v27, %v406_v29  ;;  %v1571_v27 = vunpack.c.l.bf16 %v1360_v20  ;;  %v439_v29 = vsel %vm393_vm1, %v1567_v22, 0.0 }
  0x24   : > { %v410_v36 = vadd.f32 %v409_v31, %v408_v32  ;;  %v1576_v31 = vunpack.c.h.bf16 %v1360_v20 }
  0x26   : > { %v412_v39 = vadd.f32 %v411_v34, %v410_v36  ;;  %v441_v34 = vsel %vm393_vm1, %v1571_v27, 0.0  ;;  %v660_v36 = vmul.f32 %v1468_v4, %v1468_v4  ;;  %v443_v42 = vsel %vm393_vm1, %v1576_v31, 0.0 }
  0x28   : > { %v414_v43 = vadd.f32 %v413_v38, %v412_v39  ;;  %v661_v38 = vmul.f32 %v1470_v5, %v1470_v5  ;;  %v1586_v39 = vunpack.c.l.bf16 %v1361_v28  ;;  %v663_v5 = vmul.f32 %v1481_v12, %v1481_v12  ;;  %v1363_v12 = vld [vmem:[%s1456_s15 + $0x78] sm:$0xff]  }
  0x29   : > { %v788_v49 = vsel %vm393_vm1, %v660_v36, 0.0  ;;  %v1617_v10 = vunpack.c.l.bf16 %v1363_v12  ;;  %v1365_v36 = vld [vmem:[%s1456_s15 + $0x88] sm:$0xff]  }
  0x2a   : > { %v416_v46 = vadd.f32 %v415_v41, %v414_v43  ;;  %v662_v43 = vmul.f32 %v1473_v7, %v1473_v7  ;;  %v445_v4 = vsel %vm393_vm1, %v1586_v39, 0.0 }
  0x2c   : > { %v418_v50 = vadd.f32 %v417_v45, %v416_v46  ;;  %v1592_v45 = vunpack.c.h.bf16 %v1361_v28  ;;  %v1362_v46 = vld [vmem:[%s1456_s15 + $0x70] sm:$0xff]  }
  0x2e   : > { %v420_v53 = vadd.f32 %v419_v48, %v418_v50  ;;  %v787_v48 = vsel %vm393_vm1, %v659_v35, 0.0  ;;  %v790_v50 = vsel %vm393_vm1, %v661_v38, 0.0  ;;  %v447_v7 = vsel %vm393_vm1, %v1592_v45, 0.0 }
  0x30   : > { %v422_v57 = vadd.f32 %v421_v52, %v420_v53  ;;  %v789_v53 = vadd.f32 %v788_v49, %v787_v48  ;;  %v670_v48 = vmul.f32 %v1513_v37, %v1513_v37 }
  0x32   : > { %v424_v60 = vadd.f32 %v423_v55, %v422_v57  ;;  %v1602_v55 = vunpack.c.l.bf16 %v1362_v46  ;;  %v792_v57 = vsel %vm393_vm1, %v662_v43, 0.0  ;;  %v669_v43 = vmul.f32 %v1508_v33, %v1508_v33 }
  0x34   : > { %v426_v0 = vadd.f32 %v425_v59, %v424_v60  ;;  %v791_v60 = vadd.f32 %v790_v50, %v789_v53  ;;  %v449_v63 = vsel %vm393_vm1, %v1602_v55, 0.0  ;;  %v1366_v50 = vld [vmem:[%s1456_s15 + $0x90] sm:$0xff]  }
  0x36   : > { %v428_v6 = vadd.f32 %v427_v62, %v426_v0  ;;  %v1610_v62 = vunpack.c.h.bf16 %v1362_v46  ;;  %v665_v0 = vmul.f32 %v1490_v19, %v1490_v19  ;;  %v453_v19 = vsel %vm393_vm1, %v1617_v10, 0.0 }
  0x38   : > { %v430_v11 = vadd.f32 %v429_v2, %v428_v6  ;;  %v794_v2 = vsel %vm393_vm1, %v663_v5, 0.0  ;;  %v451_v16 = vsel %vm393_vm1, %v1610_v62, 0.0  ;;  %v1647_v5 = vunpack.c.l.bf16 %v1365_v36 }
  0x3a   : > { %v432_v15 = vadd.f32 %v431_v9, %v430_v11  ;;  %v793_v9 = vadd.f32 %v792_v57, %v791_v60  ;;  %v666_v11 = vmul.f32 %v1495_v23, %v1495_v23  ;;  %v461_v33 = vsel %vm393_vm1, %v1647_v5, 0.0 }
  0x3b   : > { %v806_v57 = vsel %vm393_vm1, %v669_v43, 0.0  ;;  %v1662_v60 = vunpack.c.l.bf16 %v1366_v50 }
  0x3c   : > { %v434_v21 = vadd.f32 %v433_v14, %v432_v15  ;;  %v796_v14 = vsel %vm393_vm1, %v664_v56, 0.0  ;;  %v1364_v15 = vld [vmem:[%s1456_s15 + $0x80] sm:$0xff]   ;;  %v795_v20 = vadd.f32 %v794_v2, %v793_v9  ;;  %v800_v35 = vsel %vm393_vm1, %v666_v11, 0.0  ;;  %v1367_v2 = vld [vmem:[%s1456_s15 + $0x98] sm:$0xff]  }
  0x3d   : > { %v671_v56 = vmul.f32 %v1517_v40, %v1517_v40  ;;  %v465_v40 = vsel %vm393_vm1, %v1662_v60, 0.0  ;;  %v673_v11 = vmul.f32 %v1526_v47, %v1526_v47 }
  0x3e   : > { %v436_v25 = vadd.f32 %v435_v18, %v434_v21  ;;  %v1625_v21 = vunpack.c.h.bf16 %v1363_v12 }
  0x40   : > { %v438_v32 = vadd.f32 %v437_v24, %v436_v25  ;;  %v667_v24 = vmul.f32 %v1499_v26, %v1499_v26  ;;  %v798_v25 = vsel %vm393_vm1, %v665_v0, 0.0  ;;  %v455_v23 = vsel %vm393_vm1, %v1625_v21, 0.0 }
  0x41   : > { %v808_v0 = vsel %vm393_vm1, %v670_v48, 0.0  ;;  %v677_v48 = vmul.f32 %v1544_v61, %v1544_v61 }
  0x42   : > { %v440_v41 = vadd.f32 %v439_v29, %v438_v32  ;;  %v797_v29 = vadd.f32 %v796_v14, %v795_v20  ;;  %v1632_v32 = vunpack.c.l.bf16 %v1364_v15  ;;  %v802_v46 = vsel %vm393_vm1, %v667_v24, 0.0 }
  0x43   : > { %v810_v14 = vsel %vm393_vm1, %v671_v56, 0.0  ;;  %v1677_v20 = vunpack.c.l.bf16 %v1367_v2 }
  0x44   : > { %v442_v3 = vadd.f32 %v441_v34, %v440_v41  ;;  %v668_v34 = vmul.f32 %v1504_v30, %v1504_v30  ;;  %v799_v41 = vadd.f32 %v798_v25, %v797_v29  ;;  %v457_v26 = vsel %vm393_vm1, %v1632_v32, 0.0  ;;  %v1368_v25 = vld [vmem:[%s1456_s15 + $0xa0] sm:$0xff]  }
  0x45   : > { %v469_v47 = vsel %vm393_vm1, %v1677_v20, 0.0 }
  0x46   : > { %v444_v52 = vadd.f32 %v443_v42, %v442_v3  ;;  %v1640_v42 = vunpack.c.h.bf16 %v1364_v15  ;;  %v804_v49 = vsel %vm393_vm1, %v668_v34, 0.0  ;;  %v675_v34 = vmul.f32 %v1535_v54, %v1535_v54 }
  0x48   : > { %v446_v59 = vadd.f32 %v445_v4, %v444_v52  ;;  %v801_v4 = vadd.f32 %v800_v35, %v799_v41  ;;  %v459_v30 = vsel %vm393_vm1, %v1640_v42, 0.0  ;;  %v814_v35 = vsel %vm393_vm1, %v673_v11, 0.0 }
  0x49   : > { %v1692_v41 = vunpack.c.l.bf16 %v1368_v25 }
  0x4a   : > { %v448_v6 = vadd.f32 %v447_v7, %v446_v59  ;;  %v803_v53 = vadd.f32 %v802_v46, %v801_v4  ;;  %v1655_v7 = vunpack.c.h.bf16 %v1365_v36  ;;  %v1369_v46 = vld [vmem:[%s1456_s15 + $0xa8] sm:$0xff]  }
  0x4b   : > { %v473_v54 = vsel %vm393_vm1, %v1692_v41, 0.0 }
  0x4c   : > { %v450_v18 = vadd.f32 %v449_v63, %v448_v6  ;;  %v805_v59 = vadd.f32 %v804_v49, %v803_v53  ;;  %v463_v37 = vsel %vm393_vm1, %v1655_v7, 0.0  ;;  %v672_v63 = vmul.f32 %v1522_v44, %v1522_v44 }
  0x4d   : > { %v818_v49 = vsel %vm393_vm1, %v675_v34, 0.0  ;;  %v1707_v53 = vunpack.c.l.bf16 %v1369_v46 }
  0x4e   : > { %v452_v28 = vadd.f32 %v451_v16, %v450_v18  ;;  %v807_v9 = vadd.f32 %v806_v57, %v805_v59  ;;  %v1670_v16 = vunpack.c.h.bf16 %v1366_v50  ;;  %v812_v24 = vsel %vm393_vm1, %v672_v63, 0.0  ;;  %v1370_v57 = vld [vmem:[%s1456_s15 + $0xb0] sm:$0xff]  }
  0x4f   : > { %v477_v61 = vsel %vm393_vm1, %v1707_v53, 0.0  ;;  %v679_v63 = vmul.f32 %v1553_v8, %v1553_v8 }
  0x50   : > { %v454_v38 = vadd.f32 %v453_v19, %v452_v28  ;;  %v809_v18 = vadd.f32 %v808_v0, %v807_v9  ;;  %v467_v44 = vsel %vm393_vm1, %v1670_v16, 0.0  ;;  %v674_v19 = vmul.f32 %v1531_v51, %v1531_v51 }
  0x51   : > { %v822_v0 = vsel %vm393_vm1, %v677_v48, 0.0  ;;  %v1722_v9 = vunpack.c.l.bf16 %v1370_v57 }
  0x52   : > { %v456_v3 = vadd.f32 %v455_v23, %v454_v38  ;;  %v811_v29 = vadd.f32 %v810_v14, %v809_v18  ;;  %v1685_v23 = vunpack.c.h.bf16 %v1367_v2  ;;  %v816_v43 = vsel %vm393_vm1, %v674_v19, 0.0  ;;  %v1371_v14 = vld [vmem:[%s1456_s15 + $0xb8] sm:$0xff]  }
  0x53   : > { %v481_v8 = vsel %vm393_vm1, %v1722_v9, 0.0  ;;  %v681_v19 = vmul.f32 %v1562_v17, %v1562_v17 }
  0x54   : > { %v458_v52 = vadd.f32 %v457_v26, %v456_v3  ;;  %v813_v38 = vadd.f32 %v812_v24, %v811_v29  ;;  %v471_v51 = vsel %vm393_vm1, %v1685_v23, 0.0  ;;  %v676_v26 = vmul.f32 %v1540_v58, %v1540_v58 }
  0x55   : > { %v826_v24 = vsel %vm393_vm1, %v679_v63, 0.0  ;;  %v1737_v29 = vunpack.c.l.bf16 %v1371_v14 }
  0x56   : > { %v460_v12 = vadd.f32 %v459_v30, %v458_v52  ;;  %v815_v4 = vadd.f32 %v814_v35, %v813_v38  ;;  %v1700_v30 = vunpack.c.h.bf16 %v1368_v25  ;;  %v820_v56 = vsel %vm393_vm1, %v676_v26, 0.0  ;;  %v1372_v35 = vld [vmem:[%s1456_s15 + $0xc0] sm:$0xff]  }
  0x57   : > { %v485_v17 = vsel %vm393_vm1, %v1737_v29, 0.0  ;;  %v683_v26 = vmul.f32 %v1571_v27, %v1571_v27 }
  0x58   : > { %v462_v6 = vadd.f32 %v461_v33, %v460_v12  ;;  %v817_v52 = vadd.f32 %v816_v43, %v815_v4  ;;  %v475_v58 = vsel %vm393_vm1, %v1700_v30, 0.0  ;;  %v678_v33 = vmul.f32 %v1549_v1, %v1549_v1 }
  0x59   : > { %v830_v43 = vsel %vm393_vm1, %v681_v19, 0.0  ;;  %v1752_v4 = vunpack.c.l.bf16 %v1372_v35 }
  0x5a   : > { %v464_v15 = vadd.f32 %v463_v37, %v462_v6  ;;  %v819_v59 = vadd.f32 %v818_v49, %v817_v52  ;;  %v1715_v37 = vunpack.c.h.bf16 %v1369_v46  ;;  %v824_v11 = vsel %vm393_vm1, %v678_v33, 0.0  ;;  %v1373_v49 = vld [vmem:[%s1456_s15 + $0xc8] sm:$0xff]  }
  0x5b   : > { %v489_v27 = vsel %vm393_vm1, %v1752_v4, 0.0  ;;  %v685_v33 = vmul.f32 %v1586_v39, %v1586_v39 }
  0x5c   : > { %v466_v28 = vadd.f32 %v465_v40, %v464_v15  ;;  %v821_v6 = vadd.f32 %v820_v56, %v819_v59  ;;  %v479_v1 = vsel %vm393_vm1, %v1715_v37, 0.0  ;;  %v680_v40 = vmul.f32 %v1558_v13, %v1558_v13 }
  0x5d   : > { %v834_v56 = vsel %vm393_vm1, %v683_v26, 0.0  ;;  %v1767_v59 = vunpack.c.l.bf16 %v1373_v49 }
  0x5e   : > { %v468_v36 = vadd.f32 %v467_v44, %v466_v28  ;;  %v823_v18 = vadd.f32 %v822_v0, %v821_v6  ;;  %v1730_v44 = vunpack.c.h.bf16 %v1370_v57  ;;  %v828_v34 = vsel %vm393_vm1, %v680_v40, 0.0  ;;  %v1374_v0 = vld [vmem:[%s1456_s15 + $0xd0] sm:$0xff]  }
  0x5f   : > { %v493_v39 = vsel %vm393_vm1, %v1767_v59, 0.0  ;;  %v687_v40 = vmul.f32 %v1602_v55, %v1602_v55 }
  0x60   : > { %v470_v3 = vadd.f32 %v469_v47, %v468_v36  ;;  %v825_v28 = vadd.f32 %v824_v11, %v823_v18  ;;  %v483_v13 = vsel %vm393_vm1, %v1730_v44, 0.0  ;;  %v682_v47 = vmul.f32 %v1567_v22, %v1567_v22 }
  0x61   : > { %v838_v11 = vsel %vm393_vm1, %v685_v33, 0.0  ;;  %v1782_v18 = vunpack.c.l.bf16 %v1374_v0 }
  0x62   : > { %v472_v50 = vadd.f32 %v471_v51, %v470_v3  ;;  %v827_v38 = vadd.f32 %v826_v24, %v825_v28  ;;  %v1745_v51 = vunpack.c.h.bf16 %v1371_v14  ;;  %v832_v48 = vsel %vm393_vm1, %v682_v47, 0.0  ;;  %v1375_v24 = vld [vmem:[%s1456_s15 + $0xd8] sm:$0xff]  }
  0x63   : > { %v497_v55 = vsel %vm393_vm1, %v1782_v18, 0.0  ;;  %v689_v47 = vmul.f32 %v1617_v10, %v1617_v10 }
  0x64   : > { %v474_v12 = vadd.f32 %v473_v54, %v472_v50  ;;  %v829_v3 = vadd.f32 %v828_v34, %v827_v38  ;;  %v487_v22 = vsel %vm393_vm1, %v1745_v51, 0.0  ;;  %v684_v54 = vmul.f32 %v1576_v31, %v1576_v31 }
  0x65   : > { %v842_v34 = vsel %vm393_vm1, %v687_v40, 0.0  ;;  %v1797_v38 = vunpack.c.l.bf16 %v1375_v24 }
  0x66   : > { %v476_v2 = vadd.f32 %v475_v58, %v474_v12  ;;  %v831_v52 = vadd.f32 %v830_v43, %v829_v3  ;;  %v1760_v58 = vunpack.c.h.bf16 %v1372_v35  ;;  %v836_v63 = vsel %vm393_vm1, %v684_v54, 0.0  ;;  %v1376_v43 = vld [vmem:[%s1456_s15 + $0xe0] sm:$0xff]  }
  0x67   : > { %v501_v10 = vsel %vm393_vm1, %v1797_v38, 0.0  ;;  %v691_v54 = vmul.f32 %v1632_v32, %v1632_v32 }
  0x68   : > { %v478_v15 = vadd.f32 %v477_v61, %v476_v2  ;;  %v833_v12 = vadd.f32 %v832_v48, %v831_v52  ;;  %v491_v31 = vsel %vm393_vm1, %v1760_v58, 0.0  ;;  %v686_v61 = vmul.f32 %v1592_v45, %v1592_v45 }
  0x69   : > { %v846_v48 = vsel %vm393_vm1, %v689_v47, 0.0  ;;  %v1812_v52 = vunpack.c.l.bf16 %v1376_v43 }
  0x6a   : > { %v480_v25 = vadd.f32 %v479_v1, %v478_v15  ;;  %v835_v6 = vadd.f32 %v834_v56, %v833_v12  ;;  %v1775_v1 = vunpack.c.h.bf16 %v1373_v49  ;;  %v840_v19 = vsel %vm393_vm1, %v686_v61, 0.0  ;;  %v1377_v56 = vld [vmem:[%s1456_s15 + $0xe8] sm:$0xff]  }
  0x6b   : > { %v505_v32 = vsel %vm393_vm1, %v1812_v52, 0.0  ;;  %v693_v61 = vmul.f32 %v1647_v5, %v1647_v5 }
  0x6c   : > { %v482_v36 = vadd.f32 %v481_v8, %v480_v25  ;;  %v837_v15 = vadd.f32 %v836_v63, %v835_v6  ;;  %v495_v45 = vsel %vm393_vm1, %v1775_v1, 0.0  ;;  %v688_v8 = vmul.f32 %v1610_v62, %v1610_v62 }
  0x6d   : > { %v850_v63 = vsel %vm393_vm1, %v691_v54, 0.0  ;;  %v1827_v6 = vunpack.c.l.bf16 %v1377_v56 }
  0x6e   : > { %v484_v46 = vadd.f32 %v483_v13, %v482_v36  ;;  %v839_v28 = vadd.f32 %v838_v11, %v837_v15  ;;  %v1790_v13 = vunpack.c.h.bf16 %v1374_v0  ;;  %v844_v26 = vsel %vm393_vm1, %v688_v8, 0.0  ;;  %v1378_v11 = vld [vmem:[%s1456_s15 + $0xf0] sm:$0xff]  }
  0x6f   : > { %v509_v5 = vsel %vm393_vm1, %v1827_v6, 0.0  ;;  %v695_v8 = vmul.f32 %v1662_v60, %v1662_v60 }
  0x70   : > { %v486_v50 = vadd.f32 %v485_v17, %v484_v46  ;;  %v841_v36 = vadd.f32 %v840_v19, %v839_v28  ;;  %v499_v62 = vsel %vm393_vm1, %v1790_v13, 0.0  ;;  %v690_v17 = vmul.f32 %v1625_v21, %v1625_v21 }
  0x71   : > { %v854_v19 = vsel %vm393_vm1, %v693_v61, 0.0  ;;  %v1842_v28 = vunpack.c.l.bf16 %v1378_v11 }
  0x72   : > { %v488_v57 = vadd.f32 %v487_v22, %v486_v50  ;;  %v843_v3 = vadd.f32 %v842_v34, %v841_v36  ;;  %v1805_v22 = vunpack.c.h.bf16 %v1375_v24  ;;  %v848_v33 = vsel %vm393_vm1, %v690_v17, 0.0  ;;  %v1379_v34 = vld [vmem:[%s1456_s15 + $0xf8] sm:$0xff]  }
  0x73   : > { %v513_v60 = vsel %vm393_vm1, %v1842_v28, 0.0  ;;  %v697_v17 = vmul.f32 %v1677_v20, %v1677_v20 }
  0x74   : > { %v490_v2 = vadd.f32 %v489_v27, %v488_v57  ;;  %v845_v50 = vadd.f32 %v844_v26, %v843_v3  ;;  %v503_v21 = vsel %vm393_vm1, %v1805_v22, 0.0  ;;  %v692_v27 = vmul.f32 %v1640_v42, %v1640_v42 }
  0x75   : > { %v858_v26 = vsel %vm393_vm1, %v695_v8, 0.0  ;;  %v1857_v3 = vunpack.c.l.bf16 %v1379_v34 }
  0x76   : > { %v492_v14 = vadd.f32 %v491_v31, %v490_v2  ;;  %v847_v12 = vadd.f32 %v846_v48, %v845_v50  ;;  %v1820_v31 = vunpack.c.h.bf16 %v1376_v43  ;;  %v852_v40 = vsel %vm393_vm1, %v692_v27, 0.0  ;;  %v1380_v48 = vld [vmem:[%s1456_s15 + $0x100] sm:$0xff]  }
  0x77   : > { %v517_v20 = vsel %vm393_vm1, %v1857_v3, 0.0  ;;  %v699_v27 = vmul.f32 %v1692_v41, %v1692_v41 }
  0x78   : > { %v494_v25 = vadd.f32 %v493_v39, %v492_v14  ;;  %v849_v2 = vadd.f32 %v848_v33, %v847_v12  ;;  %v507_v42 = vsel %vm393_vm1, %v1820_v31, 0.0  ;;  %v694_v39 = vmul.f32 %v1655_v7, %v1655_v7 }
  0x79   : > { %v862_v33 = vsel %vm393_vm1, %v697_v17, 0.0  ;;  %v1872_v12 = vunpack.c.l.bf16 %v1380_v48 }
  0x7a   : > { %v496_v35 = vadd.f32 %v495_v45, %v494_v25  ;;  %v851_v15 = vadd.f32 %v850_v63, %v849_v2  ;;  %v1835_v45 = vunpack.c.h.bf16 %v1377_v56  ;;  %v856_v47 = vsel %vm393_vm1, %v694_v39, 0.0  ;;  %v1381_v63 = vld [vmem:[%s1456_s15 + $0x108] sm:$0xff]  }
  0x7b   : > { %v521_v41 = vsel %vm393_vm1, %v1872_v12, 0.0  ;;  %v701_v39 = vmul.f32 %v1707_v53, %v1707_v53 }
  0x7c   : > { %v498_v46 = vadd.f32 %v497_v55, %v496_v35  ;;  %v853_v25 = vadd.f32 %v852_v40, %v851_v15  ;;  %v511_v7 = vsel %vm393_vm1, %v1835_v45, 0.0  ;;  %v696_v55 = vmul.f32 %v1670_v16, %v1670_v16 }
  0x7d   : > { %v866_v40 = vsel %vm393_vm1, %v699_v27, 0.0  ;;  %v1887_v15 = vunpack.c.l.bf16 %v1381_v63  ;;  %v1384_v27 = vld [vmem:[%s1456_s15 + $0x120] sm:$0xff]  }
  0x7e   : > { %v500_v49 = vadd.f32 %v499_v62, %v498_v46  ;;  %v855_v36 = vadd.f32 %v854_v19, %v853_v25  ;;  %v1850_v62 = vunpack.c.h.bf16 %v1378_v11  ;;  %v860_v54 = vsel %vm393_vm1, %v696_v55, 0.0  ;;  %v1382_v19 = vld [vmem:[%s1456_s15 + $0x110] sm:$0xff]  }
  0x7f   : > { %v525_v53 = vsel %vm393_vm1, %v1887_v15, 0.0  ;;  %v703_v55 = vmul.f32 %v1722_v9, %v1722_v9 }
  0x80   : > { %v502_v57 = vadd.f32 %v501_v10, %v500_v49  ;;  %v857_v46 = vadd.f32 %v856_v47, %v855_v36  ;;  %v515_v16 = vsel %vm393_vm1, %v1850_v62, 0.0  ;;  %v698_v10 = vmul.f32 %v1685_v23, %v1685_v23 }
  0x81   : > { %v870_v47 = vsel %vm393_vm1, %v701_v39, 0.0  ;;  %v1902_v36 = vunpack.c.l.bf16 %v1382_v19 }
  0x82   : > { %v504_v0 = vadd.f32 %v503_v21, %v502_v57  ;;  %v859_v50 = vadd.f32 %v858_v26, %v857_v46  ;;  %v1865_v21 = vunpack.c.h.bf16 %v1379_v34  ;;  %v864_v61 = vsel %vm393_vm1, %v698_v10, 0.0  ;;  %v1383_v26 = vld [vmem:[%s1456_s15 + $0x118] sm:$0xff]  }
  0x83   : > { %v529_v9 = vsel %vm393_vm1, %v1902_v36, 0.0  ;;  %v705_v10 = vmul.f32 %v1737_v29, %v1737_v29 }
  0x84   : > { %v506_v14 = vadd.f32 %v505_v32, %v504_v0  ;;  %v861_v57 = vadd.f32 %v860_v54, %v859_v50  ;;  %v519_v23 = vsel %vm393_vm1, %v1865_v21, 0.0  ;;  %v700_v32 = vmul.f32 %v1700_v30, %v1700_v30 }
  0x85   : > { %v874_v54 = vsel %vm393_vm1, %v703_v55, 0.0  ;;  %v1917_v50 = vunpack.c.l.bf16 %v1383_v26 }
  0x86   : > { %v508_v24 = vadd.f32 %v507_v42, %v506_v14  ;;  %v863_v2 = vadd.f32 %v862_v33, %v861_v57  ;;  %v1880_v42 = vunpack.c.h.bf16 %v1380_v48  ;;  %v868_v8 = vsel %vm393_vm1, %v700_v32, 0.0 }
  0x87   : > { %v533_v29 = vsel %vm393_vm1, %v1917_v50, 0.0  ;;  %v878_v32 = vsel %vm393_vm1, %v705_v10, 0.0 }
  0x88   : > { %v510_v35 = vadd.f32 %v509_v5, %v508_v24  ;;  %v865_v14 = vadd.f32 %v864_v61, %v863_v2  ;;  %v523_v30 = vsel %vm393_vm1, %v1880_v42, 0.0  ;;  %v702_v5 = vmul.f32 %v1715_v37, %v1715_v37 }
  0x89   : > { %v1932_v2 = vunpack.c.l.bf16 %v1384_v27 }
  0x8a   : > { %v512_v43 = vadd.f32 %v511_v7, %v510_v35  ;;  %v867_v25 = vadd.f32 %v866_v40, %v865_v14  ;;  %v1895_v7 = vunpack.c.h.bf16 %v1381_v63  ;;  %v872_v17 = vsel %vm393_vm1, %v702_v5, 0.0 }
  0x8b   : > { %v707_v63 = vmul.f32 %v1752_v4, %v1752_v4  ;;  %v708_v40 = vmul.f32 %v1760_v58, %v1760_v58  ;;  %v537_v4 = vsel %vm393_vm1, %v1932_v2, 0.0 }
  0x8c   : > { %v514_v49 = vadd.f32 %v513_v60, %v512_v43  ;;  %v869_v35 = vadd.f32 %v868_v8, %v867_v25  ;;  %v527_v37 = vsel %vm393_vm1, %v1895_v7, 0.0  ;;  %v704_v60 = vmul.f32 %v1730_v44, %v1730_v44 }
  0x8d   : > { %v709_v8 = vmul.f32 %v1767_v59, %v1767_v59 }
  0x8e   : > { %v516_v56 = vadd.f32 %v515_v16, %v514_v49  ;;  %v871_v46 = vadd.f32 %v870_v47, %v869_v35  ;;  %v1910_v16 = vunpack.c.h.bf16 %v1382_v19  ;;  %v882_v19 = vsel %vm393_vm1, %v707_v63, 0.0 }
  0x8f   : > { %v710_v47 = vmul.f32 %v1775_v1, %v1775_v1 }
  0x90   : > { %v518_v0 = vadd.f32 %v517_v20, %v516_v56  ;;  %v873_v49 = vadd.f32 %v872_v17, %v871_v46  ;;  %v531_v44 = vsel %vm393_vm1, %v1910_v16, 0.0  ;;  %v876_v20 = vsel %vm393_vm1, %v704_v60, 0.0 }
  0x91   : > { %v706_v56 = vmul.f32 %v1745_v51, %v1745_v51  ;;  %v1385_v51 = vld [vmem:[%s1456_s15 + $0x128] sm:$0xff]   ;;  %v711_v17 = vmul.f32 %v1782_v18, %v1782_v18 }
  0x92   : > { %v520_v11 = vadd.f32 %v519_v23, %v518_v0  ;;  %v875_v57 = vadd.f32 %v874_v54, %v873_v49  ;;  %v1925_v23 = vunpack.c.h.bf16 %v1383_v26  ;;  %v1955_v35 = vunpack.c.h.bf16 %v1385_v51 }
  0x93   : > { %v880_v14 = vsel %vm393_vm1, %v706_v56, 0.0  ;;  %v886_v26 = vsel %vm393_vm1, %v709_v8, 0.0  ;;  %v712_v54 = vmul.f32 %v1790_v13, %v1790_v13  ;;  %v716_v8 = vmul.f32 %v1820_v31, %v1820_v31 }
  0x94   : > { %v522_v24 = vadd.f32 %v521_v41, %v520_v11  ;;  %v877_v0 = vadd.f32 %v876_v20, %v875_v57  ;;  %v535_v41 = vsel %vm393_vm1, %v1925_v23, 0.0  ;;  %v543_v1 = vsel %vm393_vm1, %v1955_v35, 0.0 }
  0x95   : > { %v892_v63 = vsel %vm393_vm1, %v712_v54, 0.0 }
  0x96   : > { %v524_v34 = vadd.f32 %v523_v30, %v522_v24  ;;  %v879_v11 = vadd.f32 %v878_v32, %v877_v0  ;;  %v1940_v30 = vunpack.c.h.bf16 %v1384_v27  ;;  %v1947_v24 = vunpack.c.l.bf16 %v1385_v51 }
  0x97   : > { %v713_v27 = vmul.f32 %v1797_v38, %v1797_v38 }
  0x98   : > { %v526_v43 = vadd.f32 %v525_v53, %v524_v34  ;;  %v539_v58 = vsel %vm393_vm1, %v1940_v30, 0.0  ;;  %v881_v25 = vadd.f32 %v880_v14, %v879_v11  ;;  %v1386_v53 = vld [vmem:[%s1456_s15 + $0x130] sm:$0xff]   ;;  %v884_v34 = vsel %vm393_vm1, %v708_v40, 0.0 }
  0x99   : > { %v541_v59 = vsel %vm393_vm1, %v1947_v24, 0.0  ;;  %v1970_v49 = vunpack.c.h.bf16 %v1386_v53  ;;  %v894_v40 = vsel %vm393_vm1, %v713_v27, 0.0  ;;  %v720_v27 = vmul.f32 %v1850_v62, %v1850_v62 }
  0x9a   : > { %v528_v48 = vadd.f32 %v527_v37, %v526_v43  ;;  %v883_v37 = vadd.f32 %v882_v19, %v881_v25  ;;  %v1962_v43 = vunpack.c.l.bf16 %v1386_v53 }
  0x9b   : > { %v547_v13 = vsel %vm393_vm1, %v1970_v49, 0.0 }
  0x9c   : > { %v530_v33 = vadd.f32 %v529_v9, %v528_v48  ;;  %v885_v46 = vadd.f32 %v884_v34, %v883_v37  ;;  %v1387_v9 = vld [vmem:[%s1456_s15 + $0x138] sm:$0xff]   ;;  %v888_v48 = vsel %vm393_vm1, %v710_v47, 0.0  ;;  %v545_v18 = vsel %vm393_vm1, %v1962_v43, 0.0  ;;  %v1390_v37 = vld [vmem:[%s1456_s15 + $0x150] sm:$0xff]  }
  0x9d   : > { %v1977_v56 = vunpack.c.l.bf16 %v1387_v9  ;;  %v1985_v0 = vunpack.c.h.bf16 %v1387_v9 }
  0x9e   : > { %v532_v61 = vadd.f32 %v531_v44, %v530_v33  ;;  %v887_v44 = vadd.f32 %v886_v26, %v885_v46  ;;  %v890_v33 = vsel %vm393_vm1, %v711_v17, 0.0  ;;  %v718_v17 = vmul.f32 %v1835_v45, %v1835_v45 }
  0x9f   : > { %v549_v38 = vsel %vm393_vm1, %v1977_v56, 0.0  ;;  %v900_v26 = vsel %vm393_vm1, %v716_v8, 0.0 }
  0xa0   : > { %v534_v39 = vadd.f32 %v533_v29, %v532_v61  ;;  %v889_v57 = vadd.f32 %v888_v48, %v887_v44  ;;  %v1388_v29 = vld [vmem:[%s1456_s15 + $0x140] sm:$0xff]   ;;  %v714_v61 = vmul.f32 %v1805_v22, %v1805_v22  ;;  %v551_v22 = vsel %vm393_vm1, %v1985_v0, 0.0  ;;  %v1391_v44 = vld [vmem:[%s1456_s15 + $0x158] sm:$0xff]  }
  0xa1   : > { %v1992_v11 = vunpack.c.l.bf16 %v1388_v29  ;;  %v2022_v48 = vunpack.c.l.bf16 %v1390_v37 }
  0xa2   : > { %v536_v5 = vadd.f32 %v535_v41, %v534_v39  ;;  %v891_v41 = vadd.f32 %v890_v33, %v889_v57  ;;  %v715_v39 = vmul.f32 %v1812_v52, %v1812_v52  ;;  %v896_v19 = vsel %vm393_vm1, %v714_v61, 0.0 }
  0xa3   : > { %v553_v52 = vsel %vm393_vm1, %v1992_v11, 0.0  ;;  %v904_v33 = vsel %vm393_vm1, %v718_v17, 0.0 }
  0xa4   : > { %v538_v55 = vadd.f32 %v537_v4, %v536_v5  ;;  %v893_v14 = vadd.f32 %v892_v63, %v891_v41  ;;  %v1389_v4 = vld [vmem:[%s1456_s15 + $0x148] sm:$0xff]   ;;  %v898_v47 = vsel %vm393_vm1, %v715_v39, 0.0  ;;  %v2037_v63 = vunpack.c.l.bf16 %v1391_v44  ;;  %v1392_v41 = vld [vmem:[%s1456_s15 + $0x160] sm:$0xff]  }
  0xa5   : > { %v2007_v34 = vunpack.c.l.bf16 %v1389_v4  ;;  %v722_v39 = vmul.f32 %v1865_v21, %v1865_v21 }
  0xa6   : > { %v540_v60 = vadd.f32 %v539_v58, %v538_v55  ;;  %v2000_v58 = vunpack.c.h.bf16 %v1388_v29  ;;  %v895_v25 = vadd.f32 %v894_v40, %v893_v14  ;;  %v717_v55 = vmul.f32 %v1827_v6, %v1827_v6 }
  0xa7   : > { %v557_v6 = vsel %vm393_vm1, %v2007_v34, 0.0  ;;  %v908_v40 = vsel %vm393_vm1, %v720_v27, 0.0 }
  0xa8   : > { %v542_v10 = vadd.f32 %v541_v59, %v540_v60  ;;  %v555_v31 = vsel %vm393_vm1, %v2000_v58, 0.0  ;;  %v897_v59 = vadd.f32 %v896_v19, %v895_v25  ;;  %v902_v54 = vsel %vm393_vm1, %v717_v55, 0.0  ;;  %v1393_v25 = vld [vmem:[%s1456_s15 + $0x168] sm:$0xff]  }
  0xa9   : > { %v2052_v19 = vunpack.c.l.bf16 %v1392_v41  ;;  %v724_v55 = vmul.f32 %v1880_v42, %v1880_v42 }
  0xaa   : > { %v544_v20 = vadd.f32 %v543_v1, %v542_v10  ;;  %v2015_v1 = vunpack.c.h.bf16 %v1389_v4  ;;  %v899_v46 = vadd.f32 %v898_v47, %v897_v59  ;;  %v719_v10 = vmul.f32 %v1842_v28, %v1842_v28 }
  0xab   : > { %v561_v28 = vsel %vm393_vm1, %v2022_v48, 0.0  ;;  %v912_v47 = vsel %vm393_vm1, %v722_v39, 0.0 }
  0xac   : > { %v546_v32 = vadd.f32 %v545_v18, %v544_v20  ;;  %v559_v45 = vsel %vm393_vm1, %v2015_v1, 0.0  ;;  %v901_v18 = vadd.f32 %v900_v26, %v899_v46  ;;  %v906_v61 = vsel %vm393_vm1, %v719_v10, 0.0  ;;  %v1394_v46 = vld [vmem:[%s1456_s15 + $0x170] sm:$0xff]  }
  0xad   : > { %v2067_v26 = vunpack.c.l.bf16 %v1393_v25  ;;  %v726_v10 = vmul.f32 %v1895_v7, %v1895_v7 }
  0xae   : > { %v548_v51 = vadd.f32 %v547_v13, %v546_v32  ;;  %v2030_v13 = vunpack.c.h.bf16 %v1390_v37  ;;  %v903_v57 = vadd.f32 %v902_v54, %v901_v18  ;;  %v721_v32 = vmul.f32 %v1857_v3, %v1857_v3 }
  0xaf   : > { %v565_v3 = vsel %vm393_vm1, %v2037_v63, 0.0  ;;  %v916_v54 = vsel %vm393_vm1, %v724_v55, 0.0 }
  0xb0   : > { %v550_v5 = vadd.f32 %v549_v38, %v548_v51  ;;  %v563_v62 = vsel %vm393_vm1, %v2030_v13, 0.0  ;;  %v905_v38 = vadd.f32 %v904_v33, %v903_v57  ;;  %v910_v8 = vsel %vm393_vm1, %v721_v32, 0.0  ;;  %v1395_v57 = vld [vmem:[%s1456_s15 + $0x178] sm:$0xff]  }
  0xb1   : > { %v2082_v33 = vunpack.c.l.bf16 %v1394_v46  ;;  %v728_v32 = vmul.f32 %v1910_v16, %v1910_v16 }
  0xb2   : > { %v552_v53 = vadd.f32 %v551_v22, %v550_v5  ;;  %v2045_v22 = vunpack.c.h.bf16 %v1391_v44  ;;  %v907_v14 = vadd.f32 %v906_v61, %v905_v38  ;;  %v723_v5 = vmul.f32 %v1872_v12, %v1872_v12 }
  0xb3   : > { %v569_v12 = vsel %vm393_vm1, %v2052_v19, 0.0  ;;  %v920_v61 = vsel %vm393_vm1, %v726_v10, 0.0 }
  0xb4   : > { %v554_v60 = vadd.f32 %v553_v52, %v552_v53  ;;  %v567_v21 = vsel %vm393_vm1, %v2045_v22, 0.0  ;;  %v909_v52 = vadd.f32 %v908_v40, %v907_v14  ;;  %v914_v17 = vsel %vm393_vm1, %v723_v5, 0.0  ;;  %v1396_v14 = vld [vmem:[%s1456_s15 + $0x180] sm:$0xff]  }
  0xb5   : > { %v2097_v40 = vunpack.c.l.bf16 %v1395_v57  ;;  %v730_v5 = vmul.f32 %v1925_v23, %v1925_v23 }
  0xb6   : > { %v556_v9 = vadd.f32 %v555_v31, %v554_v60  ;;  %v2060_v31 = vunpack.c.h.bf16 %v1392_v41  ;;  %v911_v59 = vadd.f32 %v910_v8, %v909_v52  ;;  %v725_v60 = vmul.f32 %v1887_v15, %v1887_v15 }
  0xb7   : > { %v573_v15 = vsel %vm393_vm1, %v2067_v26, 0.0  ;;  %v924_v8 = vsel %vm393_vm1, %v728_v32, 0.0 }
  0xb8   : > { %v558_v20 = vadd.f32 %v557_v6, %v556_v9  ;;  %v571_v42 = vsel %vm393_vm1, %v2060_v31, 0.0  ;;  %v913_v6 = vadd.f32 %v912_v47, %v911_v59  ;;  %v918_v27 = vsel %vm393_vm1, %v725_v60, 0.0  ;;  %v1397_v59 = vld [vmem:[%s1456_s15 + $0x188] sm:$0xff]  }
  0xb9   : > { %v2112_v47 = vunpack.c.l.bf16 %v1396_v14  ;;  %v732_v60 = vmul.f32 %v1940_v30, %v1940_v30 }
  0xba   : > { %v560_v29 = vadd.f32 %v559_v45, %v558_v20  ;;  %v2075_v45 = vunpack.c.h.bf16 %v1393_v25  ;;  %v915_v18 = vadd.f32 %v914_v17, %v913_v6  ;;  %v727_v20 = vmul.f32 %v1902_v36, %v1902_v36 }
  0xbb   : > { %v577_v36 = vsel %vm393_vm1, %v2082_v33, 0.0  ;;  %v928_v17 = vsel %vm393_vm1, %v730_v5, 0.0 }
  0xbc   : > { %v562_v51 = vadd.f32 %v561_v28, %v560_v29  ;;  %v575_v7 = vsel %vm393_vm1, %v2075_v45, 0.0  ;;  %v917_v28 = vadd.f32 %v916_v54, %v915_v18  ;;  %v922_v39 = vsel %vm393_vm1, %v727_v20, 0.0  ;;  %v1398_v18 = vld [vmem:[%s1456_s15 + $0x190] sm:$0xff]  }
  0xbd   : > { %v2127_v54 = vunpack.c.l.bf16 %v1397_v59  ;;  %v734_v20 = vmul.f32 %v1955_v35, %v1955_v35 }
  0xbe   : > { %v564_v4 = vadd.f32 %v563_v62, %v562_v51  ;;  %v2090_v62 = vunpack.c.h.bf16 %v1394_v46  ;;  %v919_v38 = vadd.f32 %v918_v27, %v917_v28  ;;  %v729_v51 = vmul.f32 %v1917_v50, %v1917_v50 }
  0xbf   : > { %v581_v50 = vsel %vm393_vm1, %v2097_v40, 0.0  ;;  %v932_v27 = vsel %vm393_vm1, %v732_v60, 0.0 }
  0xc0   : > { %v566_v53 = vadd.f32 %v565_v3, %v564_v4  ;;  %v579_v16 = vsel %vm393_vm1, %v2090_v62, 0.0  ;;  %v921_v3 = vadd.f32 %v920_v61, %v919_v38  ;;  %v926_v55 = vsel %vm393_vm1, %v729_v51, 0.0  ;;  %v1399_v38 = vld [vmem:[%s1456_s15 + $0x198] sm:$0xff]  }
  0xc1   : > { %v2142_v61 = vunpack.c.l.bf16 %v1398_v18  ;;  %v736_v51 = vmul.f32 %v1970_v49, %v1970_v49 }
  0xc2   : > { %v568_v37 = vadd.f32 %v567_v21, %v566_v53  ;;  %v2105_v21 = vunpack.c.h.bf16 %v1395_v57  ;;  %v923_v52 = vadd.f32 %v922_v39, %v921_v3  ;;  %v731_v53 = vmul.f32 %v1932_v2, %v1932_v2 }
  0xc3   : > { %v585_v2 = vsel %vm393_vm1, %v2112_v47, 0.0  ;;  %v936_v39 = vsel %vm393_vm1, %v734_v20, 0.0 }
  0xc4   : > { %v570_v9 = vadd.f32 %v569_v12, %v568_v37  ;;  %v583_v23 = vsel %vm393_vm1, %v2105_v21, 0.0  ;;  %v925_v12 = vadd.f32 %v924_v8, %v923_v52  ;;  %v930_v10 = vsel %vm393_vm1, %v731_v53, 0.0  ;;  %v1400_v52 = vld [vmem:[%s1456_s15 + $0x1a0] sm:$0xff]  }
  0xc5   : > { %v2157_v8 = vunpack.c.l.bf16 %v1399_v38  ;;  %v738_v53 = vmul.f32 %v1985_v0, %v1985_v0 }
  0xc6   : > { %v572_v44 = vadd.f32 %v571_v42, %v570_v9  ;;  %v2120_v42 = vunpack.c.h.bf16 %v1396_v14  ;;  %v927_v6 = vadd.f32 %v926_v55, %v925_v12  ;;  %v733_v9 = vmul.f32 %v1947_v24, %v1947_v24 }
  0xc7   : > { %v589_v24 = vsel %vm393_vm1, %v2127_v54, 0.0  ;;  %v940_v55 = vsel %vm393_vm1, %v736_v51, 0.0 }
  0xc8   : > { %v574_v29 = vadd.f32 %v573_v15, %v572_v44  ;;  %v587_v30 = vsel %vm393_vm1, %v2120_v42, 0.0  ;;  %v929_v15 = vadd.f32 %v928_v17, %v927_v6  ;;  %v934_v32 = vsel %vm393_vm1, %v733_v9, 0.0  ;;  %v1401_v6 = vld [vmem:[%s1456_s15 + $0x1a8] sm:$0xff]  }
  0xc9   : > { %v2172_v17 = vunpack.c.l.bf16 %v1400_v52  ;;  %v740_v9 = vmul.f32 %v2000_v58, %v2000_v58 }
  0xca   : > { %v576_v41 = vadd.f32 %v575_v7, %v574_v29  ;;  %v2135_v7 = vunpack.c.h.bf16 %v1397_v59  ;;  %v931_v28 = vadd.f32 %v930_v10, %v929_v15  ;;  %v735_v29 = vmul.f32 %v1962_v43, %v1962_v43 }
  0xcb   : > { %v593_v43 = vsel %vm393_vm1, %v2142_v61, 0.0  ;;  %v944_v10 = vsel %vm393_vm1, %v738_v53, 0.0 }
  0xcc   : > { %v578_v4 = vadd.f32 %v577_v36, %v576_v41  ;;  %v591_v35 = vsel %vm393_vm1, %v2135_v7, 0.0  ;;  %v933_v36 = vadd.f32 %v932_v27, %v931_v28  ;;  %v938_v5 = vsel %vm393_vm1, %v735_v29, 0.0  ;;  %v1402_v28 = vld [vmem:[%s1456_s15 + $0x1b0] sm:$0xff]  }
  0xcd   : > { %v2187_v27 = vunpack.c.l.bf16 %v1401_v6  ;;  %v742_v29 = vmul.f32 %v2015_v1, %v2015_v1 }
  0xce   : > { %v580_v25 = vadd.f32 %v579_v16, %v578_v4  ;;  %v2150_v16 = vunpack.c.h.bf16 %v1398_v18  ;;  %v935_v3 = vadd.f32 %v934_v32, %v933_v36  ;;  %v737_v4 = vmul.f32 %v1977_v56, %v1977_v56 }
  0xcf   : > { %v597_v56 = vsel %vm393_vm1, %v2157_v8, 0.0  ;;  %v948_v32 = vsel %vm393_vm1, %v740_v9, 0.0 }
  0xd0   : > { %v582_v37 = vadd.f32 %v581_v50, %v580_v25  ;;  %v595_v49 = vsel %vm393_vm1, %v2150_v16, 0.0  ;;  %v937_v50 = vadd.f32 %v936_v39, %v935_v3  ;;  %v942_v60 = vsel %vm393_vm1, %v737_v4, 0.0  ;;  %v1403_v3 = vld [vmem:[%s1456_s15 + $0x1b8] sm:$0xff]  }
  0xd1   : > { %v2202_v39 = vunpack.c.l.bf16 %v1402_v28  ;;  %v744_v4 = vmul.f32 %v2030_v13, %v2030_v13 }
  0xd2   : > { %v584_v46 = vadd.f32 %v583_v23, %v582_v37  ;;  %v2165_v23 = vunpack.c.h.bf16 %v1399_v38  ;;  %v939_v12 = vadd.f32 %v938_v5, %v937_v50  ;;  %v739_v37 = vmul.f32 %v1992_v11, %v1992_v11 }
  0xd3   : > { %v601_v11 = vsel %vm393_vm1, %v2172_v17, 0.0  ;;  %v952_v5 = vsel %vm393_vm1, %v742_v29, 0.0 }
  0xd4   : > { %v586_v44 = vadd.f32 %v585_v2, %v584_v46  ;;  %v599_v0 = vsel %vm393_vm1, %v2165_v23, 0.0  ;;  %v941_v2 = vadd.f32 %v940_v55, %v939_v12  ;;  %v946_v20 = vsel %vm393_vm1, %v739_v37, 0.0  ;;  %v1404_v12 = vld [vmem:[%s1456_s15 + $0x1c0] sm:$0xff]  }
  0xd5   : > { %v2217_v55 = vunpack.c.l.bf16 %v1403_v3  ;;  %v746_v37 = vmul.f32 %v2045_v22, %v2045_v22 }
  0xd6   : > { %v588_v57 = vadd.f32 %v587_v30, %v586_v44  ;;  %v2180_v30 = vunpack.c.h.bf16 %v1400_v52  ;;  %v943_v15 = vadd.f32 %v942_v60, %v941_v2  ;;  %v741_v44 = vmul.f32 %v2007_v34, %v2007_v34 }
  0xd7   : > { %v605_v34 = vsel %vm393_vm1, %v2187_v27, 0.0  ;;  %v956_v60 = vsel %vm393_vm1, %v744_v4, 0.0 }
  0xd8   : > { %v590_v41 = vadd.f32 %v589_v24, %v588_v57  ;;  %v603_v58 = vsel %vm393_vm1, %v2180_v30, 0.0  ;;  %v945_v24 = vadd.f32 %v944_v10, %v943_v15  ;;  %v950_v51 = vsel %vm393_vm1, %v741_v44, 0.0  ;;  %v1405_v15 = vld [vmem:[%s1456_s15 + $0x1c8] sm:$0xff]  }
  0xd9   : > { %v2232_v10 = vunpack.c.l.bf16 %v1404_v12  ;;  %v748_v44 = vmul.f32 %v2060_v31, %v2060_v31 }
  0xda   : > { %v592_v14 = vadd.f32 %v591_v35, %v590_v41  ;;  %v2195_v35 = vunpack.c.h.bf16 %v1401_v6  ;;  %v947_v36 = vadd.f32 %v946_v20, %v945_v24  ;;  %v743_v41 = vmul.f32 %v2022_v48, %v2022_v48 }
  0xdb   : > { %v609_v48 = vsel %vm393_vm1, %v2202_v39, 0.0  ;;  %v960_v20 = vsel %vm393_vm1, %v746_v37, 0.0 }
  0xdc   : > { %v594_v25 = vadd.f32 %v593_v43, %v592_v14  ;;  %v607_v1 = vsel %vm393_vm1, %v2195_v35, 0.0  ;;  %v949_v43 = vadd.f32 %v948_v32, %v947_v36  ;;  %v954_v53 = vsel %vm393_vm1, %v743_v41, 0.0  ;;  %v1406_v36 = vld [vmem:[%s1456_s15 + $0x1d0] sm:$0xff]  }
  0xdd   : > { %v2247_v32 = vunpack.c.l.bf16 %v1405_v15  ;;  %v750_v41 = vmul.f32 %v2075_v45, %v2075_v45 }
  0xde   : > { %v596_v59 = vadd.f32 %v595_v49, %v594_v25  ;;  %v2210_v49 = vunpack.c.h.bf16 %v1402_v28  ;;  %v951_v50 = vadd.f32 %v950_v51, %v949_v43  ;;  %v745_v25 = vmul.f32 %v2037_v63, %v2037_v63 }
  0xdf   : > { %v613_v63 = vsel %vm393_vm1, %v2217_v55, 0.0  ;;  %v964_v51 = vsel %vm393_vm1, %v748_v44, 0.0 }
  0xe0   : > { %v598_v46 = vadd.f32 %v597_v56, %v596_v59  ;;  %v611_v13 = vsel %vm393_vm1, %v2210_v49, 0.0  ;;  %v953_v56 = vadd.f32 %v952_v5, %v951_v50  ;;  %v958_v9 = vsel %vm393_vm1, %v745_v25, 0.0  ;;  %v1407_v50 = vld [vmem:[%s1456_s15 + $0x1d8] sm:$0xff]  }
  0xe1   : > { %v2262_v5 = vunpack.c.l.bf16 %v1406_v36  ;;  %v752_v25 = vmul.f32 %v2090_v62, %v2090_v62 }
  0xe2   : > { %v600_v18 = vadd.f32 %v599_v0, %v598_v46  ;;  %v2225_v0 = vunpack.c.h.bf16 %v1403_v3  ;;  %v955_v2 = vadd.f32 %v954_v53, %v953_v56  ;;  %v747_v46 = vmul.f32 %v2052_v19, %v2052_v19 }
  0xe3   : > { %v617_v19 = vsel %vm393_vm1, %v2232_v10, 0.0  ;;  %v968_v53 = vsel %vm393_vm1, %v750_v41, 0.0 }
  0xe4   : > { %v602_v57 = vadd.f32 %v601_v11, %v600_v18  ;;  %v615_v22 = vsel %vm393_vm1, %v2225_v0, 0.0  ;;  %v957_v11 = vadd.f32 %v956_v60, %v955_v2  ;;  %v962_v29 = vsel %vm393_vm1, %v747_v46, 0.0  ;;  %v1408_v2 = vld [vmem:[%s1456_s15 + $0x1e0] sm:$0xff]  }
  0xe5   : > { %v2277_v60 = vunpack.c.l.bf16 %v1407_v50  ;;  %v754_v46 = vmul.f32 %v2105_v21, %v2105_v21 }
  0xe6   : > { %v604_v38 = vadd.f32 %v603_v58, %v602_v57  ;;  %v2240_v58 = vunpack.c.h.bf16 %v1404_v12  ;;  %v959_v24 = vadd.f32 %v958_v9, %v957_v11  ;;  %v749_v57 = vmul.f32 %v2067_v26, %v2067_v26 }
  0xe7   : > { %v621_v26 = vsel %vm393_vm1, %v2247_v32, 0.0  ;;  %v972_v9 = vsel %vm393_vm1, %v752_v25, 0.0 }
  0xe8   : > { %v606_v14 = vadd.f32 %v605_v34, %v604_v38  ;;  %v619_v31 = vsel %vm393_vm1, %v2240_v58, 0.0  ;;  %v961_v34 = vadd.f32 %v960_v20, %v959_v24  ;;  %v966_v4 = vsel %vm393_vm1, %v749_v57, 0.0  ;;  %v1409_v24 = vld [vmem:[%s1456_s15 + $0x1e8] sm:$0xff]  }
  0xe9   : > { %v2292_v20 = vunpack.c.l.bf16 %v1408_v2  ;;  %v756_v57 = vmul.f32 %v2120_v42, %v2120_v42 }
  0xea   : > { %v608_v52 = vadd.f32 %v607_v1, %v606_v14  ;;  %v2255_v1 = vunpack.c.h.bf16 %v1405_v15  ;;  %v963_v43 = vadd.f32 %v962_v29, %v961_v34  ;;  %v751_v14 = vmul.f32 %v2082_v33, %v2082_v33 }
  0xeb   : > { %v625_v33 = vsel %vm393_vm1, %v2262_v5, 0.0  ;;  %v976_v29 = vsel %vm393_vm1, %v754_v46, 0.0 }
  0xec   : > { %v610_v59 = vadd.f32 %v609_v48, %v608_v52  ;;  %v623_v45 = vsel %vm393_vm1, %v2255_v1, 0.0  ;;  %v965_v48 = vadd.f32 %v964_v51, %v963_v43  ;;  %v970_v37 = vsel %vm393_vm1, %v751_v14, 0.0  ;;  %v1410_v43 = vld [vmem:[%s1456_s15 + $0x1f0] sm:$0xff]  }
  0xed   : > { %v2307_v51 = vunpack.c.l.bf16 %v1409_v24  ;;  %v758_v14 = vmul.f32 %v2135_v7, %v2135_v7 }
  0xee   : > { %v612_v6 = vadd.f32 %v611_v13, %v610_v59  ;;  %v2270_v13 = vunpack.c.h.bf16 %v1406_v36  ;;  %v967_v56 = vadd.f32 %v966_v4, %v965_v48  ;;  %v753_v59 = vmul.f32 %v2097_v40, %v2097_v40 }
  0xef   : > { %v629_v40 = vsel %vm393_vm1, %v2277_v60, 0.0  ;;  %v980_v4 = vsel %vm393_vm1, %v756_v57, 0.0 }
  0xf0   : > { %v614_v18 = vadd.f32 %v613_v63, %v612_v6  ;;  %v627_v62 = vsel %vm393_vm1, %v2270_v13, 0.0  ;;  %v969_v63 = vadd.f32 %v968_v53, %v967_v56  ;;  %v974_v44 = vsel %vm393_vm1, %v753_v59, 0.0  ;;  %v1411_v56 = vld [vmem:[%s1456_s15 + $0x1f8] sm:$0xff]  }
  0xf1   : > { %v2322_v53 = vunpack.c.l.bf16 %v1410_v43  ;;  %v760_v59 = vmul.f32 %v2150_v16, %v2150_v16 }
  0xf2   : > { %v616_v28 = vadd.f32 %v615_v22, %v614_v18  ;;  %v2285_v22 = vunpack.c.h.bf16 %v1407_v50  ;;  %v971_v11 = vadd.f32 %v970_v37, %v969_v63  ;;  %v755_v18 = vmul.f32 %v2112_v47, %v2112_v47 }
  0xf3   : > { %v633_v47 = vsel %vm393_vm1, %v2292_v20, 0.0  ;;  %v984_v37 = vsel %vm393_vm1, %v758_v14, 0.0 }
  0xf4   : > { %v618_v38 = vadd.f32 %v617_v19, %v616_v28  ;;  %v631_v21 = vsel %vm393_vm1, %v2285_v22, 0.0  ;;  %v973_v19 = vadd.f32 %v972_v9, %v971_v11  ;;  %v978_v41 = vsel %vm393_vm1, %v755_v18, 0.0 }
  0xf5   : > { %v2337_v9 = vunpack.c.l.bf16 %v1411_v56  ;;  %v988_v18 = vsel %vm393_vm1, %v760_v59, 0.0 }
  0xf6   : > { %v620_v3 = vadd.f32 %v619_v31, %v618_v38  ;;  %v2300_v31 = vunpack.c.h.bf16 %v1408_v2  ;;  %v975_v34 = vadd.f32 %v974_v44, %v973_v19  ;;  %v757_v38 = vmul.f32 %v2127_v54, %v2127_v54 }
  0xf7   : > { %v637_v54 = vsel %vm393_vm1, %v2307_v51, 0.0  ;;  %v2344_v44 = vunpack.c.h.bf16 %v1411_v56 }
  0xf8   : > { %v622_v52 = vadd.f32 %v621_v26, %v620_v3  ;;  %v635_v42 = vsel %vm393_vm1, %v2300_v31, 0.0  ;;  %v977_v26 = vadd.f32 %v976_v29, %v975_v34  ;;  %v982_v25 = vsel %vm393_vm1, %v757_v38, 0.0 }
  0xf9   : > { %v647_v57 = vsel %vm393_vm1, %v2344_v44, 0.0 }
  0xfa   : > { %v624_v12 = vadd.f32 %v623_v45, %v622_v52  ;;  %v2315_v45 = vunpack.c.h.bf16 %v1409_v24  ;;  %v979_v48 = vadd.f32 %v978_v41, %v977_v26  ;;  %v759_v52 = vmul.f32 %v2142_v61, %v2142_v61 }
  0xfb   : > { %v641_v61 = vsel %vm393_vm1, %v2322_v53, 0.0  ;;  %v763_v24 = vmul.f32 %v2172_v17, %v2172_v17  ;;  %v765_v41 = vmul.f32 %v2187_v27, %v2187_v27  ;;  %v768_v27 = vmul.f32 %v2210_v49, %v2210_v49  ;;  %v392_v49 = vld [vmem:[%s2442_s1] sm:$0x1] }
  0xfc   : > { %v626_v6 = vadd.f32 %v625_v33, %v624_v12  ;;  %v639_v33 = vsel %vm393_vm1, %v2315_v45, 0.0  ;;  %v981_v7 = vadd.f32 %v980_v4, %v979_v48  ;;  %v986_v46 = vsel %vm393_vm1, %v759_v52, 0.0 }
  0xfd   : > { %v1004_v59 = vsel %vm393_vm1, %v768_v27, 0.0 }
  0xfe   : > { %v628_v15 = vadd.f32 %v627_v62, %v626_v6  ;;  %v2330_v62 = vunpack.c.h.bf16 %v1410_v43  ;;  %v983_v63 = vadd.f32 %v982_v25, %v981_v7  ;;  %v761_v6 = vmul.f32 %v2157_v8, %v2157_v8 }
  0xff   : > { %v766_v43 = vmul.f32 %v2195_v35, %v2195_v35  ;;  %v769_v35 = vmul.f32 %v2217_v55, %v2217_v55 }
 0x100   : > { %v630_v28 = vadd.f32 %v629_v40, %v628_v15  ;;  %v643_v40 = vsel %vm393_vm1, %v2330_v62, 0.0  ;;  %v985_v16 = vadd.f32 %v984_v37, %v983_v63  ;;  %v762_v15 = vmul.f32 %v2165_v23, %v2165_v23 }
 0x101   : > { %v764_v23 = vmul.f32 %v2180_v30, %v2180_v30  ;;  %v767_v30 = vmul.f32 %v2202_v39, %v2202_v39  ;;  %v1000_v52 = vsel %vm393_vm1, %v766_v43, 0.0  ;;  %v770_v39 = vmul.f32 %v2225_v0, %v2225_v0 }
 0x102   : > { %v632_v36 = vadd.f32 %v631_v21, %v630_v28  ;;  %v645_v21 = vsel %vm393_vm1, %v2337_v9, 0.0  ;;  %v987_v8 = vadd.f32 %v986_v46, %v985_v16  ;;  %v990_v28 = vsel %vm393_vm1, %v761_v6, 0.0 }
 0x103   : > { %v992_v34 = vsel %vm393_vm1, %v762_v15, 0.0  ;;  %v1002_v7 = vsel %vm393_vm1, %v767_v30, 0.0  ;;  %v771_v63 = vmul.f32 %v2232_v10, %v2232_v10  ;;  %v1006_v55 = vsel %vm393_vm1, %v769_v35, 0.0 }
 0x104   : > { %v634_v3 = vadd.f32 %v633_v47, %v632_v36  ;;  %v989_v29 = vadd.f32 %v988_v18, %v987_v8  ;;  %v772_v46 = vmul.f32 %v2240_v58, %v2240_v58  ;;  %v1008_v0 = vsel %vm393_vm1, %v770_v39, 0.0 }
 0x105   : > { %v773_v16 = vmul.f32 %v2247_v32, %v2247_v32  ;;  %v1010_v10 = vsel %vm393_vm1, %v771_v63, 0.0  ;;  %v774_v15 = vmul.f32 %v2255_v1, %v2255_v1 }
 0x106   : > { %v636_v50 = vadd.f32 %v635_v42, %v634_v3  ;;  %v991_v36 = vadd.f32 %v990_v28, %v989_v29  ;;  %v994_v42 = vsel %vm393_vm1, %v763_v24, 0.0  ;;  %v996_v3 = vsel %vm393_vm1, %v764_v23, 0.0 }
 0x107   : > { %v1012_v18 = vsel %vm393_vm1, %v772_v46, 0.0  ;;  %v1014_v8 = vsel %vm393_vm1, %v773_v16, 0.0  ;;  %v776_v24 = vmul.f32 %v2270_v13, %v2270_v13  ;;  %v1016_v32 = vsel %vm393_vm1, %v774_v15, 0.0 }
 0x108   : > { %v638_v12 = vadd.f32 %v637_v54, %v636_v50  ;;  %v993_v17 = vadd.f32 %v992_v34, %v991_v36  ;;  %v998_v54 = vsel %vm393_vm1, %v765_v41, 0.0  ;;  %v779_v34 = vmul.f32 %v2292_v20, %v2292_v20 }
 0x10a   : > { %v640_v2 = vadd.f32 %v639_v33, %v638_v12  ;;  %v995_v14 = vadd.f32 %v994_v42, %v993_v17  ;;  %v781_v42 = vmul.f32 %v2307_v51, %v2307_v51 }
 0x10c   : > { %v642_v11 = vadd.f32 %v641_v61, %v640_v2  ;;  %v997_v48 = vadd.f32 %v996_v3, %v995_v14  ;;  %v783_v3 = vmul.f32 %v2322_v53, %v2322_v53 }
 0x10e   : > { %v644_v19 = vadd.f32 %v643_v40, %v642_v11  ;;  %v999_v25 = vadd.f32 %v998_v54, %v997_v48  ;;  %v785_v54 = vmul.f32 %v2337_v9, %v2337_v9 }
 0x110   : > { %v646_v47 = vadd.f32 %v645_v21, %v644_v19  ;;  %v1001_v56 = vadd.f32 %v1000_v52, %v999_v25  ;;  %v775_v21 = vmul.f32 %v2262_v5, %v2262_v5  ;;  %v1020_v5 = vsel %vm393_vm1, %v776_v24, 0.0 }
 0x111   : > { %v1038_v52 = vsel %vm393_vm1, %v785_v54, 0.0 }
 0x112   : > { %v648_v38 = vadd.f32 %v647_v57, %v646_v47  ;;  %v1003_v37 = vadd.f32 %v1002_v7, %v1001_v56  ;;  %v777_v57 = vmul.f32 %v2277_v60, %v2277_v60  ;;  %v1018_v1 = vsel %vm393_vm1, %v775_v21, 0.0 }
 0x113   : > { %v778_v47 = vmul.f32 %v2285_v22, %v2285_v22  ;;  %v1026_v22 = vsel %vm393_vm1, %v779_v34, 0.0 }
 0x114   : > { %v649_v26 = vrot.slane %v648_v38, 4  ;;  %v1005_v2 = vadd.f32 %v1004_v59, %v1003_v37  ;;  %v1022_v13 = vsel %vm393_vm1, %v777_v57, 0.0  ;;  %v658_v59 = vld [vmem:[%s2443_s2] sm:$0x1] }
 0x115   : > { %v1024_v60 = vsel %vm393_vm1, %v778_v47, 0.0 }
 0x116   : > { %v650_v4 = vadd.f32 %v649_v26, %v648_v38  ;;  %v1007_v40 = vadd.f32 %v1006_v55, %v1005_v2  ;;  %v780_v38 = vmul.f32 %v2300_v31, %v2300_v31  ;;  %v782_v26 = vmul.f32 %v2315_v45, %v2315_v45 }
 0x117   : > { %v1030_v31 = vsel %vm393_vm1, %v781_v42, 0.0  ;;  %v1034_v45 = vsel %vm393_vm1, %v783_v3, 0.0 }
 0x118   : > { %v651_v50 = vrot.slane %v650_v4, 2  ;;  %v1009_v11 = vadd.f32 %v1008_v0, %v1007_v40  ;;  %v1028_v20 = vsel %vm393_vm1, %v780_v38, 0.0  ;;  %v1032_v51 = vsel %vm393_vm1, %v782_v26, 0.0 }
 0x11a   : > { %v652_v33 = vadd.f32 %v651_v50, %v650_v4  ;;  %v1011_v58 = vadd.f32 %v1010_v10, %v1009_v11  ;;  %v784_v4 = vmul.f32 %v2330_v62, %v2330_v62  ;;  %v786_v50 = vmul.f32 %v2344_v44, %v2344_v44 }
 0x11c   : > { %v653_v12 = vrot.slane %v652_v33, 1  ;;  %v1013_v19 = vadd.f32 %v1012_v18, %v1011_v58  ;;  %v1036_v53 = vsel %vm393_vm1, %v784_v4, 0.0  ;;  %v1040_v62 = vsel %vm393_vm1, %v786_v50, 0.0 }
 0x11e   : > { %v654_v61 = vadd.f32 %v653_v12, %v652_v33  ;;  %v1015_v28 = vadd.f32 %v1014_v8, %v1013_v19 }
 0x120   : > { %v655_v6 = vadd.f32 %v654_v61, %v392_v49  ;;  %v1017_v29 = vadd.f32 %v1016_v32, %v1015_v28 }
 0x122   : > { %657 = vst.msk [vmem:[%s2442_s1] sm:$0x1] %vm656_vm2, %v655_v6  ;;  %v1019_v23 = vadd.f32 %v1018_v1, %v1017_v29 }
 0x124   : > { %v1021_v36 = vadd.f32 %v1020_v5, %v1019_v23 }
 0x126   : > { %v1023_v41 = vadd.f32 %v1022_v13, %v1021_v36 }
 0x128   : > { %v1025_v17 = vadd.f32 %v1024_v60, %v1023_v41 }
 0x12a   : > { %v1027_v43 = vadd.f32 %v1026_v22, %v1025_v17 }
 0x12c   : > { %v1029_v14 = vadd.f32 %v1028_v20, %v1027_v43 }
 0x12e   : > { %v1031_v30 = vadd.f32 %v1030_v31, %v1029_v14 }
 0x130   : > { %v1033_v48 = vadd.f32 %v1032_v51, %v1031_v30 }
 0x132   : > { %v1035_v27 = vadd.f32 %v1034_v45, %v1033_v48 }
 0x134   : > { %v1037_v25 = vadd.f32 %v1036_v53, %v1035_v27 }
 0x136   : > { %v1039_v33 = vadd.f32 %v1038_v52, %v1037_v25 }
 0x138   : > { %v1041_v35 = vadd.f32 %v1040_v62, %v1039_v33 }
 0x13a   : > { %v1042_v7 = vrot.slane %v1041_v35, 4 }
 0x13c   : > { %v1043_v56 = vadd.f32 %v1042_v7, %v1041_v35 }
 0x13e   : > { %v1044_v12 = vrot.slane %v1043_v56, 2 }
 0x140   : > { %v1045_v9 = vadd.f32 %v1044_v12, %v1043_v56 }
 0x142   : > { %v1046_v39 = vrot.slane %v1045_v9, 1 }
 0x144   : > { %v1047_v44 = vadd.f32 %v1046_v39, %v1045_v9 }
 0x146   : > { %v1048_v49 = vadd.f32 %v1047_v44, %v658_v59 }
 0x148   : > { %1049 = vst.msk [vmem:[%s2443_s2] sm:$0x1] %vm656_vm2, %v1048_v49 }
 0x149 PF: > { %s13_s9 = sadd.s32 1, %s1427_s9  }
 0x14a   : > { %p10_p5 = scmp.ge.s32.totalorder %s13_s9, 4  }
 0x14c   :  { %12 = sbr.rel (!%p10_p5) target bundleno = 1 (0x1), region = 62 }

// kernel: generator_forward.16
= control target key start
LH: loop header
LB: loop body
LE: loop exit
PB: predicated region body
PF: predicated region fallthrough
CT: control target
= control target key end

     0   :  { %s2486_s15 = smov 0   ;;  %s3174_s0 = inlined_call_operand.vmem [shape: bf16[2048,4], index: 0, kind: input, shape index: {}]   ;;  %s3175_s1 = inlined_call_operand.vmem [shape: bf16[4,48], index: 1, kind: input, shape index: {}]   ;;  %s3176_s2 = inlined_call_operand.vmem [shape: f32[1,4], index: 2, kind: input, shape index: {}]   ;;  %s3177_s3 = inlined_call_operand.vmem [shape: f32[1,4], index: 3, kind: input, shape index: {}]   ;;  %s3178_s4 = inlined_call_operand.vmem [shape: f32[2048,48], index: 4, kind: output, shape index: {}]  }
   0x1 LB: > { %s1848_s16 = sadd.s32 4294967295, %s2459_s15   ;;  %p1852_p0 = scmp.ge.s32.totalorder %s2459_s15, 1  ;;  %s2459_s15 = sphi %s2486_s15, %s14_s15  }
   0x2   : > { %p163_p1 = scmp.lt.s32.totalorder %s2459_s15, 3 }
   0x4   : > { %p164_p2 = pnand %p1852_p0, %p163_p1 }
   0x5   : > { %s1853_s19 = sshll.u32 (!%p164_p2), %s1848_s16, 7 }
   0x6   : > { %167 = sbr.rel (%p164_p2) target bundleno = 364 (0x16c), region = 36  ;;  %p190_p3 = scmp.lt.s32.totalorder (!%p164_p2), %s1853_s19, 255 }
   0xb   : > { %v920_v0 = vld [vmem:[%s3175_s1] sm:$0x3]  ;;  %vm1114_vm0 = vcmask 1041408   ;;  %s3180_s19 = smov (!%p190_p3, %s1853_s19), 255  ;;  %vm921_vm1 = vcmask 31744   ;;  %vm1663_vm2 = vcmask 392192  }
   0xc   : > { %2441 = vmatprep.subr.msk.bf16.mxu0 %vm1114_vm0, %v920_v0  ;;  %2442 = vmatprep.subr.msk.bf16.mxu1 %vm1114_vm0, %v920_v0  ;;  %v1116_v1 = vsel %vm1114_vm0, %v920_v0, 0  ;;  %s1854_s20 = sshll.u32 %s3180_s19, 2  ;;  %v2508_v2 = vld [vmem:[%s3176_s2] ss:$0 sm:$0xff]  ;;  %s1856_s6 = sshll.u32 %s3180_s19, 3 }
   0xd   : > { %2310 = vmatpush3.bf16.msra.mxu0 %v1116_v1  ;;  %2440 = vmatpush3.bf16.msra.mxu1 %v1116_v1  ;;  %s2503_s23 = scalar_lea.vmem %s3174_s0, %s1854_s20  ;;  %v2517_v11 = vld [vmem:[%s3177_s3] ss:$0 sm:$0xff]  ;;  %s2913_s9 = scalar_lea.vmem %s3178_s4, %s1856_s6 }
   0xe   : > { %v1926_v3 = vld [vmem:[%s2503_s23] sm:$0xff]   ;;  %v2181_v5 = vld [vmem:[%s2503_s23 + $0x8] sm:$0xff]   ;;  %v2182_v32 = vld [vmem:[%s2503_s23 + $0x10] sm:$0xff]  }
   0xf   : > { %v2212_v4 = vld [vmem:[%s2503_s23 + $0x100] sm:$0xff]   ;;  %v1927_v6 = vunpack.c.l.bf16 %v1926_v3  ;;  %v1928_v7 = vunpack.c.h.bf16 %v1926_v3  ;;  %v2213_v10 = vld [vmem:[%s2503_s23 + $0x108] sm:$0xff]   ;;  %v1931_v12 = vunpack.c.l.bf16 %v2181_v5  ;;  %v1932_v13 = vunpack.c.h.bf16 %v2181_v5  ;;  %v2214_v37 = vld [vmem:[%s2503_s23 + $0x110] sm:$0xff]  }
  0x10   : > { %v2055_v8 = vunpack.c.l.bf16 %v2212_v4  ;;  %v2056_v9 = vunpack.c.h.bf16 %v2212_v4  ;;  %v2059_v14 = vunpack.c.l.bf16 %v2213_v10  ;;  %v2060_v15 = vunpack.c.h.bf16 %v2213_v10  ;;  %v2183_v42 = vld [vmem:[%s2503_s23 + $0x18] sm:$0xff]   ;;  %v2184_v5 = vld [vmem:[%s2503_s23 + $0x20] sm:$0xff]  }
  0x11   : > { %v465_v16 = vmul.f32 %v1927_v6, %v2508_v2  ;;  %v466_v17 = vmul.f32 %v1928_v7, %v2508_v2  ;;  %v467_v20 = vmul.f32 %v1931_v12, %v2508_v2  ;;  %v468_v21 = vmul.f32 %v1932_v13, %v2508_v2  ;;  %v2215_v47 = vld [vmem:[%s2503_s23 + $0x118] sm:$0xff]  }
  0x12   : > { %v529_v18 = vmul.f32 %v2055_v8, %v2508_v2  ;;  %v530_v19 = vmul.f32 %v2056_v9, %v2508_v2  ;;  %v531_v22 = vmul.f32 %v2059_v14, %v2508_v2  ;;  %v532_v23 = vmul.f32 %v2060_v15, %v2508_v2  ;;  %v2216_v15 = vld [vmem:[%s2503_s23 + $0x120] sm:$0xff]  }
  0x13   : > { %v600_v24 = vadd.f32 %v2517_v11, %v465_v16  ;;  %v601_v25 = vadd.f32 %v2517_v11, %v466_v17  ;;  %v602_v28 = vadd.f32 %v2517_v11, %v467_v20  ;;  %v603_v29 = vadd.f32 %v2517_v11, %v468_v21  ;;  %v2185_v20 = vld [vmem:[%s2503_s23 + $0x28] sm:$0xff]  }
  0x14   : > { %v664_v26 = vadd.f32 %v2517_v11, %v529_v18  ;;  %v665_v27 = vadd.f32 %v2517_v11, %v530_v19  ;;  %v666_v30 = vadd.f32 %v2517_v11, %v531_v22  ;;  %v667_v31 = vadd.f32 %v2517_v11, %v532_v23 }
  0x15   : > { %v728_v33 = vmax.f32 %v600_v24, 0.0  ;;  %v729_v34 = vmax.f32 %v601_v25, 0.0  ;;  %v730_v38 = vmax.f32 %v602_v28, 0.0  ;;  %v731_v39 = vmax.f32 %v603_v29, 0.0  ;;  %v2217_v25 = vld [vmem:[%s2503_s23 + $0x128] sm:$0xff]  }
  0x16   : > { %v792_v35 = vmax.f32 %v664_v26, 0.0  ;;  %v793_v36 = vmax.f32 %v665_v27, 0.0  ;;  %v794_v40 = vmax.f32 %v666_v30, 0.0  ;;  %v795_v41 = vmax.f32 %v667_v31, 0.0 }
  0x17   : > { %v856_v43 = vpack.c.bf16 %v729_v34, %v728_v33  ;;  %v1935_v45 = vunpack.c.l.bf16 %v2182_v32  ;;  %v1936_v46 = vunpack.c.h.bf16 %v2182_v32  ;;  %v857_v48 = vpack.c.bf16 %v731_v39, %v730_v38 }
  0x18   : > { %v888_v44 = vpack.c.bf16 %v793_v36, %v792_v35  ;;  %v889_v49 = vpack.c.bf16 %v795_v41, %v794_v40  ;;  %v2063_v50 = vunpack.c.l.bf16 %v2214_v37  ;;  %v2064_v51 = vunpack.c.h.bf16 %v2214_v37 }
  0x19   : > { %2311 = vmatprep.mubr.msk.bf16.mxu0 %vm921_vm1, %v856_v43  ;;  %v469_v52 = vmul.f32 %v1935_v45, %v2508_v2  ;;  %v470_v53 = vmul.f32 %v1936_v46, %v2508_v2  ;;  %v1939_v54 = vunpack.c.l.bf16 %v2183_v42  ;;  %v1940_v55 = vunpack.c.h.bf16 %v2183_v42  ;;  %v2186_v42 = vld [vmem:[%s2503_s23 + $0x30] sm:$0xff]  }
  0x1a   : > { %2375 = vmatprep.mubr.msk.bf16.mxu1 %vm921_vm1, %v888_v44  ;;  %2312 = vmatmul.mubr.msk.bf16.vlgmr.msra.gmra.mxu0 %vm921_vm1, %v857_v48  ;;  %v533_v56 = vmul.f32 %v2063_v50, %v2508_v2  ;;  %v534_v57 = vmul.f32 %v2064_v51, %v2508_v2  ;;  %v2067_v58 = vunpack.c.l.bf16 %v2215_v47  ;;  %v2068_v59 = vunpack.c.h.bf16 %v2215_v47 }
  0x1b   : > { %2376 = vmatmul.mubr.msk.bf16.vlgmr.msra.gmra.mxu1 %vm921_vm1, %v889_v49  ;;  %v604_v60 = vadd.f32 %v2517_v11, %v469_v52  ;;  %v605_v61 = vadd.f32 %v2517_v11, %v470_v53  ;;  %v471_v62 = vmul.f32 %v1939_v54, %v2508_v2  ;;  %v472_v63 = vmul.f32 %v1940_v55, %v2508_v2  ;;  %v2218_v55 = vld [vmem:[%s2503_s23 + $0x130] sm:$0xff]  }
  0x1c   : > { %v668_v0 = vadd.f32 %v2517_v11, %v533_v56  ;;  %v669_v1 = vadd.f32 %v2517_v11, %v534_v57  ;;  %v535_v3 = vmul.f32 %v2067_v58, %v2508_v2  ;;  %v536_v4 = vmul.f32 %v2068_v59, %v2508_v2 }
  0x1d   : > { %v732_v6 = vmax.f32 %v604_v60, 0.0  ;;  %v733_v7 = vmax.f32 %v605_v61, 0.0  ;;  %v606_v8 = vadd.f32 %v2517_v11, %v471_v62  ;;  %v607_v9 = vadd.f32 %v2517_v11, %v472_v63  ;;  %v2187_v60 = vld [vmem:[%s2503_s23 + $0x38] sm:$0xff]  }
  0x1e   : > { %v796_v10 = vmax.f32 %v668_v0, 0.0  ;;  %v797_v12 = vmax.f32 %v669_v1, 0.0  ;;  %v670_v13 = vadd.f32 %v2517_v11, %v535_v3  ;;  %v671_v14 = vadd.f32 %v2517_v11, %v536_v4  ;;  %v2219_v1 = vld [vmem:[%s2503_s23 + $0x138] sm:$0xff]  }
  0x1f   : > { %v858_v16 = vpack.c.bf16 %v733_v7, %v732_v6  ;;  %v734_v17 = vmax.f32 %v606_v8, 0.0  ;;  %v735_v18 = vmax.f32 %v607_v9, 0.0  ;;  %v1943_v19 = vunpack.c.l.bf16 %v2184_v5 }
  0x20   : > { %v890_v21 = vpack.c.bf16 %v797_v12, %v796_v10  ;;  %v798_v22 = vmax.f32 %v670_v13, 0.0  ;;  %v799_v23 = vmax.f32 %v671_v14, 0.0  ;;  %v1944_v24 = vunpack.c.h.bf16 %v2184_v5 }
  0x21   : > { %2315 = vmatprep.mubr.msk.bf16.mxu0 %vm921_vm1, %v858_v16  ;;  %v859_v26 = vpack.c.bf16 %v735_v18, %v734_v17  ;;  %v473_v27 = vmul.f32 %v1943_v19, %v2508_v2  ;;  %v2071_v28 = vunpack.c.l.bf16 %v2216_v15  ;;  %v2072_v29 = vunpack.c.h.bf16 %v2216_v15  ;;  %v2188_v16 = vld [vmem:[%s2503_s23 + $0x40] sm:$0xff]  }
  0x22   : > { %2379 = vmatprep.mubr.msk.bf16.mxu1 %vm921_vm1, %v890_v21  ;;  %v891_v30 = vpack.c.bf16 %v799_v23, %v798_v22  ;;  %v474_v31 = vmul.f32 %v1944_v24, %v2508_v2  ;;  %v1947_v32 = vunpack.c.l.bf16 %v2185_v20  ;;  %v1948_v33 = vunpack.c.h.bf16 %v2185_v20 }
  0x23   : > { %2316 = vmatmul.mubr.msk.bf16.gmra.mxu0 %vm921_vm1, %v859_v26  ;;  %v608_v34 = vadd.f32 %v2517_v11, %v473_v27  ;;  %v537_v35 = vmul.f32 %v2071_v28, %v2508_v2  ;;  %v538_v36 = vmul.f32 %v2072_v29, %v2508_v2  ;;  %v2075_v37 = vunpack.c.l.bf16 %v2217_v25 }
  0x24   : > { %2380 = vmatmul.mubr.msk.bf16.gmra.mxu1 %vm921_vm1, %v891_v30  ;;  %v609_v38 = vadd.f32 %v2517_v11, %v474_v31  ;;  %v475_v39 = vmul.f32 %v1947_v32, %v2508_v2  ;;  %v476_v40 = vmul.f32 %v1948_v33, %v2508_v2  ;;  %v2076_v41 = vunpack.c.h.bf16 %v2217_v25  ;;  %v2220_v33 = vld [vmem:[%s2503_s23 + $0x140] sm:$0xff]  }
  0x25   : > { %v736_v43 = vmax.f32 %v608_v34, 0.0  ;;  %v672_v44 = vadd.f32 %v2517_v11, %v537_v35  ;;  %v673_v45 = vadd.f32 %v2517_v11, %v538_v36  ;;  %v539_v46 = vmul.f32 %v2075_v37, %v2508_v2 }
  0x26   : > { %v737_v47 = vmax.f32 %v609_v38, 0.0  ;;  %v610_v48 = vadd.f32 %v2517_v11, %v475_v39  ;;  %v611_v49 = vadd.f32 %v2517_v11, %v476_v40  ;;  %v540_v50 = vmul.f32 %v2076_v41, %v2508_v2  ;;  %v2189_v38 = vld [vmem:[%s2503_s23 + $0x48] sm:$0xff]  }
  0x27   : > { %v800_v51 = vmax.f32 %v672_v44, 0.0  ;;  %v801_v52 = vmax.f32 %v673_v45, 0.0  ;;  %v674_v53 = vadd.f32 %v2517_v11, %v539_v46  ;;  %v1951_v54 = vunpack.c.l.bf16 %v2186_v42 }
  0x28   : > { %v860_v56 = vpack.c.bf16 %v737_v47, %v736_v43  ;;  %v738_v57 = vmax.f32 %v610_v48, 0.0  ;;  %v739_v58 = vmax.f32 %v611_v49, 0.0  ;;  %v675_v59 = vadd.f32 %v2517_v11, %v540_v50  ;;  %v2221_v43 = vld [vmem:[%s2503_s23 + $0x148] sm:$0xff]  }
  0x29   : > { %v892_v61 = vpack.c.bf16 %v801_v52, %v800_v51  ;;  %v802_v62 = vmax.f32 %v674_v53, 0.0  ;;  %v1952_v63 = vunpack.c.h.bf16 %v2186_v42  ;;  %v477_v0 = vmul.f32 %v1951_v54, %v2508_v2 }
  0x2a   : > { %2319 = vmatprep.mubr.msk.bf16.mxu0 %vm921_vm1, %v860_v56  ;;  %v861_v3 = vpack.c.bf16 %v739_v58, %v738_v57  ;;  %v803_v4 = vmax.f32 %v675_v59, 0.0  ;;  %v2079_v5 = vunpack.c.l.bf16 %v2218_v55  ;;  %v2080_v6 = vunpack.c.h.bf16 %v2218_v55  ;;  %v2190_v56 = vld [vmem:[%s2503_s23 + $0x50] sm:$0xff]  }
  0x2b   : > { %2383 = vmatprep.mubr.msk.bf16.mxu1 %vm921_vm1, %v892_v61  ;;  %v478_v7 = vmul.f32 %v1952_v63, %v2508_v2  ;;  %v612_v8 = vadd.f32 %v2517_v11, %v477_v0  ;;  %v1955_v9 = vunpack.c.l.bf16 %v2187_v60  ;;  %v1956_v10 = vunpack.c.h.bf16 %v2187_v60 }
  0x2c   : > { %2320 = vmatmul.mubr.msk.bf16.gmra.mxu0 %vm921_vm1, %v861_v3  ;;  %v893_v12 = vpack.c.bf16 %v803_v4, %v802_v62  ;;  %v541_v13 = vmul.f32 %v2079_v5, %v2508_v2  ;;  %v542_v14 = vmul.f32 %v2080_v6, %v2508_v2  ;;  %v2083_v15 = vunpack.c.l.bf16 %v2219_v1  ;;  %v2222_v6 = vld [vmem:[%s2503_s23 + $0x150] sm:$0xff]  }
  0x2d   : > { %v613_v17 = vadd.f32 %v2517_v11, %v478_v7  ;;  %v740_v18 = vmax.f32 %v612_v8, 0.0  ;;  %v479_v19 = vmul.f32 %v1955_v9, %v2508_v2  ;;  %v480_v20 = vmul.f32 %v1956_v10, %v2508_v2 }
  0x2e   : > { %2384 = vmatmul.mubr.msk.bf16.gmra.mxu1 %vm921_vm1, %v893_v12  ;;  %v676_v21 = vadd.f32 %v2517_v11, %v541_v13  ;;  %v677_v22 = vadd.f32 %v2517_v11, %v542_v14  ;;  %v2084_v23 = vunpack.c.h.bf16 %v2219_v1  ;;  %v543_v24 = vmul.f32 %v2083_v15, %v2508_v2 }
  0x2f   : > { %v741_v25 = vmax.f32 %v613_v17, 0.0  ;;  %v614_v26 = vadd.f32 %v2517_v11, %v479_v19  ;;  %v615_v27 = vadd.f32 %v2517_v11, %v480_v20  ;;  %v1959_v28 = vunpack.c.l.bf16 %v2188_v16 }
  0x30   : > { %v804_v29 = vmax.f32 %v676_v21, 0.0  ;;  %v805_v30 = vmax.f32 %v677_v22, 0.0  ;;  %v544_v31 = vmul.f32 %v2084_v23, %v2508_v2  ;;  %v678_v32 = vadd.f32 %v2517_v11, %v543_v24  ;;  %v2223_v21 = vld [vmem:[%s2503_s23 + $0x158] sm:$0xff]  }
  0x31   : > { %v862_v34 = vpack.c.bf16 %v741_v25, %v740_v18  ;;  %v742_v35 = vmax.f32 %v614_v26, 0.0  ;;  %v743_v36 = vmax.f32 %v615_v27, 0.0  ;;  %v1960_v37 = vunpack.c.h.bf16 %v2188_v16  ;;  %v2191_v16 = vld [vmem:[%s2503_s23 + $0x58] sm:$0xff]  }
  0x32   : > { %v894_v39 = vpack.c.bf16 %v805_v30, %v804_v29  ;;  %v679_v40 = vadd.f32 %v2517_v11, %v544_v31  ;;  %v806_v41 = vmax.f32 %v678_v32, 0.0  ;;  %v481_v42 = vmul.f32 %v1959_v28, %v2508_v2 }
  0x33   : > { %2323 = vmatprep.mubr.msk.bf16.mxu0 %vm921_vm1, %v862_v34  ;;  %v863_v44 = vpack.c.bf16 %v743_v36, %v742_v35  ;;  %v482_v45 = vmul.f32 %v1960_v37, %v2508_v2  ;;  %v2087_v46 = vunpack.c.l.bf16 %v2220_v33  ;;  %v2088_v47 = vunpack.c.h.bf16 %v2220_v33  ;;  %v2192_v34 = vld [vmem:[%s2503_s23 + $0x60] sm:$0xff]  }
  0x34   : > { %2387 = vmatprep.mubr.msk.bf16.mxu1 %vm921_vm1, %v894_v39  ;;  %v807_v48 = vmax.f32 %v679_v40, 0.0  ;;  %v616_v49 = vadd.f32 %v2517_v11, %v481_v42  ;;  %v1963_v50 = vunpack.c.l.bf16 %v2189_v38  ;;  %v1964_v51 = vunpack.c.h.bf16 %v2189_v38 }
  0x35   : > { %2324 = vmatmul.mubr.msk.bf16.gmra.mxu0 %vm921_vm1, %v863_v44  ;;  %v617_v52 = vadd.f32 %v2517_v11, %v482_v45  ;;  %v545_v53 = vmul.f32 %v2087_v46, %v2508_v2  ;;  %v546_v54 = vmul.f32 %v2088_v47, %v2508_v2  ;;  %v2091_v55 = vunpack.c.l.bf16 %v2221_v43  ;;  %v2224_v47 = vld [vmem:[%s2503_s23 + $0x160] sm:$0xff]  }
  0x36   : > { %v895_v57 = vpack.c.bf16 %v807_v48, %v806_v41  ;;  %v744_v58 = vmax.f32 %v616_v49, 0.0  ;;  %v483_v59 = vmul.f32 %v1963_v50, %v2508_v2  ;;  %v484_v60 = vmul.f32 %v1964_v51, %v2508_v2 }
  0x37   : > { %v745_v61 = vmax.f32 %v617_v52, 0.0  ;;  %v680_v62 = vadd.f32 %v2517_v11, %v545_v53  ;;  %v681_v63 = vadd.f32 %v2517_v11, %v546_v54  ;;  %v2092_v0 = vunpack.c.h.bf16 %v2221_v43 }
  0x38   : > { %2388 = vmatmul.mubr.msk.bf16.gmra.mxu1 %vm921_vm1, %v895_v57  ;;  %v618_v1 = vadd.f32 %v2517_v11, %v483_v59  ;;  %v619_v3 = vadd.f32 %v2517_v11, %v484_v60  ;;  %v547_v4 = vmul.f32 %v2091_v55, %v2508_v2  ;;  %v1967_v5 = vunpack.c.l.bf16 %v2190_v56 }
  0x39   : > { %v864_v7 = vpack.c.bf16 %v745_v61, %v744_v58  ;;  %v808_v8 = vmax.f32 %v680_v62, 0.0  ;;  %v809_v9 = vmax.f32 %v681_v63, 0.0  ;;  %v548_v10 = vmul.f32 %v2092_v0, %v2508_v2 }
  0x3a   : > { %v746_v12 = vmax.f32 %v618_v1, 0.0  ;;  %v747_v13 = vmax.f32 %v619_v3, 0.0  ;;  %v682_v14 = vadd.f32 %v2517_v11, %v547_v4  ;;  %v1968_v15 = vunpack.c.h.bf16 %v2190_v56  ;;  %v2193_v56 = vld [vmem:[%s2503_s23 + $0x68] sm:$0xff]  }
  0x3b   : > { %2327 = vmatprep.mubr.msk.bf16.mxu0 %vm921_vm1, %v864_v7  ;;  %v896_v17 = vpack.c.bf16 %v809_v9, %v808_v8  ;;  %v683_v18 = vadd.f32 %v2517_v11, %v548_v10  ;;  %v485_v19 = vmul.f32 %v1967_v5, %v2508_v2  ;;  %v2095_v20 = vunpack.c.l.bf16 %v2222_v6  ;;  %v2225_v1 = vld [vmem:[%s2503_s23 + $0x168] sm:$0xff]  }
  0x3c   : > { %v865_v22 = vpack.c.bf16 %v747_v13, %v746_v12  ;;  %v810_v23 = vmax.f32 %v682_v14, 0.0  ;;  %v486_v24 = vmul.f32 %v1968_v15, %v2508_v2  ;;  %v2096_v25 = vunpack.c.h.bf16 %v2222_v6  ;;  %v2194_v12 = vld [vmem:[%s2503_s23 + $0x70] sm:$0xff]  }
  0x3d   : > { %2391 = vmatprep.mubr.msk.bf16.mxu1 %vm921_vm1, %v896_v17  ;;  %v811_v26 = vmax.f32 %v683_v18, 0.0  ;;  %v620_v27 = vadd.f32 %v2517_v11, %v485_v19  ;;  %v549_v28 = vmul.f32 %v2095_v20, %v2508_v2  ;;  %v1971_v29 = vunpack.c.l.bf16 %v2191_v16 }
  0x3e   : > { %2328 = vmatmul.mubr.msk.bf16.gmra.mxu0 %vm921_vm1, %v865_v22  ;;  %v621_v30 = vadd.f32 %v2517_v11, %v486_v24  ;;  %v550_v31 = vmul.f32 %v2096_v25, %v2508_v2  ;;  %v1972_v32 = vunpack.c.h.bf16 %v2191_v16  ;;  %v2099_v33 = vunpack.c.l.bf16 %v2223_v21  ;;  %v2226_v25 = vld [vmem:[%s2503_s23 + $0x170] sm:$0xff]  }
  0x3f   : > { %v897_v35 = vpack.c.bf16 %v811_v26, %v810_v23  ;;  %v748_v36 = vmax.f32 %v620_v27, 0.0  ;;  %v684_v37 = vadd.f32 %v2517_v11, %v549_v28  ;;  %v487_v38 = vmul.f32 %v1971_v29, %v2508_v2 }
  0x40   : > { %v749_v39 = vmax.f32 %v621_v30, 0.0  ;;  %v685_v40 = vadd.f32 %v2517_v11, %v550_v31  ;;  %v488_v41 = vmul.f32 %v1972_v32, %v2508_v2  ;;  %v2100_v42 = vunpack.c.h.bf16 %v2223_v21 }
  0x41   : > { %2392 = vmatmul.mubr.msk.bf16.gmra.mxu1 %vm921_vm1, %v897_v35  ;;  %v812_v43 = vmax.f32 %v684_v37, 0.0  ;;  %v622_v44 = vadd.f32 %v2517_v11, %v487_v38  ;;  %v551_v45 = vmul.f32 %v2099_v33, %v2508_v2  ;;  %v1975_v46 = vunpack.c.l.bf16 %v2192_v34 }
  0x42   : > { %v866_v48 = vpack.c.bf16 %v749_v39, %v748_v36  ;;  %v813_v49 = vmax.f32 %v685_v40, 0.0  ;;  %v623_v50 = vadd.f32 %v2517_v11, %v488_v41  ;;  %v552_v51 = vmul.f32 %v2100_v42, %v2508_v2 }
  0x43   : > { %v750_v52 = vmax.f32 %v622_v44, 0.0  ;;  %v686_v53 = vadd.f32 %v2517_v11, %v551_v45  ;;  %v1976_v54 = vunpack.c.h.bf16 %v2192_v34  ;;  %v489_v55 = vmul.f32 %v1975_v46, %v2508_v2  ;;  %v2195_v34 = vld [vmem:[%s2503_s23 + $0x78] sm:$0xff]  }
  0x44   : > { %2331 = vmatprep.mubr.msk.bf16.mxu0 %vm921_vm1, %v866_v48  ;;  %v898_v57 = vpack.c.bf16 %v813_v49, %v812_v43  ;;  %v751_v58 = vmax.f32 %v623_v50, 0.0  ;;  %v687_v59 = vadd.f32 %v2517_v11, %v552_v51  ;;  %v2103_v60 = vunpack.c.l.bf16 %v2224_v47  ;;  %v2227_v43 = vld [vmem:[%s2503_s23 + $0x178] sm:$0xff]  }
  0x45   : > { %v814_v61 = vmax.f32 %v686_v53, 0.0  ;;  %v490_v62 = vmul.f32 %v1976_v54, %v2508_v2  ;;  %v624_v63 = vadd.f32 %v2517_v11, %v489_v55  ;;  %v2104_v0 = vunpack.c.h.bf16 %v2224_v47 }
  0x46   : > { %2395 = vmatprep.mubr.msk.bf16.mxu1 %vm921_vm1, %v898_v57  ;;  %v867_v3 = vpack.c.bf16 %v751_v58, %v750_v52  ;;  %v815_v4 = vmax.f32 %v687_v59, 0.0  ;;  %v553_v5 = vmul.f32 %v2103_v60, %v2508_v2  ;;  %v1979_v6 = vunpack.c.l.bf16 %v2193_v56  ;;  %v2196_v52 = vld [vmem:[%s2503_s23 + $0x80] sm:$0xff]  }
  0x47   : > { %v625_v7 = vadd.f32 %v2517_v11, %v490_v62  ;;  %v752_v8 = vmax.f32 %v624_v63, 0.0  ;;  %v554_v9 = vmul.f32 %v2104_v0, %v2508_v2  ;;  %v1980_v10 = vunpack.c.h.bf16 %v2193_v56 }
  0x48   : > { %2332 = vmatmul.mubr.msk.bf16.gmra.mxu0 %vm921_vm1, %v867_v3  ;;  %v899_v13 = vpack.c.bf16 %v815_v4, %v814_v61  ;;  %v688_v14 = vadd.f32 %v2517_v11, %v553_v5  ;;  %v491_v15 = vmul.f32 %v1979_v6, %v2508_v2  ;;  %v2107_v16 = vunpack.c.l.bf16 %v2225_v1 }
  0x49   : > { %v753_v17 = vmax.f32 %v625_v7, 0.0  ;;  %v689_v18 = vadd.f32 %v2517_v11, %v554_v9  ;;  %v492_v19 = vmul.f32 %v1980_v10, %v2508_v2  ;;  %v2108_v20 = vunpack.c.h.bf16 %v2225_v1  ;;  %v2228_v1 = vld [vmem:[%s2503_s23 + $0x180] sm:$0xff]  }
  0x4a   : > { %2396 = vmatmul.mubr.msk.bf16.gmra.mxu1 %vm921_vm1, %v899_v13  ;;  %v816_v21 = vmax.f32 %v688_v14, 0.0  ;;  %v626_v22 = vadd.f32 %v2517_v11, %v491_v15  ;;  %v555_v23 = vmul.f32 %v2107_v16, %v2508_v2  ;;  %v1983_v24 = vunpack.c.l.bf16 %v2194_v12 }
  0x4b   : > { %v868_v26 = vpack.c.bf16 %v753_v17, %v752_v8  ;;  %v817_v27 = vmax.f32 %v689_v18, 0.0  ;;  %v627_v28 = vadd.f32 %v2517_v11, %v492_v19  ;;  %v556_v29 = vmul.f32 %v2108_v20, %v2508_v2 }
  0x4c   : > { %v754_v30 = vmax.f32 %v626_v22, 0.0  ;;  %v690_v31 = vadd.f32 %v2517_v11, %v555_v23  ;;  %v1984_v32 = vunpack.c.h.bf16 %v2194_v12  ;;  %v493_v33 = vmul.f32 %v1983_v24, %v2508_v2  ;;  %v2197_v12 = vld [vmem:[%s2503_s23 + $0x88] sm:$0xff]  }
  0x4d   : > { %2335 = vmatprep.mubr.msk.bf16.mxu0 %vm921_vm1, %v868_v26  ;;  %v900_v35 = vpack.c.bf16 %v817_v27, %v816_v21  ;;  %v755_v36 = vmax.f32 %v627_v28, 0.0  ;;  %v691_v37 = vadd.f32 %v2517_v11, %v556_v29  ;;  %v2111_v38 = vunpack.c.l.bf16 %v2226_v25  ;;  %v2229_v21 = vld [vmem:[%s2503_s23 + $0x188] sm:$0xff]  }
  0x4e   : > { %v818_v39 = vmax.f32 %v690_v31, 0.0  ;;  %v494_v40 = vmul.f32 %v1984_v32, %v2508_v2  ;;  %v628_v41 = vadd.f32 %v2517_v11, %v493_v33  ;;  %v2112_v42 = vunpack.c.h.bf16 %v2226_v25 }
  0x4f   : > { %2399 = vmatprep.mubr.msk.bf16.mxu1 %vm921_vm1, %v900_v35  ;;  %v869_v44 = vpack.c.bf16 %v755_v36, %v754_v30  ;;  %v819_v45 = vmax.f32 %v691_v37, 0.0  ;;  %v557_v46 = vmul.f32 %v2111_v38, %v2508_v2  ;;  %v1987_v47 = vunpack.c.l.bf16 %v2195_v34  ;;  %v2198_v30 = vld [vmem:[%s2503_s23 + $0x90] sm:$0xff]  }
  0x50   : > { %v629_v48 = vadd.f32 %v2517_v11, %v494_v40  ;;  %v756_v49 = vmax.f32 %v628_v41, 0.0  ;;  %v558_v50 = vmul.f32 %v2112_v42, %v2508_v2  ;;  %v1988_v51 = vunpack.c.h.bf16 %v2195_v34 }
  0x51   : > { %2336 = vmatmul.mubr.msk.bf16.gmra.mxu0 %vm921_vm1, %v869_v44  ;;  %v901_v53 = vpack.c.bf16 %v819_v45, %v818_v39  ;;  %v692_v54 = vadd.f32 %v2517_v11, %v557_v46  ;;  %v495_v55 = vmul.f32 %v1987_v47, %v2508_v2  ;;  %v2115_v56 = vunpack.c.l.bf16 %v2227_v43 }
  0x52   : > { %v757_v57 = vmax.f32 %v629_v48, 0.0  ;;  %v693_v58 = vadd.f32 %v2517_v11, %v558_v50  ;;  %v496_v59 = vmul.f32 %v1988_v51, %v2508_v2  ;;  %v2116_v60 = vunpack.c.h.bf16 %v2227_v43  ;;  %v2230_v43 = vld [vmem:[%s2503_s23 + $0x190] sm:$0xff]  }
  0x53   : > { %2400 = vmatmul.mubr.msk.bf16.gmra.mxu1 %vm921_vm1, %v901_v53  ;;  %v820_v61 = vmax.f32 %v692_v54, 0.0  ;;  %v630_v62 = vadd.f32 %v2517_v11, %v495_v55  ;;  %v559_v63 = vmul.f32 %v2115_v56, %v2508_v2  ;;  %v1991_v0 = vunpack.c.l.bf16 %v2196_v52 }
  0x54   : > { %v870_v3 = vpack.c.bf16 %v757_v57, %v756_v49  ;;  %v821_v4 = vmax.f32 %v693_v58, 0.0  ;;  %v631_v5 = vadd.f32 %v2517_v11, %v496_v59  ;;  %v560_v6 = vmul.f32 %v2116_v60, %v2508_v2 }
  0x55   : > { %v758_v7 = vmax.f32 %v630_v62, 0.0  ;;  %v694_v8 = vadd.f32 %v2517_v11, %v559_v63  ;;  %v1992_v9 = vunpack.c.h.bf16 %v2196_v52  ;;  %v497_v10 = vmul.f32 %v1991_v0, %v2508_v2  ;;  %v2199_v52 = vld [vmem:[%s2503_s23 + $0x98] sm:$0xff]  }
  0x56   : > { %2339 = vmatprep.mubr.msk.bf16.mxu0 %vm921_vm1, %v870_v3  ;;  %v902_v13 = vpack.c.bf16 %v821_v4, %v820_v61  ;;  %v759_v14 = vmax.f32 %v631_v5, 0.0  ;;  %v695_v15 = vadd.f32 %v2517_v11, %v560_v6  ;;  %v2119_v16 = vunpack.c.l.bf16 %v2228_v1  ;;  %v2231_v61 = vld [vmem:[%s2503_s23 + $0x198] sm:$0xff]  }
  0x57   : > { %v822_v17 = vmax.f32 %v694_v8, 0.0  ;;  %v498_v18 = vmul.f32 %v1992_v9, %v2508_v2  ;;  %v632_v19 = vadd.f32 %v2517_v11, %v497_v10  ;;  %v2120_v20 = vunpack.c.h.bf16 %v2228_v1 }
  0x58   : > { %2403 = vmatprep.mubr.msk.bf16.mxu1 %vm921_vm1, %v902_v13  ;;  %v871_v22 = vpack.c.bf16 %v759_v14, %v758_v7  ;;  %v823_v23 = vmax.f32 %v695_v15, 0.0  ;;  %v561_v24 = vmul.f32 %v2119_v16, %v2508_v2  ;;  %v1995_v25 = vunpack.c.l.bf16 %v2197_v12  ;;  %v2200_v7 = vld [vmem:[%s2503_s23 + $0xa0] sm:$0xff]  }
  0x59   : > { %v633_v26 = vadd.f32 %v2517_v11, %v498_v18  ;;  %v760_v27 = vmax.f32 %v632_v19, 0.0  ;;  %v562_v28 = vmul.f32 %v2120_v20, %v2508_v2  ;;  %v1996_v29 = vunpack.c.h.bf16 %v2197_v12 }
  0x5a   : > { %2340 = vmatmul.mubr.msk.bf16.gmra.mxu0 %vm921_vm1, %v871_v22  ;;  %v903_v31 = vpack.c.bf16 %v823_v23, %v822_v17  ;;  %v696_v32 = vadd.f32 %v2517_v11, %v561_v24  ;;  %v499_v33 = vmul.f32 %v1995_v25, %v2508_v2  ;;  %v2123_v34 = vunpack.c.l.bf16 %v2229_v21 }
  0x5b   : > { %v761_v35 = vmax.f32 %v633_v26, 0.0  ;;  %v697_v36 = vadd.f32 %v2517_v11, %v562_v28  ;;  %v500_v37 = vmul.f32 %v1996_v29, %v2508_v2  ;;  %v2124_v38 = vunpack.c.h.bf16 %v2229_v21  ;;  %v2232_v21 = vld [vmem:[%s2503_s23 + $0x1a0] sm:$0xff]  }
  0x5c   : > { %2404 = vmatmul.mubr.msk.bf16.gmra.mxu1 %vm921_vm1, %v903_v31  ;;  %v824_v39 = vmax.f32 %v696_v32, 0.0  ;;  %v634_v40 = vadd.f32 %v2517_v11, %v499_v33  ;;  %v563_v41 = vmul.f32 %v2123_v34, %v2508_v2  ;;  %v1999_v42 = vunpack.c.l.bf16 %v2198_v30 }
  0x5d   : > { %v872_v44 = vpack.c.bf16 %v761_v35, %v760_v27  ;;  %v825_v45 = vmax.f32 %v697_v36, 0.0  ;;  %v635_v46 = vadd.f32 %v2517_v11, %v500_v37  ;;  %v564_v47 = vmul.f32 %v2124_v38, %v2508_v2 }
  0x5e   : > { %v762_v48 = vmax.f32 %v634_v40, 0.0  ;;  %v698_v49 = vadd.f32 %v2517_v11, %v563_v41  ;;  %v2000_v50 = vunpack.c.h.bf16 %v2198_v30  ;;  %v501_v51 = vmul.f32 %v1999_v42, %v2508_v2  ;;  %v2201_v30 = vld [vmem:[%s2503_s23 + $0xa8] sm:$0xff]  }
  0x5f   : > { %2343 = vmatprep.mubr.msk.bf16.mxu0 %vm921_vm1, %v872_v44  ;;  %v904_v53 = vpack.c.bf16 %v825_v45, %v824_v39  ;;  %v763_v54 = vmax.f32 %v635_v46, 0.0  ;;  %v699_v55 = vadd.f32 %v2517_v11, %v564_v47  ;;  %v2127_v56 = vunpack.c.l.bf16 %v2230_v43  ;;  %v2233_v39 = vld [vmem:[%s2503_s23 + $0x1a8] sm:$0xff]  }
  0x60   : > { %v826_v57 = vmax.f32 %v698_v49, 0.0  ;;  %v502_v58 = vmul.f32 %v2000_v50, %v2508_v2  ;;  %v636_v59 = vadd.f32 %v2517_v11, %v501_v51  ;;  %v2128_v60 = vunpack.c.h.bf16 %v2230_v43 }
  0x61   : > { %2407 = vmatprep.mubr.msk.bf16.mxu1 %vm921_vm1, %v904_v53  ;;  %v873_v62 = vpack.c.bf16 %v763_v54, %v762_v48  ;;  %v827_v63 = vmax.f32 %v699_v55, 0.0  ;;  %v565_v0 = vmul.f32 %v2127_v56, %v2508_v2  ;;  %v2003_v1 = vunpack.c.l.bf16 %v2199_v52  ;;  %v2202_v48 = vld [vmem:[%s2503_s23 + $0xb0] sm:$0xff]  }
  0x62   : > { %v637_v3 = vadd.f32 %v2517_v11, %v502_v58  ;;  %v764_v4 = vmax.f32 %v636_v59, 0.0  ;;  %v566_v5 = vmul.f32 %v2128_v60, %v2508_v2  ;;  %v2004_v6 = vunpack.c.h.bf16 %v2199_v52 }
  0x63   : > { %2344 = vmatmul.mubr.msk.bf16.gmra.mxu0 %vm921_vm1, %v873_v62  ;;  %v905_v8 = vpack.c.bf16 %v827_v63, %v826_v57  ;;  %v700_v9 = vadd.f32 %v2517_v11, %v565_v0  ;;  %v503_v10 = vmul.f32 %v2003_v1, %v2508_v2  ;;  %v2131_v12 = vunpack.c.l.bf16 %v2231_v61 }
  0x64   : > { %v765_v13 = vmax.f32 %v637_v3, 0.0  ;;  %v701_v14 = vadd.f32 %v2517_v11, %v566_v5  ;;  %v504_v15 = vmul.f32 %v2004_v6, %v2508_v2  ;;  %v2132_v16 = vunpack.c.h.bf16 %v2231_v61  ;;  %v2234_v61 = vld [vmem:[%s2503_s23 + $0x1b0] sm:$0xff]  }
  0x65   : > { %2408 = vmatmul.mubr.msk.bf16.gmra.mxu1 %vm921_vm1, %v905_v8  ;;  %v828_v17 = vmax.f32 %v700_v9, 0.0  ;;  %v638_v18 = vadd.f32 %v2517_v11, %v503_v10  ;;  %v567_v19 = vmul.f32 %v2131_v12, %v2508_v2  ;;  %v2007_v20 = vunpack.c.l.bf16 %v2200_v7 }
  0x66   : > { %v874_v22 = vpack.c.bf16 %v765_v13, %v764_v4  ;;  %v829_v23 = vmax.f32 %v701_v14, 0.0  ;;  %v639_v24 = vadd.f32 %v2517_v11, %v504_v15  ;;  %v568_v25 = vmul.f32 %v2132_v16, %v2508_v2 }
  0x67   : > { %v766_v26 = vmax.f32 %v638_v18, 0.0  ;;  %v702_v27 = vadd.f32 %v2517_v11, %v567_v19  ;;  %v2008_v28 = vunpack.c.h.bf16 %v2200_v7  ;;  %v505_v29 = vmul.f32 %v2007_v20, %v2508_v2  ;;  %v2203_v7 = vld [vmem:[%s2503_s23 + $0xb8] sm:$0xff]  }
  0x68   : > { %2347 = vmatprep.mubr.msk.bf16.mxu0 %vm921_vm1, %v874_v22  ;;  %v906_v31 = vpack.c.bf16 %v829_v23, %v828_v17  ;;  %v767_v32 = vmax.f32 %v639_v24, 0.0  ;;  %v703_v33 = vadd.f32 %v2517_v11, %v568_v25  ;;  %v2135_v34 = vunpack.c.l.bf16 %v2232_v21  ;;  %v2235_v17 = vld [vmem:[%s2503_s23 + $0x1b8] sm:$0xff]  }
  0x69   : > { %v830_v35 = vmax.f32 %v702_v27, 0.0  ;;  %v506_v36 = vmul.f32 %v2008_v28, %v2508_v2  ;;  %v640_v37 = vadd.f32 %v2517_v11, %v505_v29  ;;  %v2136_v38 = vunpack.c.h.bf16 %v2232_v21 }
  0x6a   : > { %2411 = vmatprep.mubr.msk.bf16.mxu1 %vm921_vm1, %v906_v31  ;;  %v875_v40 = vpack.c.bf16 %v767_v32, %v766_v26  ;;  %v831_v41 = vmax.f32 %v703_v33, 0.0  ;;  %v569_v42 = vmul.f32 %v2135_v34, %v2508_v2  ;;  %v2011_v43 = vunpack.c.l.bf16 %v2201_v30  ;;  %v2204_v26 = vld [vmem:[%s2503_s23 + $0xc0] sm:$0xff]  }
  0x6b   : > { %v641_v44 = vadd.f32 %v2517_v11, %v506_v36  ;;  %v768_v45 = vmax.f32 %v640_v37, 0.0  ;;  %v570_v46 = vmul.f32 %v2136_v38, %v2508_v2  ;;  %v2012_v47 = vunpack.c.h.bf16 %v2201_v30  ;;  %v2798_v37 = vld [vmem:[%s3176_s2] ss:$0 sm:$0xff] }
  0x6c   : > { %2348 = vmatmul.mubr.msk.bf16.gmra.mxu0 %vm921_vm1, %v875_v40  ;;  %v907_v49 = vpack.c.bf16 %v831_v41, %v830_v35  ;;  %v704_v50 = vadd.f32 %v2517_v11, %v569_v42  ;;  %v507_v51 = vmul.f32 %v2011_v43, %v2508_v2  ;;  %v2139_v52 = vunpack.c.l.bf16 %v2233_v39  ;;  %v2236_v40 = vld [vmem:[%s2503_s23 + $0x1c0] sm:$0xff]  }
  0x6d   : > { %v769_v53 = vmax.f32 %v641_v44, 0.0  ;;  %v705_v54 = vadd.f32 %v2517_v11, %v570_v46  ;;  %v508_v55 = vmul.f32 %v2012_v47, %v2508_v2  ;;  %v2140_v56 = vunpack.c.h.bf16 %v2233_v39 }
  0x6e   : > { %2412 = vmatmul.mubr.msk.bf16.gmra.mxu1 %vm921_vm1, %v907_v49  ;;  %v832_v57 = vmax.f32 %v704_v50, 0.0  ;;  %v642_v58 = vadd.f32 %v2517_v11, %v507_v51  ;;  %v571_v59 = vmul.f32 %v2139_v52, %v2508_v2  ;;  %v2015_v60 = vunpack.c.l.bf16 %v2202_v48  ;;  %v2205_v49 = vld [vmem:[%s2503_s23 + $0xc8] sm:$0xff]  }
  0x6f   : > { %v876_v62 = vpack.c.bf16 %v769_v53, %v768_v45  ;;  %v833_v63 = vmax.f32 %v705_v54, 0.0  ;;  %v643_v0 = vadd.f32 %v2517_v11, %v508_v55  ;;  %v572_v1 = vmul.f32 %v2140_v56, %v2508_v2  ;;  %v2807_v45 = vld [vmem:[%s3177_s3] ss:$0 sm:$0xff] }
  0x70   : > { %v770_v3 = vmax.f32 %v642_v58, 0.0  ;;  %v706_v4 = vadd.f32 %v2517_v11, %v571_v59  ;;  %v2016_v5 = vunpack.c.h.bf16 %v2202_v48  ;;  %v509_v6 = vmul.f32 %v2015_v60, %v2508_v2 }
  0x71   : > { %2351 = vmatprep.mubr.msk.bf16.mxu0 %vm921_vm1, %v876_v62  ;;  %v908_v8 = vpack.c.bf16 %v833_v63, %v832_v57  ;;  %v771_v9 = vmax.f32 %v643_v0, 0.0  ;;  %v707_v10 = vadd.f32 %v2517_v11, %v572_v1  ;;  %v2143_v12 = vunpack.c.l.bf16 %v2234_v61  ;;  %v2237_v57 = vld [vmem:[%s2503_s23 + $0x1c8] sm:$0xff]  }
  0x72   : > { %v834_v13 = vmax.f32 %v706_v4, 0.0  ;;  %v510_v14 = vmul.f32 %v2016_v5, %v2508_v2  ;;  %v644_v15 = vadd.f32 %v2517_v11, %v509_v6  ;;  %v2144_v16 = vunpack.c.h.bf16 %v2234_v61 }
  0x73   : > { %2415 = vmatprep.mubr.msk.bf16.mxu1 %vm921_vm1, %v908_v8  ;;  %v877_v18 = vpack.c.bf16 %v771_v9, %v770_v3  ;;  %v835_v19 = vmax.f32 %v707_v10, 0.0  ;;  %v573_v20 = vmul.f32 %v2143_v12, %v2508_v2  ;;  %v2019_v21 = vunpack.c.l.bf16 %v2203_v7  ;;  %v2206_v3 = vld [vmem:[%s2503_s23 + $0xd0] sm:$0xff]  }
  0x74   : > { %v645_v22 = vadd.f32 %v2517_v11, %v510_v14  ;;  %v772_v23 = vmax.f32 %v644_v15, 0.0  ;;  %v574_v24 = vmul.f32 %v2144_v16, %v2508_v2  ;;  %v2020_v25 = vunpack.c.h.bf16 %v2203_v7 }
  0x75   : > { %2352 = vmatmul.mubr.msk.bf16.gmra.mxu0 %vm921_vm1, %v877_v18  ;;  %v909_v27 = vpack.c.bf16 %v835_v19, %v834_v13  ;;  %v708_v28 = vadd.f32 %v2517_v11, %v573_v20  ;;  %v511_v29 = vmul.f32 %v2019_v21, %v2508_v2  ;;  %v2147_v30 = vunpack.c.l.bf16 %v2235_v17 }
  0x76   : > { %v773_v31 = vmax.f32 %v645_v22, 0.0  ;;  %v709_v32 = vadd.f32 %v2517_v11, %v574_v24  ;;  %v512_v33 = vmul.f32 %v2020_v25, %v2508_v2  ;;  %v2148_v34 = vunpack.c.h.bf16 %v2235_v17  ;;  %v2238_v17 = vld [vmem:[%s2503_s23 + $0x1d0] sm:$0xff]  }
  0x77   : > { %2416 = vmatmul.mubr.msk.bf16.gmra.mxu1 %vm921_vm1, %v909_v27  ;;  %v836_v35 = vmax.f32 %v708_v28, 0.0  ;;  %v646_v36 = vadd.f32 %v2517_v11, %v511_v29  ;;  %v575_v38 = vmul.f32 %v2798_v37, %v2147_v30  ;;  %v2023_v39 = vunpack.c.l.bf16 %v2204_v26 }
  0x78   : > { %v878_v41 = vpack.c.bf16 %v773_v31, %v772_v23  ;;  %v837_v42 = vmax.f32 %v709_v32, 0.0  ;;  %v647_v2 = vadd.f32 %v2517_v11, %v512_v33  ;;  %v576_v43 = vmul.f32 %v2798_v37, %v2148_v34 }
  0x79   : > { %v774_v44 = vmax.f32 %v646_v36, 0.0  ;;  %v710_v46 = vadd.f32 %v2807_v45, %v575_v38  ;;  %v2024_v47 = vunpack.c.h.bf16 %v2204_v26  ;;  %v513_v48 = vmul.f32 %v2798_v37, %v2023_v39  ;;  %v2207_v26 = vld [vmem:[%s2503_s23 + $0xd8] sm:$0xff]  }
  0x7a   : > { %2355 = vmatprep.mubr.msk.bf16.mxu0 %vm921_vm1, %v878_v41  ;;  %v910_v50 = vpack.c.bf16 %v837_v42, %v836_v35  ;;  %v775_v51 = vmax.f32 %v647_v2, 0.0  ;;  %v711_v11 = vadd.f32 %v2807_v45, %v576_v43  ;;  %v2151_v52 = vunpack.c.l.bf16 %v2236_v40  ;;  %v2239_v35 = vld [vmem:[%s2503_s23 + $0x1d8] sm:$0xff]  }
  0x7b   : > { %v838_v53 = vmax.f32 %v710_v46, 0.0  ;;  %v514_v54 = vmul.f32 %v2798_v37, %v2024_v47  ;;  %v648_v55 = vadd.f32 %v2807_v45, %v513_v48  ;;  %v2152_v56 = vunpack.c.h.bf16 %v2236_v40 }
  0x7c   : > { %2419 = vmatprep.mubr.msk.bf16.mxu1 %vm921_vm1, %v910_v50  ;;  %v879_v58 = vpack.c.bf16 %v775_v51, %v774_v44  ;;  %v839_v59 = vmax.f32 %v711_v11, 0.0  ;;  %v577_v60 = vmul.f32 %v2798_v37, %v2151_v52  ;;  %v2027_v61 = vunpack.c.l.bf16 %v2205_v49  ;;  %v2208_v44 = vld [vmem:[%s2503_s23 + $0xe0] sm:$0xff]  }
  0x7d   : > { %v649_v62 = vadd.f32 %v2807_v45, %v514_v54  ;;  %v776_v63 = vmax.f32 %v648_v55, 0.0  ;;  %v578_v0 = vmul.f32 %v2798_v37, %v2152_v56  ;;  %v2028_v1 = vunpack.c.h.bf16 %v2205_v49 }
  0x7e   : > { %2356 = vmatmul.mubr.msk.bf16.gmra.mxu0 %vm921_vm1, %v879_v58  ;;  %v911_v4 = vpack.c.bf16 %v839_v59, %v838_v53  ;;  %v712_v5 = vadd.f32 %v2807_v45, %v577_v60  ;;  %v515_v6 = vmul.f32 %v2798_v37, %v2027_v61  ;;  %v2155_v7 = vunpack.c.l.bf16 %v2237_v57 }
  0x7f   : > { %v777_v8 = vmax.f32 %v649_v62, 0.0  ;;  %v713_v9 = vadd.f32 %v2807_v45, %v578_v0  ;;  %v516_v10 = vmul.f32 %v2798_v37, %v2028_v1  ;;  %v2156_v12 = vunpack.c.h.bf16 %v2237_v57  ;;  %v2240_v57 = vld [vmem:[%s2503_s23 + $0x1e0] sm:$0xff]  }
  0x80   : > { %2420 = vmatmul.mubr.msk.bf16.gmra.mxu1 %vm921_vm1, %v911_v4  ;;  %v840_v13 = vmax.f32 %v712_v5, 0.0  ;;  %v650_v14 = vadd.f32 %v2807_v45, %v515_v6  ;;  %v579_v15 = vmul.f32 %v2798_v37, %v2155_v7  ;;  %v2031_v16 = vunpack.c.l.bf16 %v2206_v3 }
  0x81   : > { %v880_v18 = vpack.c.bf16 %v777_v8, %v776_v63  ;;  %v841_v19 = vmax.f32 %v713_v9, 0.0  ;;  %v651_v20 = vadd.f32 %v2807_v45, %v516_v10  ;;  %v580_v21 = vmul.f32 %v2798_v37, %v2156_v12 }
  0x82   : > { %v778_v22 = vmax.f32 %v650_v14, 0.0  ;;  %v714_v23 = vadd.f32 %v2807_v45, %v579_v15  ;;  %v2032_v24 = vunpack.c.h.bf16 %v2206_v3  ;;  %v517_v25 = vmul.f32 %v2798_v37, %v2031_v16  ;;  %v2209_v3 = vld [vmem:[%s2503_s23 + $0xe8] sm:$0xff]  }
  0x83   : > { %2359 = vmatprep.mubr.msk.bf16.mxu0 %vm921_vm1, %v880_v18  ;;  %v912_v27 = vpack.c.bf16 %v841_v19, %v840_v13  ;;  %v779_v28 = vmax.f32 %v651_v20, 0.0  ;;  %v715_v29 = vadd.f32 %v2807_v45, %v580_v21  ;;  %v2159_v30 = vunpack.c.l.bf16 %v2238_v17  ;;  %v2241_v13 = vld [vmem:[%s2503_s23 + $0x1e8] sm:$0xff]  }
  0x84   : > { %v842_v31 = vmax.f32 %v714_v23, 0.0  ;;  %v518_v32 = vmul.f32 %v2798_v37, %v2032_v24  ;;  %v652_v33 = vadd.f32 %v2807_v45, %v517_v25  ;;  %v2160_v34 = vunpack.c.h.bf16 %v2238_v17 }
  0x85   : > { %2423 = vmatprep.mubr.msk.bf16.mxu1 %vm921_vm1, %v912_v27  ;;  %v881_v36 = vpack.c.bf16 %v779_v28, %v778_v22  ;;  %v843_v38 = vmax.f32 %v715_v29, 0.0  ;;  %v581_v39 = vmul.f32 %v2798_v37, %v2159_v30  ;;  %v2035_v40 = vunpack.c.l.bf16 %v2207_v26  ;;  %v2210_v22 = vld [vmem:[%s2503_s23 + $0xf0] sm:$0xff]  }
  0x86   : > { %v653_v41 = vadd.f32 %v2807_v45, %v518_v32  ;;  %v780_v42 = vmax.f32 %v652_v33, 0.0  ;;  %v582_v2 = vmul.f32 %v2798_v37, %v2160_v34  ;;  %v2036_v43 = vunpack.c.h.bf16 %v2207_v26 }
  0x87   : > { %2360 = vmatmul.mubr.msk.bf16.gmra.mxu0 %vm921_vm1, %v881_v36  ;;  %v913_v46 = vpack.c.bf16 %v843_v38, %v842_v31  ;;  %v716_v47 = vadd.f32 %v2807_v45, %v581_v39  ;;  %v519_v48 = vmul.f32 %v2798_v37, %v2035_v40  ;;  %v2163_v49 = vunpack.c.l.bf16 %v2239_v35 }
  0x88   : > { %v781_v50 = vmax.f32 %v653_v41, 0.0  ;;  %v717_v51 = vadd.f32 %v2807_v45, %v582_v2  ;;  %v520_v11 = vmul.f32 %v2798_v37, %v2036_v43  ;;  %v2164_v52 = vunpack.c.h.bf16 %v2239_v35  ;;  %v2242_v35 = vld [vmem:[%s2503_s23 + $0x1f0] sm:$0xff]  }
  0x89   : > { %2424 = vmatmul.mubr.msk.bf16.gmra.mxu1 %vm921_vm1, %v913_v46  ;;  %v844_v53 = vmax.f32 %v716_v47, 0.0  ;;  %v654_v54 = vadd.f32 %v2807_v45, %v519_v48  ;;  %v583_v55 = vmul.f32 %v2798_v37, %v2163_v49  ;;  %v2039_v56 = vunpack.c.l.bf16 %v2208_v44 }
  0x8a   : > { %v882_v58 = vpack.c.bf16 %v781_v50, %v780_v42  ;;  %v845_v59 = vmax.f32 %v717_v51, 0.0  ;;  %v655_v60 = vadd.f32 %v2807_v45, %v520_v11  ;;  %v584_v61 = vmul.f32 %v2798_v37, %v2164_v52 }
  0x8b   : > { %v782_v62 = vmax.f32 %v654_v54, 0.0  ;;  %v718_v63 = vadd.f32 %v2807_v45, %v583_v55  ;;  %v2040_v0 = vunpack.c.h.bf16 %v2208_v44  ;;  %v521_v1 = vmul.f32 %v2798_v37, %v2039_v56  ;;  %v2211_v44 = vld [vmem:[%s2503_s23 + $0xf8] sm:$0xff]  }
  0x8c   : > { %2363 = vmatprep.mubr.msk.bf16.mxu0 %vm921_vm1, %v882_v58  ;;  %v914_v4 = vpack.c.bf16 %v845_v59, %v844_v53  ;;  %v783_v5 = vmax.f32 %v655_v60, 0.0  ;;  %v719_v6 = vadd.f32 %v2807_v45, %v584_v61  ;;  %v2167_v7 = vunpack.c.l.bf16 %v2240_v57  ;;  %v2243_v53 = vld [vmem:[%s2503_s23 + $0x1f8] sm:$0xff]  }
  0x8d   : > { %v846_v8 = vmax.f32 %v718_v63, 0.0  ;;  %v522_v9 = vmul.f32 %v2798_v37, %v2040_v0  ;;  %v656_v10 = vadd.f32 %v2807_v45, %v521_v1  ;;  %v2168_v12 = vunpack.c.h.bf16 %v2240_v57 }
  0x8e   : > { %2427 = vmatprep.mubr.msk.bf16.mxu1 %vm921_vm1, %v914_v4  ;;  %v883_v14 = vpack.c.bf16 %v783_v5, %v782_v62  ;;  %v847_v15 = vmax.f32 %v719_v6, 0.0  ;;  %v585_v16 = vmul.f32 %v2798_v37, %v2167_v7  ;;  %v2043_v17 = vunpack.c.l.bf16 %v2209_v3 }
  0x8f   : > { %v657_v18 = vadd.f32 %v2807_v45, %v522_v9  ;;  %v784_v19 = vmax.f32 %v656_v10, 0.0  ;;  %v586_v20 = vmul.f32 %v2798_v37, %v2168_v12  ;;  %v2044_v21 = vunpack.c.h.bf16 %v2209_v3 }
  0x90   : > { %2364 = vmatmul.mubr.msk.bf16.gmra.mxu0 %vm921_vm1, %v883_v14  ;;  %v915_v23 = vpack.c.bf16 %v847_v15, %v846_v8  ;;  %v720_v24 = vadd.f32 %v2807_v45, %v585_v16  ;;  %v523_v25 = vmul.f32 %v2798_v37, %v2043_v17  ;;  %v2171_v26 = vunpack.c.l.bf16 %v2241_v13 }
  0x91   : > { %v785_v27 = vmax.f32 %v657_v18, 0.0  ;;  %v721_v28 = vadd.f32 %v2807_v45, %v586_v20  ;;  %v524_v29 = vmul.f32 %v2798_v37, %v2044_v21  ;;  %v2172_v30 = vunpack.c.h.bf16 %v2241_v13 }
  0x92   : > { %2428 = vmatmul.mubr.msk.bf16.gmra.mxu1 %vm921_vm1, %v915_v23  ;;  %v848_v31 = vmax.f32 %v720_v24, 0.0  ;;  %v658_v32 = vadd.f32 %v2807_v45, %v523_v25  ;;  %v587_v33 = vmul.f32 %v2798_v37, %v2171_v26  ;;  %v2047_v34 = vunpack.c.l.bf16 %v2210_v22 }
  0x93   : > { %v884_v36 = vpack.c.bf16 %v785_v27, %v784_v19  ;;  %v849_v38 = vmax.f32 %v721_v28, 0.0  ;;  %v659_v39 = vadd.f32 %v2807_v45, %v524_v29  ;;  %v588_v40 = vmul.f32 %v2798_v37, %v2172_v30 }
  0x94   : > { %v786_v41 = vmax.f32 %v658_v32, 0.0  ;;  %v722_v42 = vadd.f32 %v2807_v45, %v587_v33  ;;  %v2048_v2 = vunpack.c.h.bf16 %v2210_v22  ;;  %v525_v43 = vmul.f32 %v2798_v37, %v2047_v34 }
  0x95   : > { %2367 = vmatprep.mubr.msk.bf16.mxu0 %vm921_vm1, %v884_v36  ;;  %v916_v46 = vpack.c.bf16 %v849_v38, %v848_v31  ;;  %v787_v47 = vmax.f32 %v659_v39, 0.0  ;;  %v723_v48 = vadd.f32 %v2807_v45, %v588_v40  ;;  %v2175_v49 = vunpack.c.l.bf16 %v2242_v35 }
  0x96   : > { %v850_v50 = vmax.f32 %v722_v42, 0.0  ;;  %v526_v51 = vmul.f32 %v2798_v37, %v2048_v2  ;;  %v660_v11 = vadd.f32 %v2807_v45, %v525_v43  ;;  %v2176_v52 = vunpack.c.h.bf16 %v2242_v35 }
  0x97   : > { %2431 = vmatprep.mubr.msk.bf16.mxu1 %vm921_vm1, %v916_v46  ;;  %v885_v54 = vpack.c.bf16 %v787_v47, %v786_v41  ;;  %v851_v55 = vmax.f32 %v723_v48, 0.0  ;;  %v589_v56 = vmul.f32 %v2798_v37, %v2175_v49  ;;  %v2051_v57 = vunpack.c.l.bf16 %v2211_v44 }
  0x98   : > { %v661_v58 = vadd.f32 %v2807_v45, %v526_v51  ;;  %v788_v59 = vmax.f32 %v660_v11, 0.0  ;;  %v590_v60 = vmul.f32 %v2798_v37, %v2176_v52  ;;  %v2052_v61 = vunpack.c.h.bf16 %v2211_v44 }
  0x99   : > { %2368 = vmatmul.mubr.msk.bf16.gmra.mxu0 %vm921_vm1, %v885_v54  ;;  %v917_v62 = vpack.c.bf16 %v851_v55, %v850_v50  ;;  %v724_v63 = vadd.f32 %v2807_v45, %v589_v56  ;;  %v527_v0 = vmul.f32 %v2798_v37, %v2051_v57  ;;  %v2179_v1 = vunpack.c.l.bf16 %v2243_v53 }
  0x9a   : > { %v789_v3 = vmax.f32 %v661_v58, 0.0  ;;  %v725_v4 = vadd.f32 %v2807_v45, %v590_v60  ;;  %v528_v5 = vmul.f32 %v2798_v37, %v2052_v61  ;;  %v2180_v6 = vunpack.c.h.bf16 %v2243_v53 }
  0x9b   : > { %2432 = vmatmul.mubr.msk.bf16.gmra.mxu1 %vm921_vm1, %v917_v62  ;;  %v852_v7 = vmax.f32 %v724_v63, 0.0  ;;  %v662_v8 = vadd.f32 %v2807_v45, %v527_v0  ;;  %v591_v9 = vmul.f32 %v2798_v37, %v2179_v1 }
  0x9c   : > { %v886_v10 = vpack.c.bf16 %v789_v3, %v788_v59  ;;  %v853_v12 = vmax.f32 %v725_v4, 0.0  ;;  %v663_v13 = vadd.f32 %v2807_v45, %v528_v5  ;;  %v592_v14 = vmul.f32 %v2798_v37, %v2180_v6 }
  0x9d   : > { %v790_v15 = vmax.f32 %v662_v8, 0.0  ;;  %v726_v16 = vadd.f32 %v2807_v45, %v591_v9 }
  0x9e   : > { %2371 = vmatprep.mubr.msk.bf16.mxu0 %vm921_vm1, %v886_v10  ;;  %v918_v17 = vpack.c.bf16 %v853_v12, %v852_v7  ;;  %v791_v18 = vmax.f32 %v663_v13, 0.0  ;;  %v727_v19 = vadd.f32 %v2807_v45, %v592_v14 }
  0x9f   : > { %v854_v20 = vmax.f32 %v726_v16, 0.0 }
  0xa0   : > { %2435 = vmatprep.mubr.msk.bf16.mxu1 %vm921_vm1, %v918_v17  ;;  %v887_v21 = vpack.c.bf16 %v791_v18, %v790_v15  ;;  %v855_v22 = vmax.f32 %v727_v19, 0.0 }
  0xa2   : > { %2372 = vmatmul.mubr.msk.bf16.gmra.mxu0 %vm921_vm1, %v887_v21  ;;  %v919_v23 = vpack.c.bf16 %v855_v22, %v854_v20 }
  0xa4   : > { %2436 = vmatmul.mubr.msk.bf16.gmra.mxu1 %vm921_vm1, %v919_v23 }
  0xda   : > { %v2313_v37 = vpop.f32.mrf.mxu0 }
  0xdb   : > { %v2377_v45 = vpop.f32.mrf.mxu1  ;;  %1666 = vst.msk [vmem:[%s2913_s9 + $0x10] sm:$0xff] %vm1663_vm2, %v2313_v37 }
  0xdc   : > { %1730 = vst.msk [vmem:[%s2913_s9 + $0x210] sm:$0xff] %vm1663_vm2, %v2377_v45  ;;  %v1152_v24 = vpop.f32.mrf.mxu0 }
  0xdd   : > { %v1408_v25 = vpop.f32.mrf.mxu1  ;;  %1664 = vst.msk [vmem:[%s2913_s9] sm:$0xff] %vm1663_vm2, %v1152_v24 }
  0xde   : > { %1728 = vst.msk [vmem:[%s2913_s9 + $0x200] sm:$0xff] %vm1663_vm2, %v1408_v25  ;;  %v2314_v26 = vpop.f32.mrf.mxu0 }
  0xdf   : > { %v2378_v27 = vpop.f32.mrf.mxu1  ;;  %1667 = vst.msk [vmem:[%s2913_s9 + $0x18] sm:$0xff] %vm1663_vm2, %v2314_v26 }
  0xe0   : > { %1731 = vst.msk [vmem:[%s2913_s9 + $0x218] sm:$0xff] %vm1663_vm2, %v2378_v27  ;;  %v1155_v28 = vpop.f32.mrf.mxu0 }
  0xe1   : > { %v1411_v29 = vpop.f32.mrf.mxu1  ;;  %1665 = vst.msk [vmem:[%s2913_s9 + $0x8] sm:$0xff] %vm1663_vm2, %v1155_v28 }
  0xe2   : > { %1729 = vst.msk [vmem:[%s2913_s9 + $0x208] sm:$0xff] %vm1663_vm2, %v1411_v29 }
  0xe3   : > { %v2317_v30 = vpop.f32.mrf.mxu0 }
  0xe4   : > { %1670 = vst.msk [vmem:[%s2913_s9 + $0x30] sm:$0xff] %vm1663_vm2, %v2317_v30  ;;  %v2381_v31 = vpop.f32.mrf.mxu1 }
  0xe5   : > { %1734 = vst.msk [vmem:[%s2913_s9 + $0x230] sm:$0xff] %vm1663_vm2, %v2381_v31  ;;  %v1168_v32 = vpop.f32.mrf.mxu0 }
  0xe6   : > { %1668 = vst.msk [vmem:[%s2913_s9 + $0x20] sm:$0xff] %vm1663_vm2, %v1168_v32  ;;  %v1424_v33 = vpop.f32.mrf.mxu1 }
  0xe7   : > { %1732 = vst.msk [vmem:[%s2913_s9 + $0x220] sm:$0xff] %vm1663_vm2, %v1424_v33  ;;  %v2318_v34 = vpop.f32.mrf.mxu0 }
  0xe8   : > { %1671 = vst.msk [vmem:[%s2913_s9 + $0x38] sm:$0xff] %vm1663_vm2, %v2318_v34  ;;  %v2382_v35 = vpop.f32.mrf.mxu1 }
  0xe9   : > { %1735 = vst.msk [vmem:[%s2913_s9 + $0x238] sm:$0xff] %vm1663_vm2, %v2382_v35  ;;  %v1171_v36 = vpop.f32.mrf.mxu0 }
  0xea   : > { %1669 = vst.msk [vmem:[%s2913_s9 + $0x28] sm:$0xff] %vm1663_vm2, %v1171_v36  ;;  %v1427_v38 = vpop.f32.mrf.mxu1 }
  0xeb   : > { %1733 = vst.msk [vmem:[%s2913_s9 + $0x228] sm:$0xff] %vm1663_vm2, %v1427_v38 }
  0xec   : > { %v2321_v39 = vpop.f32.mrf.mxu0 }
  0xed   : > { %1674 = vst.msk [vmem:[%s2913_s9 + $0x50] sm:$0xff] %vm1663_vm2, %v2321_v39 }
  0xee   : > { %v2385_v40 = vpop.f32.mrf.mxu1  ;;  %v1184_v41 = vpop.f32.mrf.mxu0 }
  0xef   : > { %1738 = vst.msk [vmem:[%s2913_s9 + $0x250] sm:$0xff] %vm1663_vm2, %v2385_v40  ;;  %1672 = vst.msk [vmem:[%s2913_s9 + $0x40] sm:$0xff] %vm1663_vm2, %v1184_v41 }
  0xf0   : > { %v1440_v42 = vpop.f32.mrf.mxu1  ;;  %v2322_v2 = vpop.f32.mrf.mxu0 }
  0xf1   : > { %1736 = vst.msk [vmem:[%s2913_s9 + $0x240] sm:$0xff] %vm1663_vm2, %v1440_v42  ;;  %1675 = vst.msk [vmem:[%s2913_s9 + $0x58] sm:$0xff] %vm1663_vm2, %v2322_v2 }
  0xf2   : > { %v2386_v43 = vpop.f32.mrf.mxu1  ;;  %v1187_v44 = vpop.f32.mrf.mxu0 }
  0xf3   : > { %1739 = vst.msk [vmem:[%s2913_s9 + $0x258] sm:$0xff] %vm1663_vm2, %v2386_v43  ;;  %1673 = vst.msk [vmem:[%s2913_s9 + $0x48] sm:$0xff] %vm1663_vm2, %v1187_v44 }
  0xf4   : > { %v1443_v46 = vpop.f32.mrf.mxu1 }
  0xf5   : > { %1737 = vst.msk [vmem:[%s2913_s9 + $0x248] sm:$0xff] %vm1663_vm2, %v1443_v46  ;;  %v2325_v47 = vpop.f32.mrf.mxu0 }
  0xf6   : > { %1678 = vst.msk [vmem:[%s2913_s9 + $0x70] sm:$0xff] %vm1663_vm2, %v2325_v47 }
  0xf7   : > { %v1200_v48 = vpop.f32.mrf.mxu0 }
  0xf8   : > { %v2389_v49 = vpop.f32.mrf.mxu1  ;;  %1676 = vst.msk [vmem:[%s2913_s9 + $0x60] sm:$0xff] %vm1663_vm2, %v1200_v48 }
  0xf9   : > { %1742 = vst.msk [vmem:[%s2913_s9 + $0x270] sm:$0xff] %vm1663_vm2, %v2389_v49  ;;  %v2326_v50 = vpop.f32.mrf.mxu0 }
  0xfa   : > { %v1456_v51 = vpop.f32.mrf.mxu1  ;;  %1679 = vst.msk [vmem:[%s2913_s9 + $0x78] sm:$0xff] %vm1663_vm2, %v2326_v50 }
  0xfb   : > { %1740 = vst.msk [vmem:[%s2913_s9 + $0x260] sm:$0xff] %vm1663_vm2, %v1456_v51  ;;  %v1203_v11 = vpop.f32.mrf.mxu0 }
  0xfc   : > { %v2390_v52 = vpop.f32.mrf.mxu1  ;;  %1677 = vst.msk [vmem:[%s2913_s9 + $0x68] sm:$0xff] %vm1663_vm2, %v1203_v11 }
  0xfd   : > { %1743 = vst.msk [vmem:[%s2913_s9 + $0x278] sm:$0xff] %vm1663_vm2, %v2390_v52 }
  0xfe   : > { %v1459_v53 = vpop.f32.mrf.mxu1  ;;  %v2329_v54 = vpop.f32.mrf.mxu0 }
  0xff   : > { %1741 = vst.msk [vmem:[%s2913_s9 + $0x268] sm:$0xff] %vm1663_vm2, %v1459_v53  ;;  %1682 = vst.msk [vmem:[%s2913_s9 + $0x90] sm:$0xff] %vm1663_vm2, %v2329_v54 }
 0x100   : > { %v1216_v55 = vpop.f32.mrf.mxu0 }
 0x101   : > { %v2393_v56 = vpop.f32.mrf.mxu1  ;;  %1680 = vst.msk [vmem:[%s2913_s9 + $0x80] sm:$0xff] %vm1663_vm2, %v1216_v55 }
 0x102   : > { %1746 = vst.msk [vmem:[%s2913_s9 + $0x290] sm:$0xff] %vm1663_vm2, %v2393_v56  ;;  %v2330_v57 = vpop.f32.mrf.mxu0 }
 0x103   : > { %v1472_v58 = vpop.f32.mrf.mxu1  ;;  %1683 = vst.msk [vmem:[%s2913_s9 + $0x98] sm:$0xff] %vm1663_vm2, %v2330_v57 }
 0x104   : > { %1744 = vst.msk [vmem:[%s2913_s9 + $0x280] sm:$0xff] %vm1663_vm2, %v1472_v58  ;;  %v1219_v59 = vpop.f32.mrf.mxu0 }
 0x105   : > { %v2394_v60 = vpop.f32.mrf.mxu1  ;;  %1681 = vst.msk [vmem:[%s2913_s9 + $0x88] sm:$0xff] %vm1663_vm2, %v1219_v59 }
 0x106   : > { %1747 = vst.msk [vmem:[%s2913_s9 + $0x298] sm:$0xff] %vm1663_vm2, %v2394_v60 }
 0x107   : > { %v1475_v61 = vpop.f32.mrf.mxu1 }
 0x108   : > { %1745 = vst.msk [vmem:[%s2913_s9 + $0x288] sm:$0xff] %vm1663_vm2, %v1475_v61  ;;  %v2333_v62 = vpop.f32.mrf.mxu0 }
 0x109   : > { %1686 = vst.msk [vmem:[%s2913_s9 + $0xb0] sm:$0xff] %vm1663_vm2, %v2333_v62 }
 0x10a   : > { %v2397_v63 = vpop.f32.mrf.mxu1  ;;  %v1232_v0 = vpop.f32.mrf.mxu0 }
 0x10b   : > { %1750 = vst.msk [vmem:[%s2913_s9 + $0x2b0] sm:$0xff] %vm1663_vm2, %v2397_v63  ;;  %1684 = vst.msk [vmem:[%s2913_s9 + $0xa0] sm:$0xff] %vm1663_vm2, %v1232_v0 }
 0x10c   : > { %v1488_v1 = vpop.f32.mrf.mxu1  ;;  %v2334_v3 = vpop.f32.mrf.mxu0 }
 0x10d   : > { %1748 = vst.msk [vmem:[%s2913_s9 + $0x2a0] sm:$0xff] %vm1663_vm2, %v1488_v1  ;;  %1687 = vst.msk [vmem:[%s2913_s9 + $0xb8] sm:$0xff] %vm1663_vm2, %v2334_v3 }
 0x10e   : > { %v2398_v4 = vpop.f32.mrf.mxu1  ;;  %v1235_v5 = vpop.f32.mrf.mxu0 }
 0x10f   : > { %1751 = vst.msk [vmem:[%s2913_s9 + $0x2b8] sm:$0xff] %vm1663_vm2, %v2398_v4  ;;  %1685 = vst.msk [vmem:[%s2913_s9 + $0xa8] sm:$0xff] %vm1663_vm2, %v1235_v5 }
 0x110   : > { %v1491_v6 = vpop.f32.mrf.mxu1 }
 0x111   : > { %1749 = vst.msk [vmem:[%s2913_s9 + $0x2a8] sm:$0xff] %vm1663_vm2, %v1491_v6  ;;  %v2337_v7 = vpop.f32.mrf.mxu0 }
 0x112   : > { %1690 = vst.msk [vmem:[%s2913_s9 + $0xd0] sm:$0xff] %vm1663_vm2, %v2337_v7 }
 0x113   : > { %v2401_v8 = vpop.f32.mrf.mxu1  ;;  %v1248_v9 = vpop.f32.mrf.mxu0 }
 0x114   : > { %1754 = vst.msk [vmem:[%s2913_s9 + $0x2d0] sm:$0xff] %vm1663_vm2, %v2401_v8  ;;  %1688 = vst.msk [vmem:[%s2913_s9 + $0xc0] sm:$0xff] %vm1663_vm2, %v1248_v9 }
 0x115   : > { %v1504_v10 = vpop.f32.mrf.mxu1  ;;  %v2338_v12 = vpop.f32.mrf.mxu0 }
 0x116   : > { %1752 = vst.msk [vmem:[%s2913_s9 + $0x2c0] sm:$0xff] %vm1663_vm2, %v1504_v10  ;;  %1691 = vst.msk [vmem:[%s2913_s9 + $0xd8] sm:$0xff] %vm1663_vm2, %v2338_v12 }
 0x117   : > { %v2402_v13 = vpop.f32.mrf.mxu1  ;;  %v1251_v14 = vpop.f32.mrf.mxu0 }
 0x118   : > { %1755 = vst.msk [vmem:[%s2913_s9 + $0x2d8] sm:$0xff] %vm1663_vm2, %v2402_v13  ;;  %1689 = vst.msk [vmem:[%s2913_s9 + $0xc8] sm:$0xff] %vm1663_vm2, %v1251_v14 }
 0x119   : > { %v1507_v15 = vpop.f32.mrf.mxu1 }
 0x11a   : > { %1753 = vst.msk [vmem:[%s2913_s9 + $0x2c8] sm:$0xff] %vm1663_vm2, %v1507_v15  ;;  %v2341_v16 = vpop.f32.mrf.mxu0 }
 0x11b   : > { %1694 = vst.msk [vmem:[%s2913_s9 + $0xf0] sm:$0xff] %vm1663_vm2, %v2341_v16 }
 0x11c   : > { %v2405_v17 = vpop.f32.mrf.mxu1  ;;  %v1264_v18 = vpop.f32.mrf.mxu0 }
 0x11d   : > { %1758 = vst.msk [vmem:[%s2913_s9 + $0x2f0] sm:$0xff] %vm1663_vm2, %v2405_v17  ;;  %1692 = vst.msk [vmem:[%s2913_s9 + $0xe0] sm:$0xff] %vm1663_vm2, %v1264_v18 }
 0x11e   : > { %v1520_v19 = vpop.f32.mrf.mxu1  ;;  %v2342_v20 = vpop.f32.mrf.mxu0 }
 0x11f   : > { %1756 = vst.msk [vmem:[%s2913_s9 + $0x2e0] sm:$0xff] %vm1663_vm2, %v1520_v19  ;;  %1695 = vst.msk [vmem:[%s2913_s9 + $0xf8] sm:$0xff] %vm1663_vm2, %v2342_v20 }
 0x120   : > { %v2406_v21 = vpop.f32.mrf.mxu1  ;;  %v1267_v22 = vpop.f32.mrf.mxu0 }
 0x121   : > { %1759 = vst.msk [vmem:[%s2913_s9 + $0x2f8] sm:$0xff] %vm1663_vm2, %v2406_v21  ;;  %1693 = vst.msk [vmem:[%s2913_s9 + $0xe8] sm:$0xff] %vm1663_vm2, %v1267_v22 }
 0x122   : > { %v1523_v23 = vpop.f32.mrf.mxu1 }
 0x123   : > { %1757 = vst.msk [vmem:[%s2913_s9 + $0x2e8] sm:$0xff] %vm1663_vm2, %v1523_v23  ;;  %v2345_v37 = vpop.f32.mrf.mxu0 }
 0x124   : > { %1698 = vst.msk [vmem:[%s2913_s9 + $0x110] sm:$0xff] %vm1663_vm2, %v2345_v37 }
 0x125   : > { %v2409_v45 = vpop.f32.mrf.mxu1  ;;  %v1280_v24 = vpop.f32.mrf.mxu0 }
 0x126   : > { %1762 = vst.msk [vmem:[%s2913_s9 + $0x310] sm:$0xff] %vm1663_vm2, %v2409_v45  ;;  %1696 = vst.msk [vmem:[%s2913_s9 + $0x100] sm:$0xff] %vm1663_vm2, %v1280_v24 }
 0x127   : > { %v1536_v25 = vpop.f32.mrf.mxu1  ;;  %v2346_v26 = vpop.f32.mrf.mxu0 }
 0x128   : > { %1760 = vst.msk [vmem:[%s2913_s9 + $0x300] sm:$0xff] %vm1663_vm2, %v1536_v25  ;;  %1699 = vst.msk [vmem:[%s2913_s9 + $0x118] sm:$0xff] %vm1663_vm2, %v2346_v26 }
 0x129   : > { %v2410_v27 = vpop.f32.mrf.mxu1  ;;  %v1283_v28 = vpop.f32.mrf.mxu0 }
 0x12a   : > { %1763 = vst.msk [vmem:[%s2913_s9 + $0x318] sm:$0xff] %vm1663_vm2, %v2410_v27  ;;  %1697 = vst.msk [vmem:[%s2913_s9 + $0x108] sm:$0xff] %vm1663_vm2, %v1283_v28 }
 0x12b   : > { %v1539_v29 = vpop.f32.mrf.mxu1 }
 0x12c   : > { %1761 = vst.msk [vmem:[%s2913_s9 + $0x308] sm:$0xff] %vm1663_vm2, %v1539_v29  ;;  %v2349_v30 = vpop.f32.mrf.mxu0 }
 0x12d   : > { %1702 = vst.msk [vmem:[%s2913_s9 + $0x130] sm:$0xff] %vm1663_vm2, %v2349_v30 }
 0x12e   : > { %v2413_v31 = vpop.f32.mrf.mxu1  ;;  %v1296_v32 = vpop.f32.mrf.mxu0 }
 0x12f   : > { %1766 = vst.msk [vmem:[%s2913_s9 + $0x330] sm:$0xff] %vm1663_vm2, %v2413_v31  ;;  %1700 = vst.msk [vmem:[%s2913_s9 + $0x120] sm:$0xff] %vm1663_vm2, %v1296_v32 }
 0x130   : > { %v1552_v33 = vpop.f32.mrf.mxu1  ;;  %v2350_v34 = vpop.f32.mrf.mxu0 }
 0x131   : > { %1764 = vst.msk [vmem:[%s2913_s9 + $0x320] sm:$0xff] %vm1663_vm2, %v1552_v33  ;;  %1703 = vst.msk [vmem:[%s2913_s9 + $0x138] sm:$0xff] %vm1663_vm2, %v2350_v34 }
 0x132   : > { %v2414_v35 = vpop.f32.mrf.mxu1  ;;  %v1299_v36 = vpop.f32.mrf.mxu0 }
 0x133   : > { %1767 = vst.msk [vmem:[%s2913_s9 + $0x338] sm:$0xff] %vm1663_vm2, %v2414_v35  ;;  %1701 = vst.msk [vmem:[%s2913_s9 + $0x128] sm:$0xff] %vm1663_vm2, %v1299_v36 }
 0x134   : > { %v1555_v38 = vpop.f32.mrf.mxu1 }
 0x135   : > { %1765 = vst.msk [vmem:[%s2913_s9 + $0x328] sm:$0xff] %vm1663_vm2, %v1555_v38  ;;  %v2353_v39 = vpop.f32.mrf.mxu0 }
 0x136   : > { %1706 = vst.msk [vmem:[%s2913_s9 + $0x150] sm:$0xff] %vm1663_vm2, %v2353_v39 }
 0x137   : > { %v2417_v40 = vpop.f32.mrf.mxu1  ;;  %v1312_v41 = vpop.f32.mrf.mxu0 }
 0x138   : > { %1770 = vst.msk [vmem:[%s2913_s9 + $0x350] sm:$0xff] %vm1663_vm2, %v2417_v40  ;;  %1704 = vst.msk [vmem:[%s2913_s9 + $0x140] sm:$0xff] %vm1663_vm2, %v1312_v41 }
 0x139   : > { %v1568_v42 = vpop.f32.mrf.mxu1  ;;  %v2354_v2 = vpop.f32.mrf.mxu0 }
 0x13a   : > { %1768 = vst.msk [vmem:[%s2913_s9 + $0x340] sm:$0xff] %vm1663_vm2, %v1568_v42  ;;  %1707 = vst.msk [vmem:[%s2913_s9 + $0x158] sm:$0xff] %vm1663_vm2, %v2354_v2 }
 0x13b   : > { %v2418_v43 = vpop.f32.mrf.mxu1  ;;  %v1315_v44 = vpop.f32.mrf.mxu0 }
 0x13c   : > { %1771 = vst.msk [vmem:[%s2913_s9 + $0x358] sm:$0xff] %vm1663_vm2, %v2418_v43  ;;  %1705 = vst.msk [vmem:[%s2913_s9 + $0x148] sm:$0xff] %vm1663_vm2, %v1315_v44 }
 0x13d   : > { %v1571_v46 = vpop.f32.mrf.mxu1 }
 0x13e   : > { %1769 = vst.msk [vmem:[%s2913_s9 + $0x348] sm:$0xff] %vm1663_vm2, %v1571_v46  ;;  %v2357_v47 = vpop.f32.mrf.mxu0 }
 0x13f   : > { %1710 = vst.msk [vmem:[%s2913_s9 + $0x170] sm:$0xff] %vm1663_vm2, %v2357_v47 }
 0x140   : > { %v2421_v48 = vpop.f32.mrf.mxu1  ;;  %v1328_v49 = vpop.f32.mrf.mxu0 }
 0x141   : > { %1774 = vst.msk [vmem:[%s2913_s9 + $0x370] sm:$0xff] %vm1663_vm2, %v2421_v48  ;;  %1708 = vst.msk [vmem:[%s2913_s9 + $0x160] sm:$0xff] %vm1663_vm2, %v1328_v49 }
 0x142   : > { %v1584_v50 = vpop.f32.mrf.mxu1  ;;  %v2358_v51 = vpop.f32.mrf.mxu0 }
 0x143   : > { %1772 = vst.msk [vmem:[%s2913_s9 + $0x360] sm:$0xff] %vm1663_vm2, %v1584_v50  ;;  %1711 = vst.msk [vmem:[%s2913_s9 + $0x178] sm:$0xff] %vm1663_vm2, %v2358_v51 }
 0x144   : > { %v2422_v11 = vpop.f32.mrf.mxu1  ;;  %v1331_v52 = vpop.f32.mrf.mxu0 }
 0x145   : > { %1775 = vst.msk [vmem:[%s2913_s9 + $0x378] sm:$0xff] %vm1663_vm2, %v2422_v11  ;;  %1709 = vst.msk [vmem:[%s2913_s9 + $0x168] sm:$0xff] %vm1663_vm2, %v1331_v52 }
 0x146   : > { %v1587_v53 = vpop.f32.mrf.mxu1 }
 0x147   : > { %1773 = vst.msk [vmem:[%s2913_s9 + $0x368] sm:$0xff] %vm1663_vm2, %v1587_v53  ;;  %v2361_v54 = vpop.f32.mrf.mxu0 }
 0x148   : > { %1714 = vst.msk [vmem:[%s2913_s9 + $0x190] sm:$0xff] %vm1663_vm2, %v2361_v54 }
 0x149   : > { %v2425_v55 = vpop.f32.mrf.mxu1  ;;  %v1344_v56 = vpop.f32.mrf.mxu0 }
 0x14a   : > { %1778 = vst.msk [vmem:[%s2913_s9 + $0x390] sm:$0xff] %vm1663_vm2, %v2425_v55  ;;  %1712 = vst.msk [vmem:[%s2913_s9 + $0x180] sm:$0xff] %vm1663_vm2, %v1344_v56 }
 0x14b   : > { %v1600_v57 = vpop.f32.mrf.mxu1  ;;  %v2362_v58 = vpop.f32.mrf.mxu0 }
 0x14c   : > { %1776 = vst.msk [vmem:[%s2913_s9 + $0x380] sm:$0xff] %vm1663_vm2, %v1600_v57  ;;  %1715 = vst.msk [vmem:[%s2913_s9 + $0x198] sm:$0xff] %vm1663_vm2, %v2362_v58 }
 0x14d   : > { %v2426_v59 = vpop.f32.mrf.mxu1  ;;  %v1347_v60 = vpop.f32.mrf.mxu0 }
 0x14e   : > { %1779 = vst.msk [vmem:[%s2913_s9 + $0x398] sm:$0xff] %vm1663_vm2, %v2426_v59  ;;  %1713 = vst.msk [vmem:[%s2913_s9 + $0x188] sm:$0xff] %vm1663_vm2, %v1347_v60 }
 0x14f   : > { %v1603_v61 = vpop.f32.mrf.mxu1 }
 0x150   : > { %1777 = vst.msk [vmem:[%s2913_s9 + $0x388] sm:$0xff] %vm1663_vm2, %v1603_v61  ;;  %v2365_v62 = vpop.f32.mrf.mxu0 }
 0x151   : > { %1718 = vst.msk [vmem:[%s2913_s9 + $0x1b0] sm:$0xff] %vm1663_vm2, %v2365_v62 }
 0x152   : > { %v2429_v63 = vpop.f32.mrf.mxu1  ;;  %v1360_v0 = vpop.f32.mrf.mxu0 }
 0x153   : > { %1782 = vst.msk [vmem:[%s2913_s9 + $0x3b0] sm:$0xff] %vm1663_vm2, %v2429_v63  ;;  %1716 = vst.msk [vmem:[%s2913_s9 + $0x1a0] sm:$0xff] %vm1663_vm2, %v1360_v0 }
 0x154   : > { %v1616_v1 = vpop.f32.mrf.mxu1  ;;  %v2366_v3 = vpop.f32.mrf.mxu0 }
 0x155   : > { %1780 = vst.msk [vmem:[%s2913_s9 + $0x3a0] sm:$0xff] %vm1663_vm2, %v1616_v1  ;;  %1719 = vst.msk [vmem:[%s2913_s9 + $0x1b8] sm:$0xff] %vm1663_vm2, %v2366_v3 }
 0x156   : > { %v2430_v4 = vpop.f32.mrf.mxu1  ;;  %v1363_v5 = vpop.f32.mrf.mxu0 }
 0x157   : > { %1783 = vst.msk [vmem:[%s2913_s9 + $0x3b8] sm:$0xff] %vm1663_vm2, %v2430_v4  ;;  %1717 = vst.msk [vmem:[%s2913_s9 + $0x1a8] sm:$0xff] %vm1663_vm2, %v1363_v5 }
 0x158   : > { %v1619_v6 = vpop.f32.mrf.mxu1 }
 0x159   : > { %1781 = vst.msk [vmem:[%s2913_s9 + $0x3a8] sm:$0xff] %vm1663_vm2, %v1619_v6  ;;  %v2369_v7 = vpop.f32.mrf.mxu0 }
 0x15a   : > { %1722 = vst.msk [vmem:[%s2913_s9 + $0x1d0] sm:$0xff] %vm1663_vm2, %v2369_v7 }
 0x15b   : > { %v2433_v8 = vpop.f32.mrf.mxu1  ;;  %v1376_v9 = vpop.f32.mrf.mxu0 }
 0x15c   : > { %1786 = vst.msk [vmem:[%s2913_s9 + $0x3d0] sm:$0xff] %vm1663_vm2, %v2433_v8  ;;  %1720 = vst.msk [vmem:[%s2913_s9 + $0x1c0] sm:$0xff] %vm1663_vm2, %v1376_v9 }
 0x15d   : > { %v1632_v10 = vpop.f32.mrf.mxu1  ;;  %v2370_v12 = vpop.f32.mrf.mxu0 }
 0x15e   : > { %1784 = vst.msk [vmem:[%s2913_s9 + $0x3c0] sm:$0xff] %vm1663_vm2, %v1632_v10  ;;  %1723 = vst.msk [vmem:[%s2913_s9 + $0x1d8] sm:$0xff] %vm1663_vm2, %v2370_v12 }
 0x15f   : > { %v2434_v13 = vpop.f32.mrf.mxu1  ;;  %v1379_v14 = vpop.f32.mrf.mxu0 }
 0x160   : > { %1787 = vst.msk [vmem:[%s2913_s9 + $0x3d8] sm:$0xff] %vm1663_vm2, %v2434_v13  ;;  %1721 = vst.msk [vmem:[%s2913_s9 + $0x1c8] sm:$0xff] %vm1663_vm2, %v1379_v14 }
 0x161   : > { %v1635_v15 = vpop.f32.mrf.mxu1 }
 0x162   : > { %1785 = vst.msk [vmem:[%s2913_s9 + $0x3c8] sm:$0xff] %vm1663_vm2, %v1635_v15  ;;  %v2373_v16 = vpop.f32.mrf.mxu0 }
 0x163   : > { %1726 = vst.msk [vmem:[%s2913_s9 + $0x1f0] sm:$0xff] %vm1663_vm2, %v2373_v16 }
 0x164   : > { %v2437_v17 = vpop.f32.mrf.mxu1  ;;  %v1392_v18 = vpop.f32.mrf.mxu0 }
 0x165   : > { %1790 = vst.msk [vmem:[%s2913_s9 + $0x3f0] sm:$0xff] %vm1663_vm2, %v2437_v17  ;;  %1724 = vst.msk [vmem:[%s2913_s9 + $0x1e0] sm:$0xff] %vm1663_vm2, %v1392_v18 }
 0x166   : > { %v1648_v19 = vpop.f32.mrf.mxu1  ;;  %v2374_v20 = vpop.f32.mrf.mxu0 }
 0x167   : > { %1788 = vst.msk [vmem:[%s2913_s9 + $0x3e0] sm:$0xff] %vm1663_vm2, %v1648_v19  ;;  %1727 = vst.msk [vmem:[%s2913_s9 + $0x1f8] sm:$0xff] %vm1663_vm2, %v2374_v20 }
 0x168   : > { %v2438_v21 = vpop.f32.mrf.mxu1  ;;  %v1395_v22 = vpop.f32.mrf.mxu0 }
 0x169   : > { %1791 = vst.msk [vmem:[%s2913_s9 + $0x3f8] sm:$0xff] %vm1663_vm2, %v2438_v21  ;;  %1725 = vst.msk [vmem:[%s2913_s9 + $0x1e8] sm:$0xff] %vm1663_vm2, %v1395_v22 }
 0x16a   : > { %v1651_v23 = vpop.f32.mrf.mxu1 }
 0x16b   : > { %1789 = vst.msk [vmem:[%s2913_s9 + $0x3e8] sm:$0xff] %vm1663_vm2, %v1651_v23 }
 0x16c PF: > { %s14_s15 = sadd.s32 1, %s2459_s15  }
 0x16d   : > { %p11_p4 = scmp.ge.s32.totalorder %s14_s15, 4  }
 0x16f   :  { %13 = sbr.rel (!%p11_p4) target bundleno = 1 (0x1), region = 66 }

// kernel: generator_forward.17
= control target key start
LH: loop header
LB: loop body
LE: loop exit
PB: predicated region body
PF: predicated region fallthrough
CT: control target
= control target key end

     0   :  { %s305_s6 = smov 0   ;;  %s369_s0 = inlined_call_operand.vmem [shape: f32[128,192], index: 0, kind: input, shape index: {}]   ;;  %s370_s1 = inlined_call_operand.vmem [shape: f32[128,192], index: 1, kind: output, shape index: {}]  }
   0x1 LB: > { %s232_s7 = sadd.s32 4294967295, %s293_s6   ;;  %p236_p0 = scmp.ge.s32.totalorder %s293_s6, 1  ;;  %s293_s6 = sphi %s305_s6, %s11_s6  }
   0x2   : > { %p89_p1 = scmp.lt.s32.totalorder %s293_s6, 3 }
   0x4   : > { %p90_p2 = pnand %p236_p0, %p89_p1 }
   0x5   : > { %s237_s8 = sshll.u32 (!%p90_p2), %s232_s7, 3 }
   0x6   : > { %93 = sbr.rel (%p90_p2) target bundleno = 45 (0x2d), region = 24  ;;  %p112_p3 = scmp.lt.s32.totalorder (!%p90_p2), %s237_s8, 15 }
   0xb   : > { %s372_s8 = smov (!%p112_p3, %s237_s8), 15  ;;  %vm158_vm0 = vcmask 523264  }
   0xc   : > { %s245_s9 = sshll.u32 %s372_s8, 4 }
   0xd   : > { %s319_s12 = scalar_lea.vmem %s369_s0, %s245_s9  ;;  %s338_s15 = scalar_lea.vmem %s370_s1, %s245_s9 }
   0xe   : > { %v125_v0 = vld [vmem:[%s319_s12] sm:$0xff]  ;;  %v126_v1 = vld [vmem:[%s319_s12 + $0x8] sm:$0xff]  ;;  %v127_v2 = vld [vmem:[%s319_s12 + $0x10] sm:$0xff] }
   0xf   : > { %255 = vtanh.f32 %v125_v0  ;;  %v128_v3 = vld [vmem:[%s319_s12 + $0x18] sm:$0xff]  ;;  %v129_v4 = vld [vmem:[%s319_s12 + $0x20] sm:$0xff]  ;;  %v130_v5 = vld [vmem:[%s319_s12 + $0x28] sm:$0xff] }
  0x10   : > { %257 = vtanh.f32 %v126_v1  ;;  %v131_v6 = vld [vmem:[%s319_s12 + $0x30] sm:$0xff]  ;;  %v132_v7 = vld [vmem:[%s319_s12 + $0x38] sm:$0xff]  ;;  %v133_v8 = vld [vmem:[%s319_s12 + $0x40] sm:$0xff] }
  0x11   : > { %259 = vtanh.f32 %v127_v2  ;;  %v134_v9 = vld [vmem:[%s319_s12 + $0x48] sm:$0xff]  ;;  %v135_v10 = vld [vmem:[%s319_s12 + $0x50] sm:$0xff]  ;;  %v136_v11 = vld [vmem:[%s319_s12 + $0x58] sm:$0xff] }
  0x12   : > { %261 = vtanh.f32 %v128_v3  ;;  %v137_v12 = vld [vmem:[%s319_s12 + $0x60] sm:$0xff]  ;;  %v138_v13 = vld [vmem:[%s319_s12 + $0x68] sm:$0xff]  ;;  %v139_v14 = vld [vmem:[%s319_s12 + $0x70] sm:$0xff] }
  0x13   : > { %263 = vtanh.f32 %v129_v4  ;;  %v140_v15 = vld [vmem:[%s319_s12 + $0x78] sm:$0xff] }
  0x14   : > { %265 = vtanh.f32 %v130_v5 }
  0x15   : > { %267 = vtanh.f32 %v131_v6 }
  0x16   : > { %269 = vtanh.f32 %v132_v7 }
  0x17   : > { %271 = vtanh.f32 %v133_v8 }
  0x18   : > { %273 = vtanh.f32 %v134_v9 }
  0x19   : > { %275 = vtanh.f32 %v135_v10 }
  0x1a   : > { %277 = vtanh.f32 %v136_v11 }
  0x1b   : > { %279 = vtanh.f32 %v137_v12 }
  0x1c   : > { %v256_v16 = vpop.eup %255  ;;  %281 = vtanh.f32 %v138_v13 }
  0x1d   : > { %v258_v17 = vpop.eup %257  ;;  %157 = vst [vmem:[%s338_s15] sm:$0xff] %v256_v16  ;;  %283 = vtanh.f32 %v139_v14 }
  0x1e   : > { %v260_v18 = vpop.eup %259  ;;  %159 = vst.msk [vmem:[%s338_s15 + $0x8] sm:$0xff] %vm158_vm0, %v258_v17  ;;  %285 = vtanh.f32 %v140_v15 }
  0x1f   : > { %v262_v19 = vpop.eup %261  ;;  %160 = vst [vmem:[%s338_s15 + $0x10] sm:$0xff] %v260_v18 }
  0x20   : > { %v264_v20 = vpop.eup %263  ;;  %161 = vst.msk [vmem:[%s338_s15 + $0x18] sm:$0xff] %vm158_vm0, %v262_v19 }
  0x21   : > { %v266_v21 = vpop.eup %265  ;;  %162 = vst [vmem:[%s338_s15 + $0x20] sm:$0xff] %v264_v20 }
  0x22   : > { %v268_v22 = vpop.eup %267  ;;  %163 = vst.msk [vmem:[%s338_s15 + $0x28] sm:$0xff] %vm158_vm0, %v266_v21 }
  0x23   : > { %v270_v23 = vpop.eup %269  ;;  %164 = vst [vmem:[%s338_s15 + $0x30] sm:$0xff] %v268_v22 }
  0x24   : > { %v272_v24 = vpop.eup %271  ;;  %165 = vst.msk [vmem:[%s338_s15 + $0x38] sm:$0xff] %vm158_vm0, %v270_v23 }
  0x25   : > { %v274_v25 = vpop.eup %273  ;;  %166 = vst [vmem:[%s338_s15 + $0x40] sm:$0xff] %v272_v24 }
  0x26   : > { %v276_v26 = vpop.eup %275  ;;  %167 = vst.msk [vmem:[%s338_s15 + $0x48] sm:$0xff] %vm158_vm0, %v274_v25 }
  0x27   : > { %v278_v27 = vpop.eup %277  ;;  %168 = vst [vmem:[%s338_s15 + $0x50] sm:$0xff] %v276_v26 }
  0x28   : > { %v280_v28 = vpop.eup %279  ;;  %169 = vst.msk [vmem:[%s338_s15 + $0x58] sm:$0xff] %vm158_vm0, %v278_v27 }
  0x29   : > { %v282_v29 = vpop.eup %281  ;;  %170 = vst [vmem:[%s338_s15 + $0x60] sm:$0xff] %v280_v28 }
  0x2a   : > { %v284_v30 = vpop.eup %283  ;;  %171 = vst.msk [vmem:[%s338_s15 + $0x68] sm:$0xff] %vm158_vm0, %v282_v29 }
  0x2b   : > { %v286_v31 = vpop.eup %285  ;;  %172 = vst [vmem:[%s338_s15 + $0x70] sm:$0xff] %v284_v30 }
  0x2c   : > { %173 = vst.msk [vmem:[%s338_s15 + $0x78] sm:$0xff] %vm158_vm0, %v286_v31 }
  0x2d PF: > { %s11_s6 = sadd.s32 1, %s293_s6  }
  0x2e   : > { %p8_p4 = scmp.ge.s32.totalorder %s11_s6, 4  }
  0x30   :  { %10 = sbr.rel (!%p8_p4) target bundleno = 1 (0x1), region = 54 }

</bundles_post_ra>
